<compile_context>
chip_gen: v5e
topology: v5e:2x2
jax: 0.10.0
libtpu: 0.0.40
codegen_flags: <defaults>
</compile_context>

<pallas_src>
import functools

import jax
import jax.numpy as jnp
import numpy as np
from jax import lax
from jax.experimental import pallas as pl
from jax.experimental.pallas import tpu as pltpu


_COMPUTE_DTYPE = jnp.bfloat16      # MXU-input / intermediate-activation dtype


def _vmem_limit_bytes():
    cap = 128 * 1024 * 1024
    try:
        cap = int(pltpu.get_tpu_info().vmem_capacity_bytes)
    except Exception:
        pass
    # Leave headroom for Mosaic internal scratch + double-buffered blocks:
    # -> 96 MiB on v5e/v6e (128 MiB physical), 48 MiB on v7x (64 MiB/TC).
    return min(96 * 1024 * 1024, (cap * 3) // 4)


# ------------------------------ Fused kernel --------------------------------


def _bottleneck_kernel(x_ref, w1_ref, w2_ref, w3_ref, bnc_ref, bnc4_ref, *rest,
                       has_ds, stride, dilation, th, H, W, Wo, pad, Cin, C, C4):
    # x_ref   : (1, H, W, Cin) bf16, whole image, VMEM-resident across row tiles
    # w1_ref  : (Cin, C)        bf16
    # w2_ref  : (9*C, C)        bf16  (kh, kw, Cin)-major im2col weight
    # w3_ref  : (C, C4)         bf16
    # bnc_ref : (4, C)   f32    rows: s1, b1, s2, b2   (folded BN)
    # bnc4_ref: (2|4, C4) f32   rows: s3, b3 [, s_ds, b_ds]
    # rest    : [wds_ref (Cin, C4)], o_ref (1, th, Wo, C4),
    #           a1_ref (Hp, Wp, C) bf16 scratch, patch_ref (th, Wo, 9*C) bf16
    if has_ds:
        wds_ref, o_ref, a1_ref, patch_ref = rest
    else:
        o_ref, a1_ref, patch_ref = rest

    t = pl.program_id(1)
    Wp = W + 2 * pad
    row_span = (th - 1) * stride + 1

    s1, b1 = bnc_ref[0:1, :], bnc_ref[1:2, :]
    s2, b2 = bnc_ref[2:3, :], bnc_ref[3:4, :]
    s3, b3 = bnc4_ref[0:1, :], bnc4_ref[1:2, :]

    # --- Stage 1: 1x1 conv + BN + ReLU over the whole image, computed once per
    #     image and written into the interior of a zero-padded VMEM scratch
    #     (replaces the old jnp.pad HBM pass + separate pointwise kernel).
    @pl.when(t == 0)
    def _():
        a1_ref[...] = jnp.zeros_like(a1_ref)
        xin = x_ref[0, :, :, :].reshape(H * W, Cin)
        a1 = jnp.dot(xin, w1_ref[...], preferred_element_type=jnp.float32)
        a1 = jnp.maximum(a1 * s1 + b1, 0.0)
        a1_ref[pad:pad + H, pad:pad + W, :] = (
            a1.astype(a1_ref.dtype).reshape(H, W, C))

    # --- Stage 2: 3x3 conv (stride/dilation, padding=dilation) + BN + ReLU on
    #     one row tile.  Taps are im2col-staged into a bf16 VMEM patch buffer,
    #     then reduced with ONE MXU matmul (K = 9*C): no per-tap VMEM-scratch
    #     accumulator round trips, maximal K-dim MXU occupancy.
    r0 = t * (th * stride)                 # first padded-a1 row of this tile
    for kh in range(3):
        h0 = r0 + kh * dilation
        if stride == 1:
            rows = a1_ref[pl.ds(h0, th), :, :]                     # (th, Wp, C)
        else:
            full = a1_ref[pl.ds(h0, row_span), :, :]
            rows = lax.slice(full, (0, 0, 0), (row_span, Wp, C), (stride, 1, 1))
        for kw in range(3):
            c0 = kw * dilation
            if stride == 1:
                tap = rows[:, c0:c0 + Wo, :]                       # (th, Wo, C)
            else:
                tap = lax.slice(rows, (0, c0, 0),
                                (th, c0 + (Wo - 1) * stride + 1, C),
                                (1, stride, 1))
            k0 = (kh * 3 + kw) * C
            patch_ref[:, :, k0:k0 + C] = tap
    patch = patch_ref[...].reshape(th * Wo, 9 * C)
    acc = jnp.dot(patch, w2_ref[...], preferred_element_type=jnp.float32)
    a2 = jnp.maximum(acc * s2 + b2, 0.0).astype(_COMPUTE_DTYPE)    # (th*Wo, C)

    # --- Stage 3: 1x1 conv + BN (f32 epilogue).
    y = jnp.dot(a2, w3_ref[...], preferred_element_type=jnp.float32)
    y = y * s3 + b3                                                # (th*Wo, C4)

    # --- Residual branch, read directly from the VMEM-resident input image
    #     (strided subsample + downsample 1x1 conv fused in-kernel).
    if has_ds:
        sd, bd = bnc4_ref[2:3, :], bnc4_ref[3:4, :]
        xr = x_ref[0, pl.ds(r0, row_span), :, :]                   # (row_span, W, Cin)
        if stride == 1:
            xs = xr                                                # (th, Wo, Cin)
        else:
            xs = lax.slice(xr, (0, 0, 0),
                           (row_span, (Wo - 1) * stride + 1, Cin),
                           (stride, stride, 1))
        res = jnp.dot(xs.reshape(th * Wo, Cin), wds_ref[...],
                      preferred_element_type=jnp.float32)
        res = res * sd + bd
    else:
        res = x_ref[0, pl.ds(r0, th), :, :].astype(jnp.float32).reshape(
            th * Wo, C4)

    o_ref[...] = jnp.maximum(y + res, 0.0).reshape(1, th, Wo, C4).astype(
        o_ref.dtype)


# ------------------------------ Module glue ---------------------------------


def fold_bn(gamma, beta, mean, var, eps=1e-5):
    scale = gamma / jnp.sqrt(var + eps)
    shift = beta - mean * scale
    return scale, shift


def _pick_row_tile(Ho, Wo, target_pixels=1024):
    """Largest divisor of Ho with ~<= target output pixels per tile."""
    target = max(1, target_pixels // max(Wo, 1))
    th = 1
    for cand in range(1, Ho + 1):
        if Ho % cand == 0 and cand <= target:
            th = cand
    return th


def bottleneck_forward(x_nchw, p, *, stride=1, dilation=1,
                       out_dtype=jnp.float32):
    # NCHW -> NHWC at the boundary only (PyTorch interface convention).
    x = jnp.transpose(x_nchw, (0, 2, 3, 1)).astype(_COMPUTE_DTYPE)
    N, H, W, Cin = x.shape
    C = p['w1'].shape[1]
    C4 = p['w3'].shape[1]
    pad = dilation
    Hp, Wp = H + 2 * pad, W + 2 * pad
    Ho = (H - 1) // stride + 1
    Wo = (W - 1) // stride + 1
    has_ds = 'w_ds' in p
    if not has_ds:
        assert stride == 1 and Cin == C4, (
            "identity residual requires stride==1 and in_channels==4*channels")

    s1, b1 = fold_bn(*p['bn1'])
    s2, b2 = fold_bn(*p['bn2'])
    s3, b3 = fold_bn(*p['bn3'])
    bn_c = jnp.stack([s1, b1, s2, b2]).astype(jnp.float32)          # (4, C)
    if has_ds:
        sd, bd = fold_bn(*p['bn_ds'])
        bn_c4 = jnp.stack([s3, b3, sd, bd]).astype(jnp.float32)     # (4, C4)
    else:
        bn_c4 = jnp.stack([s3, b3]).astype(jnp.float32)             # (2, C4)

    th = _pick_row_tile(Ho, Wo)
    num_t = Ho // th

    args = [
        x,
        p['w1'].astype(_COMPUTE_DTYPE),
        p['w2'].reshape(9 * C, C).astype(_COMPUTE_DTYPE),   # (kh,kw,Cin)-major
        p['w3'].astype(_COMPUTE_DTYPE),
        bn_c,
        bn_c4,
    ]
    in_specs = [
        # Whole image, block index independent of t -> VMEM-resident across
        # all row tiles of one image (single DMA per image).
        pl.BlockSpec((1, H, W, Cin), lambda n, t: (n, 0, 0, 0)),
        pl.BlockSpec((Cin, C), lambda n, t: (0, 0)),
        pl.BlockSpec((9 * C, C), lambda n, t: (0, 0)),
        pl.BlockSpec((C, C4), lambda n, t: (0, 0)),
        pl.BlockSpec(bn_c.shape, lambda n, t: (0, 0)),
        pl.BlockSpec(bn_c4.shape, lambda n, t: (0, 0)),
    ]
    if has_ds:
        args.append(p['w_ds'].astype(_COMPUTE_DTYPE))
        in_specs.append(pl.BlockSpec((Cin, C4), lambda n, t: (0, 0)))

    kernel = functools.partial(
        _bottleneck_kernel, has_ds=has_ds, stride=stride, dilation=dilation,
        th=th, H=H, W=W, Wo=Wo, pad=pad, Cin=Cin, C=C, C4=C4)

    out = pl.pallas_call(
        kernel,
        out_shape=jax.ShapeDtypeStruct((N, Ho, Wo, C4), out_dtype),
        grid=(N, num_t),
        in_specs=in_specs,
        out_specs=pl.BlockSpec((1, th, Wo, C4), lambda n, t: (n, t, 0, 0)),
        scratch_shapes=[
            pltpu.VMEM((Hp, Wp, C), _COMPUTE_DTYPE),       # padded conv1 output
            pltpu.VMEM((th, Wo, 9 * C), _COMPUTE_DTYPE),   # im2col patch buffer
        ],
        compiler_params=pltpu.CompilerParams(
            # t must stay sequential on one core (conv1 computed at t == 0).
            dimension_semantics=("parallel", "arbitrary"),
            vmem_limit_bytes=_vmem_limit_bytes()),
    )(*args)

    # NHWC -> NCHW
    return jnp.transpose(out, (0, 3, 1, 2))


def init_params(key, in_channels, channels, stride=1):
    out_channels = 4 * channels
    keys = jax.random.split(key, 8)

    def bn_params(k, c):
        k1, k2, k3, k4 = jax.random.split(k, 4)
        gamma = 1.0 + 0.1 * jax.random.normal(k1, (c,), jnp.float32)
        beta = 0.1 * jax.random.normal(k2, (c,), jnp.float32)
        mean = 0.1 * jax.random.normal(k3, (c,), jnp.float32)
        var = 0.5 + 0.5 * jnp.abs(jax.random.normal(k4, (c,), jnp.float32))
        return (gamma, beta, mean, var)

    p = {
        'w1': 0.2 * jax.random.normal(keys[0], (in_channels, channels), jnp.float32),
        'bn1': bn_params(keys[1], channels),
        'w2': 0.2 * jax.random.normal(keys[2], (3, 3, channels, channels), jnp.float32),
        'bn2': bn_params(keys[3], channels),
        'w3': 0.2 * jax.random.normal(keys[4], (channels, out_channels), jnp.float32),
        'bn3': bn_params(keys[5], out_channels),
    }
    if stride != 1 or in_channels != out_channels:
        p['w_ds'] = 0.2 * jax.random.normal(keys[6], (in_channels, out_channels), jnp.float32)
        p['bn_ds'] = bn_params(keys[7], out_channels)
    return p


# ------------------------------ Reference -----------------------------------


def reference_forward(x_nchw, p, *, stride=1, dilation=1):
    x = jnp.transpose(x_nchw, (0, 2, 3, 1)).astype(jnp.float32)
    dn = ('NHWC', 'HWIO', 'NHWC')

    def bn(y, params):
        scale, shift = fold_bn(*params)
        return y * scale + shift

    out = lax.conv_general_dilated(x, p['w1'][None, None], (1, 1), 'VALID',
                                   dimension_numbers=dn)
    out = jax.nn.relu(bn(out, p['bn1']))
    out = lax.conv_general_dilated(out, p['w2'], (stride, stride),
                                   [(dilation, dilation), (dilation, dilation)],
                                   rhs_dilation=(dilation, dilation),
                                   dimension_numbers=dn)
    out = jax.nn.relu(bn(out, p['bn2']))
    out = lax.conv_general_dilated(out, p['w3'][None, None], (1, 1), 'VALID',
                                   dimension_numbers=dn)
    out = bn(out, p['bn3'])
    if 'w_ds' in p:
        res = lax.conv_general_dilated(x, p['w_ds'][None, None],
                                       (stride, stride), 'VALID',
                                       dimension_numbers=dn)
        res = bn(res, p['bn_ds'])
    else:
        res = x
    out = jax.nn.relu(out + res)
    return jnp.transpose(out, (0, 3, 1, 2))


# --------------------------------- Main --------------------------------------


if __name__ == "__main__":
    key = jax.random.PRNGKey(0)

    configs = [
        # (in_channels, channels, stride, dilation) -> downsample residual path
        dict(in_channels=8, channels=4, stride=1, dilation=1),
        # in_channels == 4*channels, stride 1 -> identity residual path
        dict(in_channels=16, channels=4, stride=1, dilation=1),
    ]

    for i, cfg in enumerate(configs):
        k_x, k_p = jax.random.split(jax.random.fold_in(key, i))
        x = jax.random.normal(k_x, (2, cfg['in_channels'], 16, 16), jnp.float32)
        params = init_params(k_p, cfg['in_channels'], cfg['channels'],
                             cfg['stride'])

        out = bottleneck_forward(x, params, stride=cfg['stride'],
                                 dilation=cfg['dilation'])
        out = jax.block_until_ready(out)

        Ho = (16 - 1) // cfg['stride'] + 1
        assert out.shape == (2, 4 * cfg['channels'], Ho, Ho), out.shape

        ref = reference_forward(x, params, stride=cfg['stride'],
                                dilation=cfg['dilation'])
        # bf16 MXU inputs + bf16 in-VMEM intermediates -> bf16-level tolerance
        # against the pure-f32 reference.
        np.testing.assert_allclose(np.asarray(out), np.asarray(ref),
                                   rtol=2e-2, atol=5e-2)

    print("KERNEL_OK")
</pallas_src>

<mosaic_0001>
module attributes {stable_mosaic.version = 11 : i64} {
  func.func @_bottleneck_kernel(%arg0: i32, %arg1: i32, %arg2: memref<1x16x16x8xbf16, #tpu.memory_space<vmem>>, %arg3: memref<8x4xbf16, #tpu.memory_space<vmem>>, %arg4: memref<36x4xbf16, #tpu.memory_space<vmem>>, %arg5: memref<4x16xbf16, #tpu.memory_space<vmem>>, %arg6: memref<4x4xf32, #tpu.memory_space<vmem>>, %arg7: memref<4x16xf32, #tpu.memory_space<vmem>>, %arg8: memref<8x16xbf16, #tpu.memory_space<vmem>>, %arg9: memref<1x16x16x16xf32, #tpu.memory_space<vmem>>, %arg10: memref<18x18x4xbf16, #tpu.memory_space<vmem>>, %arg11: memref<16x16x36xbf16, #tpu.memory_space<vmem>>) attributes {dimension_semantics = [#tpu.dimension_semantics<parallel>, #tpu.dimension_semantics<arbitrary>], iteration_bounds = array<i64: 2, 1>, scalar_prefetch = 0 : i64, scratch_operands = 2 : i64, tpu.core_type = #tpu.core_type<tc>, window_params = [{transform_indices = @transform_0, window_bounds = array<i64: 1, 16, 16, 8>}, {pipeline_mode = #tpu.pipeline_mode<synchronous>, transform_indices = @transform_1, window_bounds = array<i64: 8, 4>}, {pipeline_mode = #tpu.pipeline_mode<synchronous>, transform_indices = @transform_2, window_bounds = array<i64: 36, 4>}, {pipeline_mode = #tpu.pipeline_mode<synchronous>, transform_indices = @transform_3, window_bounds = array<i64: 4, 16>}, {pipeline_mode = #tpu.pipeline_mode<synchronous>, transform_indices = @transform_4, window_bounds = array<i64: 4, 4>}, {pipeline_mode = #tpu.pipeline_mode<synchronous>, transform_indices = @transform_5, window_bounds = array<i64: 4, 16>}, {pipeline_mode = #tpu.pipeline_mode<synchronous>, transform_indices = @transform_6, window_bounds = array<i64: 8, 16>}, {transform_indices = @transform_7, window_bounds = array<i64: 1, 16, 16, 16>}]} {
    %c0 = arith.constant 0 : index
    %c0_0 = arith.constant 0 : index
    %0 = vector.load %arg6[%c0, %c0_0] : memref<4x4xf32, #tpu.memory_space<vmem>>, vector<1x4xf32>
    %c1 = arith.constant 1 : index
    %c0_1 = arith.constant 0 : index
    %1 = vector.load %arg6[%c1, %c0_1] : memref<4x4xf32, #tpu.memory_space<vmem>>, vector<1x4xf32>
    %c2 = arith.constant 2 : index
    %c0_2 = arith.constant 0 : index
    %2 = vector.load %arg6[%c2, %c0_2] : memref<4x4xf32, #tpu.memory_space<vmem>>, vector<1x4xf32>
    %c3 = arith.constant 3 : index
    %c0_3 = arith.constant 0 : index
    %3 = vector.load %arg6[%c3, %c0_3] : memref<4x4xf32, #tpu.memory_space<vmem>>, vector<1x4xf32>
    %c0_4 = arith.constant 0 : index
    %c0_5 = arith.constant 0 : index
    %4 = vector.load %arg7[%c0_4, %c0_5] : memref<4x16xf32, #tpu.memory_space<vmem>>, vector<1x16xf32>
    %c1_6 = arith.constant 1 : index
    %c0_7 = arith.constant 0 : index
    %5 = vector.load %arg7[%c1_6, %c0_7] : memref<4x16xf32, #tpu.memory_space<vmem>>, vector<1x16xf32>
    %c0_i32 = arith.constant 0 : i32
    %6 = arith.cmpi eq, %arg1, %c0_i32 : i32
    %7 = arith.extui %6 : i1 to i32
    %c0_i32_8 = arith.constant 0 : i32
    %8 = arith.cmpi ne, %7, %c0_i32_8 : i32
    scf.if %8 {
      %cst_59 = arith.constant 0.000000e+00 : bf16
      %71 = vector.broadcast %cst_59 : bf16 to vector<18x18x4xbf16>
      %c0_60 = arith.constant 0 : index
      %c0_61 = arith.constant 0 : index
      %c0_62 = arith.constant 0 : index
      %72 = vector.load %arg10[%c0_60, %c0_61, %c0_62] : memref<18x18x4xbf16, #tpu.memory_space<vmem>>, vector<18x18x4xbf16>
      tpu.vector_store %arg10[%c0_60, %c0_61, %c0_62], %71 {strides = array<i32>} : memref<18x18x4xbf16, #tpu.memory_space<vmem>>, vector<18x18x4xbf16>,
      %c0_63 = arith.constant 0 : index
      %c0_64 = arith.constant 0 : index
      %c0_65 = arith.constant 0 : index
      %c0_66 = arith.constant 0 : index
      %73 = vector.load %arg2[%c0_63, %c0_64, %c0_65, %c0_66] : memref<1x16x16x8xbf16, #tpu.memory_space<vmem>>, vector<1x16x16x8xbf16>
      %74 = vector.shape_cast %73 : vector<1x16x16x8xbf16> to vector<16x16x8xbf16>
      %75 = vector.shape_cast %74 : vector<16x16x8xbf16> to vector<256x8xbf16>
      %c0_67 = arith.constant 0 : index
      %c0_68 = arith.constant 0 : index
      %76 = vector.load %arg3[%c0_67, %c0_68] : memref<8x4xbf16, #tpu.memory_space<vmem>>, vector<8x4xbf16>
      %cst_69 = arith.constant dense<0.000000e+00> : vector<256x4xf32>
      %77 = tpu.matmul %75, %76, %cst_69 {dimension_numbers = #tpu.dot_dimension_numbers<[1], [0], [0], [1], [0, 0, 1, 1], [], []>} : vector<256x8xbf16>, vector<8x4xbf16>, vector<256x4xf32> -> vector<256x4xf32>
      %78 = vector.broadcast %0 : vector<1x4xf32> to vector<256x4xf32>
      %79 = arith.mulf %77, %78 : vector<256x4xf32>
      %80 = vector.broadcast %1 : vector<1x4xf32> to vector<256x4xf32>
      %81 = arith.addf %79, %80 : vector<256x4xf32>
      %cst_70 = arith.constant 0.000000e+00 : f32
      %82 = vector.broadcast %cst_70 : f32 to vector<256x4xf32>
      %83 = arith.maximumf %81, %82 : vector<256x4xf32>
      %84 = arith.truncf %83 : vector<256x4xf32> to vector<256x4xbf16>
      %85 = vector.shape_cast %84 : vector<256x4xbf16> to vector<16x16x4xbf16>
      %c1_71 = arith.constant 1 : index
      %c1_72 = arith.constant 1 : index
      %c0_73 = arith.constant 0 : index
      %86 = vector.load %arg10[%c1_71, %c1_72, %c0_73] : memref<18x18x4xbf16, #tpu.memory_space<vmem>>, vector<16x16x4xbf16>
      tpu.vector_store %arg10[%c1_71, %c1_72, %c0_73], %85 {strides = array<i32>} : memref<18x18x4xbf16, #tpu.memory_space<vmem>>, vector<16x16x4xbf16>,
    } else {
    }
    %c16_i32 = arith.constant 16 : i32
    %9 = arith.muli %arg1, %c16_i32 : i32
    %c0_i32_9 = arith.constant 0 : i32
    %10 = arith.addi %9, %c0_i32_9 : i32
    %11 = arith.index_cast %10 : i32 to index
    %c0_10 = arith.constant 0 : index
    %c0_11 = arith.constant 0 : index
    %12 = vector.load %arg10[%11, %c0_10, %c0_11] : memref<18x18x4xbf16, #tpu.memory_space<vmem>>, vector<16x18x4xbf16>
    %13 = vector.extract_strided_slice %12 {offsets = [0, 0, 0], sizes = [16, 16, 4], strides = [1, 1, 1]} : vector<16x18x4xbf16> to vector<16x16x4xbf16>
    %c0_12 = arith.constant 0 : index
    %c0_13 = arith.constant 0 : index
    %c0_14 = arith.constant 0 : index
    %14 = vector.load %arg11[%c0_12, %c0_13, %c0_14] : memref<16x16x36xbf16, #tpu.memory_space<vmem>>, vector<16x16x4xbf16>
    tpu.vector_store %arg11[%c0_12, %c0_13, %c0_14], %13 {strides = array<i32>} : memref<16x16x36xbf16, #tpu.memory_space<vmem>>, vector<16x16x4xbf16>,
    %15 = vector.extract_strided_slice %12 {offsets = [0, 1, 0], sizes = [16, 16, 4], strides = [1, 1, 1]} : vector<16x18x4xbf16> to vector<16x16x4xbf16>
    %c0_15 = arith.constant 0 : index
    %c0_16 = arith.constant 0 : index
    %c4 = arith.constant 4 : index
    %16 = vector.load %arg11[%c0_15, %c0_16, %c4] : memref<16x16x36xbf16, #tpu.memory_space<vmem>>, vector<16x16x4xbf16>
    tpu.vector_store %arg11[%c0_15, %c0_16, %c4], %15 {strides = array<i32>} : memref<16x16x36xbf16, #tpu.memory_space<vmem>>, vector<16x16x4xbf16>,
    %17 = vector.extract_strided_slice %12 {offsets = [0, 2, 0], sizes = [16, 16, 4], strides = [1, 1, 1]} : vector<16x18x4xbf16> to vector<16x16x4xbf16>
    %c0_17 = arith.constant 0 : index
    %c0_18 = arith.constant 0 : index
    %c8 = arith.constant 8 : index
    %18 = vector.load %arg11[%c0_17, %c0_18, %c8] : memref<16x16x36xbf16, #tpu.memory_space<vmem>>, vector<16x16x4xbf16>
    tpu.vector_store %arg11[%c0_17, %c0_18, %c8], %17 {strides = array<i32>} : memref<16x16x36xbf16, #tpu.memory_space<vmem>>, vector<16x16x4xbf16>,
    %c1_i32 = arith.constant 1 : i32
    %19 = arith.addi %9, %c1_i32 : i32
    %20 = arith.index_cast %19 : i32 to index
    %c0_19 = arith.constant 0 : index
    %c0_20 = arith.constant 0 : index
    %21 = vector.load %arg10[%20, %c0_19, %c0_20] : memref<18x18x4xbf16, #tpu.memory_space<vmem>>, vector<16x18x4xbf16>
    %22 = vector.extract_strided_slice %21 {offsets = [0, 0, 0], sizes = [16, 16, 4], strides = [1, 1, 1]} : vector<16x18x4xbf16> to vector<16x16x4xbf16>
    %c0_21 = arith.constant 0 : index
    %c0_22 = arith.constant 0 : index
    %c12 = arith.constant 12 : index
    %23 = vector.load %arg11[%c0_21, %c0_22, %c12] : memref<16x16x36xbf16, #tpu.memory_space<vmem>>, vector<16x16x4xbf16>
    tpu.vector_store %arg11[%c0_21, %c0_22, %c12], %22 {strides = array<i32>} : memref<16x16x36xbf16, #tpu.memory_space<vmem>>, vector<16x16x4xbf16>,
    %24 = vector.extract_strided_slice %21 {offsets = [0, 1, 0], sizes = [16, 16, 4], strides = [1, 1, 1]} : vector<16x18x4xbf16> to vector<16x16x4xbf16>
    %c0_23 = arith.constant 0 : index
    %c0_24 = arith.constant 0 : index
    %c16 = arith.constant 16 : index
    %25 = vector.load %arg11[%c0_23, %c0_24, %c16] : memref<16x16x36xbf16, #tpu.memory_space<vmem>>, vector<16x16x4xbf16>
    tpu.vector_store %arg11[%c0_23, %c0_24, %c16], %24 {strides = array<i32>} : memref<16x16x36xbf16, #tpu.memory_space<vmem>>, vector<16x16x4xbf16>,
    %26 = vector.extract_strided_slice %21 {offsets = [0, 2, 0], sizes = [16, 16, 4], strides = [1, 1, 1]} : vector<16x18x4xbf16> to vector<16x16x4xbf16>
    %c0_25 = arith.constant 0 : index
    %c0_26 = arith.constant 0 : index
    %c20 = arith.constant 20 : index
    %27 = vector.load %arg11[%c0_25, %c0_26, %c20] : memref<16x16x36xbf16, #tpu.memory_space<vmem>>, vector<16x16x4xbf16>
    tpu.vector_store %arg11[%c0_25, %c0_26, %c20], %26 {strides = array<i32>} : memref<16x16x36xbf16, #tpu.memory_space<vmem>>, vector<16x16x4xbf16>,
    %c2_i32 = arith.constant 2 : i32
    %28 = arith.addi %9, %c2_i32 : i32
    %29 = arith.index_cast %28 : i32 to index
    %c0_27 = arith.constant 0 : index
    %c0_28 = arith.constant 0 : index
    %30 = vector.load %arg10[%29, %c0_27, %c0_28] : memref<18x18x4xbf16, #tpu.memory_space<vmem>>, vector<16x18x4xbf16>
    %31 = vector.extract_strided_slice %30 {offsets = [0, 0, 0], sizes = [16, 16, 4], strides = [1, 1, 1]} : vector<16x18x4xbf16> to vector<16x16x4xbf16>
    %c0_29 = arith.constant 0 : index
    %c0_30 = arith.constant 0 : index
    %c24 = arith.constant 24 : index
    %32 = vector.load %arg11[%c0_29, %c0_30, %c24] : memref<16x16x36xbf16, #tpu.memory_space<vmem>>, vector<16x16x4xbf16>
    tpu.vector_store %arg11[%c0_29, %c0_30, %c24], %31 {strides = array<i32>} : memref<16x16x36xbf16, #tpu.memory_space<vmem>>, vector<16x16x4xbf16>,
    %33 = vector.extract_strided_slice %30 {offsets = [0, 1, 0], sizes = [16, 16, 4], strides = [1, 1, 1]} : vector<16x18x4xbf16> to vector<16x16x4xbf16>
    %c0_31 = arith.constant 0 : index
    %c0_32 = arith.constant 0 : index
    %c28 = arith.constant 28 : index
    %34 = vector.load %arg11[%c0_31, %c0_32, %c28] : memref<16x16x36xbf16, #tpu.memory_space<vmem>>, vector<16x16x4xbf16>
    tpu.vector_store %arg11[%c0_31, %c0_32, %c28], %33 {strides = array<i32>} : memref<16x16x36xbf16, #tpu.memory_space<vmem>>, vector<16x16x4xbf16>,
    %35 = vector.extract_strided_slice %30 {offsets = [0, 2, 0], sizes = [16, 16, 4], strides = [1, 1, 1]} : vector<16x18x4xbf16> to vector<16x16x4xbf16>
    %c0_33 = arith.constant 0 : index
    %c0_34 = arith.constant 0 : index
    %c32 = arith.constant 32 : index
    %36 = vector.load %arg11[%c0_33, %c0_34, %c32] : memref<16x16x36xbf16, #tpu.memory_space<vmem>>, vector<16x16x4xbf16>
    tpu.vector_store %arg11[%c0_33, %c0_34, %c32], %35 {strides = array<i32>} : memref<16x16x36xbf16, #tpu.memory_space<vmem>>, vector<16x16x4xbf16>,
    %c0_35 = arith.constant 0 : index
    %c0_36 = arith.constant 0 : index
    %c0_37 = arith.constant 0 : index
    %37 = vector.load %arg11[%c0_35, %c0_36, %c0_37] : memref<16x16x36xbf16, #tpu.memory_space<vmem>>, vector<16x16x36xbf16>
    %38 = vector.shape_cast %37 : vector<16x16x36xbf16> to vector<256x36xbf16>
    %c0_38 = arith.constant 0 : index
    %c0_39 = arith.constant 0 : index
    %39 = vector.load %arg4[%c0_38, %c0_39] : memref<36x4xbf16, #tpu.memory_space<vmem>>, vector<36x4xbf16>
    %cst = arith.constant dense<0.000000e+00> : vector<256x4xf32>
    %40 = tpu.matmul %38, %39, %cst {dimension_numbers = #tpu.dot_dimension_numbers<[1], [0], [0], [1], [0, 0, 1, 1], [], []>} : vector<256x36xbf16>, vector<36x4xbf16>, vector<256x4xf32> -> vector<256x4xf32>
    %41 = vector.broadcast %2 : vector<1x4xf32> to vector<256x4xf32>
    %42 = arith.mulf %40, %41 : vector<256x4xf32>
    %43 = vector.broadcast %3 : vector<1x4xf32> to vector<256x4xf32>
    %44 = arith.addf %42, %43 : vector<256x4xf32>
    %cst_40 = arith.constant 0.000000e+00 : f32
    %45 = vector.broadcast %cst_40 : f32 to vector<256x4xf32>
    %46 = arith.maximumf %44, %45 : vector<256x4xf32>
    %47 = arith.truncf %46 : vector<256x4xf32> to vector<256x4xbf16>
    %c0_41 = arith.constant 0 : index
    %c0_42 = arith.constant 0 : index
    %48 = vector.load %arg5[%c0_41, %c0_42] : memref<4x16xbf16, #tpu.memory_space<vmem>>, vector<4x16xbf16>
    %cst_43 = arith.constant dense<0.000000e+00> : vector<256x16xf32>
    %49 = tpu.matmul %47, %48, %cst_43 {dimension_numbers = #tpu.dot_dimension_numbers<[1], [0], [0], [1], [0, 0, 1, 1], [], []>} : vector<256x4xbf16>, vector<4x16xbf16>, vector<256x16xf32> -> vector<256x16xf32>
    %50 = vector.broadcast %4 : vector<1x16xf32> to vector<256x16xf32>
    %51 = arith.mulf %49, %50 : vector<256x16xf32>
    %52 = vector.broadcast %5 : vector<1x16xf32> to vector<256x16xf32>
    %53 = arith.addf %51, %52 : vector<256x16xf32>
    %c2_44 = arith.constant 2 : index
    %c0_45 = arith.constant 0 : index
    %54 = vector.load %arg7[%c2_44, %c0_45] : memref<4x16xf32, #tpu.memory_space<vmem>>, vector<1x16xf32>
    %c3_46 = arith.constant 3 : index
    %c0_47 = arith.constant 0 : index
    %55 = vector.load %arg7[%c3_46, %c0_47] : memref<4x16xf32, #tpu.memory_space<vmem>>, vector<1x16xf32>
    %c0_48 = arith.constant 0 : index
    %56 = arith.index_cast %9 : i32 to index
    %c0_49 = arith.constant 0 : index
    %c0_50 = arith.constant 0 : index
    %57 = vector.load %arg2[%c0_48, %56, %c0_49, %c0_50] : memref<1x16x16x8xbf16, #tpu.memory_space<vmem>>, vector<1x16x16x8xbf16>
    %58 = vector.shape_cast %57 : vector<1x16x16x8xbf16> to vector<16x16x8xbf16>
    %59 = vector.shape_cast %58 : vector<16x16x8xbf16> to vector<256x8xbf16>
    %c0_51 = arith.constant 0 : index
    %c0_52 = arith.constant 0 : index
    %60 = vector.load %arg8[%c0_51, %c0_52] : memref<8x16xbf16, #tpu.memory_space<vmem>>, vector<8x16xbf16>
    %cst_53 = arith.constant dense<0.000000e+00> : vector<256x16xf32>
    %61 = tpu.matmul %59, %60, %cst_53 {dimension_numbers = #tpu.dot_dimension_numbers<[1], [0], [0], [1], [0, 0, 1, 1], [], []>} : vector<256x8xbf16>, vector<8x16xbf16>, vector<256x16xf32> -> vector<256x16xf32>
    %62 = vector.broadcast %54 : vector<1x16xf32> to vector<256x16xf32>
    %63 = arith.mulf %61, %62 : vector<256x16xf32>
    %64 = vector.broadcast %55 : vector<1x16xf32> to vector<256x16xf32>
    %65 = arith.addf %63, %64 : vector<256x16xf32>
    %66 = arith.addf %53, %65 : vector<256x16xf32>
    %cst_54 = arith.constant 0.000000e+00 : f32
    %67 = vector.broadcast %cst_54 : f32 to vector<256x16xf32>
    %68 = arith.maximumf %66, %67 : vector<256x16xf32>
    %69 = vector.shape_cast %68 : vector<256x16xf32> to vector<1x16x16x16xf32>
    %c0_55 = arith.constant 0 : index
    %c0_56 = arith.constant 0 : index
    %c0_57 = arith.constant 0 : index
    %c0_58 = arith.constant 0 : index
    %70 = vector.load %arg9[%c0_55, %c0_56, %c0_57, %c0_58] : memref<1x16x16x16xf32, #tpu.memory_space<vmem>>, vector<1x16x16x16xf32>
    tpu.vector_store %arg9[%c0_55, %c0_56, %c0_57, %c0_58], %69 {strides = array<i32>} : memref<1x16x16x16xf32, #tpu.memory_space<vmem>>, vector<1x16x16x16xf32>,
    return
  }
  func.func @transform_0(%arg0: i32, %arg1: i32) -> (i32, i32, i32, i32) {
    %c0_i32 = arith.constant 0 : i32
    %c0_i32_0 = arith.constant 0 : i32
    %c0_i32_1 = arith.constant 0 : i32
    %c0_i32_2 = arith.constant 0 : i32
    return %arg0, %c0_i32, %c0_i32_0, %c0_i32_1 : i32, i32, i32, i32
  }
  func.func @transform_1(%arg0: i32, %arg1: i32) -> (i32, i32) {
    %c0_i32 = arith.constant 0 : i32
    %c0_i32_0 = arith.constant 0 : i32
    %c0_i32_1 = arith.constant 0 : i32
    return %c0_i32, %c0_i32_0 : i32, i32
  }
  func.func @transform_2(%arg0: i32, %arg1: i32) -> (i32, i32) {
    %c0_i32 = arith.constant 0 : i32
    %c0_i32_0 = arith.constant 0 : i32
    %c0_i32_1 = arith.constant 0 : i32
    return %c0_i32, %c0_i32_0 : i32, i32
  }
  func.func @transform_3(%arg0: i32, %arg1: i32) -> (i32, i32) {
    %c0_i32 = arith.constant 0 : i32
    %c0_i32_0 = arith.constant 0 : i32
    %c0_i32_1 = arith.constant 0 : i32
    return %c0_i32, %c0_i32_0 : i32, i32
  }
  func.func @transform_4(%arg0: i32, %arg1: i32) -> (i32, i32) {
    %c0_i32 = arith.constant 0 : i32
    %c0_i32_0 = arith.constant 0 : i32
    %c0_i32_1 = arith.constant 0 : i32
    return %c0_i32, %c0_i32_0 : i32, i32
  }
  func.func @transform_5(%arg0: i32, %arg1: i32) -> (i32, i32) {
    %c0_i32 = arith.constant 0 : i32
    %c0_i32_0 = arith.constant 0 : i32
    %c0_i32_1 = arith.constant 0 : i32
    return %c0_i32, %c0_i32_0 : i32, i32
  }
  func.func @transform_6(%arg0: i32, %arg1: i32) -> (i32, i32) {
    %c0_i32 = arith.constant 0 : i32
    %c0_i32_0 = arith.constant 0 : i32
    %c0_i32_1 = arith.constant 0 : i32
    return %c0_i32, %c0_i32_0 : i32, i32
  }
  func.func @transform_7(%arg0: i32, %arg1: i32) -> (i32, i32, i32, i32) {
    %c0_i32 = arith.constant 0 : i32
    %c0_i32_0 = arith.constant 0 : i32
    %c0_i32_1 = arith.constant 0 : i32
    return %arg0, %arg1, %c0_i32, %c0_i32_0 : i32, i32, i32, i32
  }
}

</mosaic_0001>

<bundles_post_ra>
// kernel: tpu_custom_call.1
= control target key start
LH: loop header
LB: loop body
LE: loop exit
PB: predicated region body
PF: predicated region fallthrough
CT: control target
= control target key end

     0   :  { %12 = vsyncpa [#allocation5], 0  ;;  %s8645_s0 = inlined_call_operand.vmem [shape: bf16[2,16,16,8], index: 0, kind: input, shape index: {}]   ;;  %s8646_s1 = inlined_call_operand.vmem [shape: bf16[8,4], index: 1, kind: input, shape index: {}]   ;;  %s8647_s2 = inlined_call_operand.vmem [shape: bf16[36,4], index: 2, kind: input, shape index: {}]   ;;  %s8648_s3 = inlined_call_operand.vmem [shape: bf16[4,16], index: 3, kind: input, shape index: {}]   ;;  %s8649_s4 = inlined_call_operand.vmem [shape: f32[4,4], index: 4, kind: input, shape index: {}]   ;;  %s8650_s5 = inlined_call_operand.vmem [shape: f32[4,16], index: 5, kind: input, shape index: {}]   ;;  %s8651_s6 = inlined_call_operand.vmem [shape: bf16[8,16], index: 6, kind: input, shape index: {}]   ;;  %s8652_s7 = inlined_call_operand.hbm [shape: f32[2,16,16,16], index: 7, kind: output, shape index: {}]  }
   0x1   :  { %14 = vsyncpa [#allocation5 + $0x1], 0  ;;  %s5858_s24 = smov 0   ;;  %s5860_s25 = smov 0  }
   0x2   :  { %s5862_s26 = smov 0   ;;  %s5864_s27 = smov 0  }
   0x3   :  { %s5866_s28 = smov 0   ;;  %s5868_s29 = smov 0  }
   0x4 LB: > { %s5167_s30 = sadd.s32 4294967295, %s5806_s29   ;;  %s5168_s8 = sadd.s32 4294967294, %s5806_s29   ;;  %s5806_s29 = sphi %s5868_s29, %s20_s29   ;;  %s5802_s28 = sphi %s5866_s28, %s8707_s28   ;;  %s5798_s27 = sphi %s5864_s27, %s8706_s27   ;;  %s5794_s26 = sphi %s5862_s26, %s8705_s26   ;;  %s5790_s25 = sphi %s5860_s25, %s8704_s25   ;;  %s5786_s24 = sphi %s5858_s24, %s8703_s24  }
   0x5   : > { %s32_s9 = sadd.s32 1, %s5802_s28  ;;  %s193_s10 = sadd.s32 1, %s5794_s26 }
   0x6   : > { %p34_p0 = scmp.ge.s32.totalorder %s32_s9, 2  ;;  %p203_p1 = scmp.ne.s32.totalorder %s5794_s26, %s5790_s25 }
   0x7   : > { %p204_p2 = scmp.eq.s32.totalorder %s5167_s30, 1  ;;  %p209_p3 = scmp.ne.s32.totalorder %s5790_s25, %s5786_s24 }
   0x8   : > { %s8709_s9 = smov (%p34_p0, %s32_s9), 0  ;;  %p210_p5 = scmp.eq.s32.totalorder %s5168_s8, 1 }
   0x9   : > { %p5898_p4 = por %p204_p2, %p203_p1  ;;  %s188_s12 = ssub.s32 %s5802_s28, %s8709_s9 }
   0xa   : > { %p5171_p6 = scmp.ge.s32.totalorder %s5806_s29, 1  ;;  %p191_p7 = scmp.eq.s32.totalorder %s188_s12, 0 }
   0xb   : > { %p5905_p8 = por %p210_p5, %p209_p3  ;;  %p254_p9 = scmp.lt.s32.totalorder %s5806_s29, 3 }
   0xc   : > { %s5911_s14 = scalar_select %p191_p7, %s5794_s26, %s193_s10  }
   0xd   : > { %p255_p10 = pnand %p5171_p6, %p254_p9 }
   0xe   : > { %p286_p11 = scmp.lt.s32.totalorder (!%p255_p10), %s5798_s27, 1  ;;  %s5809_s22 = smov (!%p255_p10), 8  }
   0xf   : > { %258 = sbr.rel (%p255_p10) target bundleno = 1268 (0x4f4), region = 48  ;;  %s5810_s23 = smov (!%p255_p10), 4  }
  0x10   : > { %s5811_s15 = smov (!%p255_p10), 12   ;;  %s5812_s16 = smov (!%p255_p10), 16  }
  0x11   : > { %s5815_s19 = smov (!%p255_p10), 28   ;;  %s5816_s20 = smov (!%p255_p10), 32  }
  0x12   : > { %s8657_s30 = sand.u32 (!%p255_p10), 1, %s5790_s25  }
  0x13   : > { %s5172_s8 = sshll.u32 (!%p255_p10), %s8657_s30, 8 }
  0x14   : > { %v391_v0 = vld [vmem:[%s8646_s1] sm:$0xf]  ;;  %vm8653_vm0 = vcmask 1043456   ;;  %s287_s17 = scalar_select %p286_p11, %s5798_s27, 1  ;;  %vm8654_vm1 = vcmask 64512   ;;  %vm8656_vm2 = vcmask 27648  }
  0x15   : > { %v523_v1 = vsel %vm8653_vm0, %v391_v0, 0  ;;  %vm306_vm3 = vcmask 24576   ;;  %v5808_v4 = vmov 0   ;;  %vm1834_vm4 = vcmask 1042432   ;;  %v6087_v35 = vld [vmem:[%s8649_s4] ss:$0 sm:$0xff] }
  0x16   : > { %532 = vmatpush.bf16.msra.mxu0 %v523_v1  ;;  %s5588_s18 = sshll.u32 %s287_s17, 7  ;;  %305 = vst.msk [vmem:[#allocation2 + $0x4] sm:$0xf] %vm8656_vm2, %v5808_v4  ;;  %vm1835_vm5 = vcmask 1046532   ;;  %vm1270_vm7 = vsmask.f32 3328 }
  0x17   : > { %s5922_s21 = scalar_lea.vmem %s8645_s0, %s5588_s18  ;;  %307 = vst.msk [vmem:[#allocation2 + $0x8] sm:$0x1] %vm306_vm3, %v5808_v4  ;;  %vm5951_vm6 = vmor %vm1834_vm4, %vm1835_vm5  ;;  %vm1271_vm8 = vsmask.f32 7440  ;;  %v6092_v36 = vld [vmem:[%s8649_s4 + $0x1] ss:$0 sm:$0xff] }
  0x18   : > { %v5589_v2 = vld [vmem:[%s5922_s21] sm:$0xff]  ;;  %v5590_v3 = vld [vmem:[%s5922_s21 + $0x8] sm:$0xff]  ;;  %304 = vst.msk [vmem:[#allocation2] sm:$0xf] %vm8656_vm2, %v5808_v4  ;;  %v5591_v11 = vld [vmem:[%s5922_s21 + $0x10] sm:$0xff]  ;;  %s5813_s17 = smov 20  }
  0x19   : > { %5239 = vmatmul.msk.bf16.vlgmr.msra.gmra.mxu0 %vm8654_vm1, %v5589_v2  ;;  %308 = vst.msk [vmem:[#allocation2 + $0xc] sm:$0xf] %vm8656_vm2, %v5808_v4  ;;  %v5592_v19 = vld [vmem:[%s5922_s21 + $0x18] sm:$0xff]  ;;  %vm6009_vm9 = vmor %vm1270_vm7, %vm1271_vm8  ;;  %v5593_v32 = vld [vmem:[%s5922_s21 + $0x20] sm:$0xff]  ;;  %vm1069_vm10 = vsmask.f32 7938 }
  0x1a   : > { %309 = vst.msk [vmem:[#allocation2 + $0x10] sm:$0xf] %vm8656_vm2, %v5808_v4  ;;  %vm6099_vm11 = vmand %vm8656_vm2, %vm1069_vm10  ;;  %vm744_vm12 = vsmask.f32 256  ;;  %vm745_vm13 = vsmask.f32 4368 }
  0x1b   : > { %310 = vst.msk [vmem:[#allocation2 + $0x14] sm:$0x1] %vm306_vm3, %v5808_v4  ;;  %vm6106_vm14 = vmor %vm744_vm12, %vm745_vm13  ;;  %s5814_s18 = smov 24   ;;  %vm8655_vm4 = vcmask 93248   ;;  %vm2258_vm5 = vcmask 126048   ;;  %vm2771_vm7 = vcmask 158848  }
  0x1c   : > { %311 = vst.msk [vmem:[#allocation2 + $0x18] sm:$0xf] %vm8656_vm2, %v5808_v4  ;;  %vm6112_vm15 = vmand %vm306_vm3, %vm744_vm12  ;;  %vm3028_vm8 = vcmask 191648   ;;  %vm3241_vm10 = vcmask 224448   ;;  %vm3754_vm12 = vcmask 257248   ;;  %vm4011_vm13 = vcmask 290048  }
  0x1d   : > { %v5942_v5 = vld [vmem:[#allocation2 + $0x4] sm:$0xf]  ;;  %312 = vst.msk [vmem:[#allocation2 + $0x1c] sm:$0xf] %vm8656_vm2, %v5808_v4  ;;  %vm4225_vm0 = vcmask 1041408  }
  0x1e   : > { %v5946_v6 = vld [vmem:[#allocation2 + $0x8] sm:$0x1]  ;;  %v1839_v7 = vrot.slane %v5942_v5, 5  ;;  %313 = vst.msk [vmem:[#allocation2 + $0x20] sm:$0x1] %vm306_vm3, %v5808_v4  ;;  %v1283_v16 = vshll.u32 %v5942_v5, 16 }
  0x1f   : > { %v1842_v9 = vrot.slane %v5946_v6, 5  ;;  %314 = vst.msk [vmem:[#allocation2 + $0x24] sm:$0xf] %vm8656_vm2, %v5808_v4  ;;  %v5991_v13 = vld [vmem:[#allocation2] sm:$0xf]  ;;  %v1287_v25 = vshrl.u32 %v5942_v5, 16 }
  0x20   : > { %v1841_v10 = vrot.slane %v1839_v7, 4  ;;  %315 = vst.msk [vmem:[#allocation2 + $0x28] sm:$0xf] %vm8656_vm2, %v5808_v4  ;;  %v1274_v14 = vshrl.u32 %v5991_v13, 16  ;;  %v1277_v15 = vshll.u32 %v5991_v13, 16  ;;  %v1285_v21 = vrot.slane %v1283_v16, 5 }
  0x21   : > { %316 = vst.msk [vmem:[#allocation2 + $0x2c] sm:$0x1] %vm306_vm3, %v5808_v4  ;;  %v1289_v26 = vrot.slane %v1287_v25, 4  ;;  %v1293_v28 = vshll.u32 %v5946_v6, 16  ;;  %v5255_v33 = vrot.slane %v5991_v13, 9 }
  0x22   : > { %v1843_v12 = vsel %vm5951_vm6, %v1841_v10, %v1842_v9  ;;  %317 = vst.msk [vmem:[#allocation2 + $0x30] sm:$0xf] %vm8656_vm2, %v5808_v4  ;;  %v1276_v17 = vrot.slane %v1274_v14, 4  ;;  %v1279_v18 = vrot.slane %v1277_v15, 5  ;;  %v1071_v49 = vld [vmem:[#allocation2 + $0xc] sm:$0xf] }
  0x23   : > { %1951 = vrot.lane.b32.xlu0 %v1843_v12, %s5809_s22  ;;  %318 = vst.msk [vmem:[#allocation2 + $0x34] sm:$0xf] %vm8656_vm2, %v5808_v4  ;;  %v1290_v27 = vor.u32 %v1289_v26, %v1285_v21  ;;  %v1295_v30 = vrot.slane %v1293_v28, 5  ;;  %v1840_v34 = vsel %vm5951_vm6, %v5255_v33, %v1839_v7  ;;  %v1077_v62 = vld [vmem:[#allocation2 + $0x14] sm:$0x1] }
  0x24   : > { %319 = vst.msk [vmem:[#allocation2 + $0x38] sm:$0x1] %vm306_vm3, %v5808_v4  ;;  %v1280_v20 = vor.u32 %v1279_v18, %v1276_v17  ;;  %1949 = vrot.lane.b32.xlu2 %v1840_v34, %s5809_s22 }
  0x25   : > { %320 = vst.msk [vmem:[#allocation2 + $0x3c] sm:$0xf] %vm8656_vm2, %v5808_v4  ;;  %v1291_v29 = vrot.slane %v1290_v27, 4 }
  0x26   : > { %321 = vst.msk [vmem:[#allocation2 + $0x40] sm:$0xf] %vm8656_vm2, %v5808_v4  ;;  %v1281_v23 = vrot.slane %v1280_v20, 4  ;;  %v1080_v20 = vld [vmem:[#allocation2 + $0x18] sm:$0xf] }
  0x27   : > { %322 = vst.msk [vmem:[#allocation2 + $0x44] sm:$0x1] %vm306_vm3, %v5808_v4  ;;  %v1296_v31 = vsel %vm6009_vm9, %v1291_v29, %v1295_v30 }
  0x28   : > { %323 = vst.msk [vmem:[#allocation2 + $0x48] sm:$0xf] %vm8656_vm2, %v5808_v4  ;;  %v1286_v24 = vsel %vm6009_vm9, %v1281_v23, %v1285_v21 }
  0x29   : > { %5240 = vmatmul.msk.bf16.gmra.mxu0 %vm8654_vm1, %v5590_v3  ;;  %324 = vst.msk [vmem:[#allocation2 + $0x4c] sm:$0xf] %vm8656_vm2, %v5808_v4  ;;  %v5594_v3 = vld [vmem:[%s5922_s21 + $0x28] sm:$0xff] }
  0x2a   : > { %325 = vst.msk [vmem:[#allocation2 + $0x50] sm:$0x1] %vm306_vm3, %v5808_v4 }
  0x2b   : > { %326 = vst.msk [vmem:[#allocation2 + $0x54] sm:$0xf] %vm8656_vm2, %v5808_v4  ;;  %1657 = vrot.lane.b32.xlu0 %v1286_v24, %s5810_s23 }
  0x2c   : > { %327 = vst.msk [vmem:[#allocation2 + $0x58] sm:$0xf] %vm8656_vm2, %v5808_v4 }
  0x2d   : > { %328 = vst.msk [vmem:[#allocation2 + $0x5c] sm:$0x1] %vm306_vm3, %v5808_v4 }
  0x2e   : > { %329 = vst.msk [vmem:[#allocation2 + $0x60] sm:$0xf] %vm8656_vm2, %v5808_v4 }
  0x2f   : > { %330 = vst.msk [vmem:[#allocation2 + $0x64] sm:$0xf] %vm8656_vm2, %v5808_v4 }
  0x30   : > { %331 = vst.msk [vmem:[#allocation2 + $0x68] sm:$0x1] %vm306_vm3, %v5808_v4 }
  0x31   : > { %332 = vst.msk [vmem:[#allocation2 + $0x6c] sm:$0xf] %vm8656_vm2, %v5808_v4 }
  0x32   : > { %333 = vst.msk [vmem:[#allocation2 + $0x70] sm:$0xf] %vm8656_vm2, %v5808_v4 }
  0x33   : > { %334 = vst.msk [vmem:[#allocation2 + $0x74] sm:$0x1] %vm306_vm3, %v5808_v4  ;;  %1659 = vrot.lane.b32.xlu0 %v1296_v31, %s5810_s23 }
  0x34   : > { %335 = vst.msk [vmem:[#allocation2 + $0x78] sm:$0xf] %vm8656_vm2, %v5808_v4 }
  0x35   : > { %336 = vst.msk [vmem:[#allocation2 + $0x7c] sm:$0xf] %vm8656_vm2, %v5808_v4 }
  0x36   : > { %337 = vst.msk [vmem:[#allocation2 + $0x80] sm:$0x1] %vm306_vm3, %v5808_v4 }
  0x37   : > { %338 = vst.msk [vmem:[#allocation2 + $0x84] sm:$0xf] %vm8656_vm2, %v5808_v4 }
  0x38   : > { %339 = vst.msk [vmem:[#allocation2 + $0x88] sm:$0xf] %vm8656_vm2, %v5808_v4 }
  0x39   : > { %5241 = vmatmul.msk.bf16.gmra.mxu0 %vm8654_vm1, %v5591_v11  ;;  %340 = vst.msk [vmem:[#allocation2 + $0x8c] sm:$0x1] %vm306_vm3, %v5808_v4 }
  0x3a   : > { %341 = vst.msk [vmem:[#allocation2 + $0x90] sm:$0xf] %vm8656_vm2, %v5808_v4 }
  0x3b   : > { %342 = vst.msk [vmem:[#allocation2 + $0x94] sm:$0xf] %vm8656_vm2, %v5808_v4 }
  0x3c   : > { %343 = vst.msk [vmem:[#allocation2 + $0x98] sm:$0x1] %vm306_vm3, %v5808_v4 }
  0x3d   : > { %344 = vst.msk [vmem:[#allocation2 + $0x9c] sm:$0xf] %vm8656_vm2, %v5808_v4 }
  0x3e   : > { %345 = vst.msk [vmem:[#allocation2 + $0xa0] sm:$0xf] %vm8656_vm2, %v5808_v4 }
  0x3f   : > { %346 = vst.msk [vmem:[#allocation2 + $0xa4] sm:$0x1] %vm306_vm3, %v5808_v4 }
  0x40   : > { %347 = vst.msk [vmem:[#allocation2 + $0xa8] sm:$0xf] %vm8656_vm2, %v5808_v4 }
  0x41   : > { %348 = vst.msk [vmem:[#allocation2 + $0xac] sm:$0xf] %vm8656_vm2, %v5808_v4 }
  0x42   : > { %349 = vst.msk [vmem:[#allocation2 + $0xb0] sm:$0x1] %vm306_vm3, %v5808_v4 }
  0x43   : > { %350 = vst.msk [vmem:[#allocation2 + $0xb4] sm:$0xf] %vm8656_vm2, %v5808_v4 }
  0x44   : > { %351 = vst.msk [vmem:[#allocation2 + $0xb8] sm:$0xf] %vm8656_vm2, %v5808_v4 }
  0x45   : > { %352 = vst.msk [vmem:[#allocation2 + $0xbc] sm:$0x1] %vm306_vm3, %v5808_v4 }
  0x46   : > { %353 = vst.msk [vmem:[#allocation2 + $0xc0] sm:$0xf] %vm8656_vm2, %v5808_v4 }
  0x47   : > { %354 = vst.msk [vmem:[#allocation2 + $0xc4] sm:$0xf] %vm8656_vm2, %v5808_v4 }
  0x48   : > { %355 = vst.msk [vmem:[#allocation2 + $0xc8] sm:$0x1] %vm306_vm3, %v5808_v4 }
  0x49   : > { %5242 = vmatmul.msk.bf16.gmra.mxu0 %vm8654_vm1, %v5592_v19  ;;  %356 = vst.msk [vmem:[#allocation2 + $0xcc] sm:$0xf] %vm8656_vm2, %v5808_v4 }
  0x4a   : > { %357 = vst.msk [vmem:[#allocation2 + $0xd0] sm:$0xf] %vm8656_vm2, %v5808_v4 }
  0x4b   : > { %358 = vst.msk [vmem:[#allocation2 + $0xd4] sm:$0x1] %vm306_vm3, %v5808_v4  ;;  %vm1753_vm3 = vcmask 60448  }
  0x4c   : > { %1239 = vst.msk [vmem:[#allocation3 + $0x4] sm:$0xf] %vm8656_vm2, %v5942_v5 }
  0x4d   : > { %1238 = vst.msk [vmem:[#allocation3] sm:$0xf] %vm8656_vm2, %v5991_v13 }
  0x59   : > { %5243 = vmatmul.msk.bf16.gmra.mxu0 %vm8654_vm1, %v5593_v32 }
  0x69   : > { %5244 = vmatmul.msk.bf16.gmra.mxu0 %vm8654_vm1, %v5594_v3 }
  0x96   : > { %v534_v37 = vpop.f32.mrf.mxu0 }
  0x97   : > { %v615_v38 = vmul.f32 %v6087_v35, %v534_v37 }
  0x99   : > { %v648_v39 = vadd.f32 %v6092_v36, %v615_v38 }
  0x9b   : > { %v680_v40 = vmax.f32 %v648_v39, 0.0 }
  0x9d   : > { %v712_v41 = vpack.c.bf16 %v680_v40, %v680_v40 }
  0x9e   : > { %v536_v42 = vpop.f32.mrf.mxu0 }
  0x9f   : > { %v748_v43 = vshrl.u32 %v712_v41, 16  ;;  %v616_v44 = vmul.f32 %v6087_v35, %v536_v42  ;;  %v751_v46 = vshll.u32 %v712_v41, 16 }
  0xa1   : > { %v750_v45 = vrot.slane %v748_v43, 7  ;;  %v649_v47 = vadd.f32 %v6092_v36, %v616_v44 }
  0xa3   : > { %v753_v50 = vor.u32 %v751_v46, %v750_v45  ;;  %v681_v51 = vmax.f32 %v649_v47, 0.0  ;;  %v754_v63 = vrot.slane %v750_v45, 4 }
  0xa5   : > { %v1072_v52 = vsel %vm6099_vm11, %v753_v50, %v1071_v49  ;;  %v713_v53 = vpack.c.bf16 %v681_v51, %v681_v51  ;;  %v1084_v49 = vld [vmem:[#allocation2 + $0x20] sm:$0x1] }
  0xa6   : > { %1073 = vst [vmem:[#allocation2 + $0xc] sm:$0xf] %v1072_v52  ;;  %v539_v54 = vpop.f32.mrf.mxu0 }
  0xa7   : > { %v756_v55 = vshrl.u32 %v713_v53, 16  ;;  %v617_v56 = vmul.f32 %v6087_v35, %v539_v54  ;;  %v759_v59 = vshll.u32 %v713_v53, 16 }
  0xa9   : > { %v758_v58 = vrot.slane %v756_v55, 7  ;;  %v650_v60 = vadd.f32 %v6092_v36, %v617_v56 }
  0xab   : > { %v761_v0 = vor.u32 %v759_v59, %v758_v58  ;;  %v763_v1 = vrot.slane %v758_v58, 4  ;;  %v682_v2 = vmax.f32 %v650_v60, 0.0 }
  0xad   : > { %v762_v4 = vsel %vm6106_vm14, %v754_v63, %v761_v0  ;;  %v1078_v5 = vsel %vm6112_vm15, %v763_v1, %v1077_v62  ;;  %v714_v6 = vpack.c.bf16 %v682_v2, %v682_v2  ;;  %v6121_v7 = vld [vmem:[#allocation2 + $0xc] sm:$0xf] }
  0xae   : > { %v1192_v9 = vld [vmem:[#allocation2 + $0xc] sm:$0xf]  ;;  %1074 = vst.msk [vmem:[#allocation2 + $0x10] sm:$0xf] %vm8656_vm2, %v762_v4  ;;  %2162 = vrot.lane.b32.xlu1 %v6121_v7, %s5811_s15  ;;  %v2292_v10 = vshrl.u32 %v6121_v7, 16  ;;  %v2295_v11 = vshll.u32 %v6121_v7, 16  ;;  %v541_v12 = vpop.f32.mrf.mxu0 }
  0xaf   : > { %1079 = vst [vmem:[#allocation2 + $0x14] sm:$0x1] %v1078_v5  ;;  %v765_v13 = vshrl.u32 %v714_v6, 16  ;;  %v768_v14 = vshll.u32 %v714_v6, 16  ;;  %v618_v15 = vmul.f32 %v6087_v35, %v541_v12  ;;  %v1298_v21 = vshrl.u32 %v1192_v9, 16 }
  0xb0   : > { %v2294_v16 = vrot.slane %v2292_v10, 4  ;;  %v2297_v17 = vrot.slane %v2295_v11, 5  ;;  %1240 = vst.msk [vmem:[#allocation3 + $0x8] sm:$0xf] %vm8656_vm2, %v1192_v9  ;;  %v1301_v23 = vshll.u32 %v1192_v9, 16  ;;  %v5256_v31 = vrot.slane %v1192_v9, 9 }
  0xb1   : > { %v767_v18 = vrot.slane %v765_v13, 7  ;;  %v651_v19 = vadd.f32 %v6092_v36, %v618_v15  ;;  %v1300_v34 = vrot.slane %v1298_v21, 4  ;;  %v5319_v55 = vrot.slane %v6121_v7, 9 }
  0xb2   : > { %v2298_v26 = vor.u32 %v2297_v17, %v2294_v16  ;;  %v1303_v37 = vrot.slane %v1301_v23, 5 }
  0xb3   : > { %v770_v24 = vor.u32 %v768_v14, %v767_v18  ;;  %v683_v25 = vmax.f32 %v651_v19, 0.0  ;;  %v771_v45 = vrot.slane %v767_v18, 4 }
  0xb4   : > { %v2299_v42 = vrot.slane %v2298_v26, 4  ;;  %v1304_v51 = vor.u32 %v1303_v37, %v1300_v34 }
  0xb5   : > { %v1081_v27 = vsel %vm6099_vm11, %v770_v24, %v1080_v20  ;;  %v715_v28 = vpack.c.bf16 %v683_v25, %v683_v25  ;;  %v6134_v29 = vld [vmem:[#allocation2 + $0x10] sm:$0xf]  ;;  %v1087_v24 = vld [vmem:[#allocation2 + $0x24] sm:$0xf] }
  0xb6   : > { %v6136_v30 = vld [vmem:[#allocation2 + $0x10] sm:$0xf]  ;;  %1082 = vst [vmem:[#allocation2 + $0x18] sm:$0xf] %v1081_v27  ;;  %2164 = vrot.lane.b32.xlu2 %v6134_v29, %s5811_s15  ;;  %v2301_v33 = vshll.u32 %v6134_v29, 16  ;;  %v544_v38 = vpop.f32.mrf.mxu0  ;;  %v2822_v47 = vrot.slane %v6134_v29, 5 }
  0xb7   : > { %v1846_v32 = vrot.slane %v6136_v30, 5  ;;  %v773_v39 = vshrl.u32 %v715_v28, 16  ;;  %v776_v40 = vshll.u32 %v715_v28, 16  ;;  %1241 = vst.msk [vmem:[#allocation3 + $0xc] sm:$0xf] %vm8656_vm2, %v6136_v30  ;;  %v1307_v44 = vshll.u32 %v6136_v30, 16 }
  0xb8   : > { %v6146_v43 = vrot.slane %v2301_v33, 5  ;;  %v619_v52 = vmul.f32 %v6087_v35, %v544_v38  ;;  %v6157_v56 = vld [vmem:[#allocation2 + $0x14] sm:$0x1]  ;;  %v2823_v63 = vsel %vm5951_vm6, %v5319_v55, %v2822_v47  ;;  %v2824_v0 = vrot.slane %v2822_v47, 4 }
  0xb9   : > { %v1847_v41 = vsel %vm5951_vm6, %v5256_v31, %v1846_v32  ;;  %v775_v46 = vrot.slane %v773_v39, 7  ;;  %v6159_v58 = vrot.slane %v1307_v44, 5  ;;  %v1305_v1 = vrot.slane %v1304_v51, 4  ;;  %v6179_v10 = vld [vmem:[#allocation2 + $0x14] sm:$0x1] }
  0xba   : > { %1953 = vrot.lane.b32.xlu1 %v1847_v41, %s5809_s22  ;;  %v2304_v50 = vsel %vm6009_vm9, %v2299_v42, %v6146_v43  ;;  %v652_v59 = vadd.f32 %v6092_v36, %v619_v52  ;;  %v2825_v2 = vrot.slane %v6157_v56, 5  ;;  %v1848_v13 = vrot.slane %v1846_v32, 4 }
  0xbb   : > { %v778_v53 = vor.u32 %v776_v40, %v775_v46  ;;  %v780_v54 = vrot.slane %v775_v46, 4  ;;  %2675 = vrot.lane.b32.xlu0 %v2304_v50, %s5812_s16  ;;  %v1310_v9 = vsel %vm6009_vm9, %v1305_v1, %v6159_v58  ;;  %v1849_v19 = vrot.slane %v6179_v10, 5 }
  0xbc   : > { %v684_v3 = vmax.f32 %v652_v59, 0.0  ;;  %v2826_v12 = vsel %vm5951_vm6, %v2824_v0, %v2825_v2  ;;  %v1311_v40 = vshrl.u32 %v6136_v30, 16  ;;  %v1317_v1 = vshll.u32 %v6179_v10, 16 }
  0xbd   : > { %v779_v60 = vsel %vm6106_vm14, %v771_v45, %v778_v53  ;;  %v1085_v62 = vsel %vm6112_vm15, %v780_v54, %v1084_v49  ;;  %v6171_v5 = vld [vmem:[#allocation2 + $0x18] sm:$0xf]  ;;  %v1850_v23 = vsel %vm5951_vm6, %v1848_v13, %v1849_v19  ;;  %v1091_v45 = vld [vmem:[#allocation2 + $0x2c] sm:$0x1] }
  0xbe   : > { %1083 = vst.msk [vmem:[#allocation2 + $0x1c] sm:$0xf] %vm8656_vm2, %v779_v60  ;;  %2932 = vrot.lane.b32.xlu2 %v2823_v63, %s5813_s17  ;;  %v546_v4 = vpop.f32.mrf.mxu0  ;;  %v6173_v6 = vld [vmem:[#allocation2 + $0x18] sm:$0xf]  ;;  %v716_v11 = vpack.c.bf16 %v684_v3, %v684_v3  ;;  %v3275_v15 = vshrl.u32 %v6171_v5, 16  ;;  %v3278_v16 = vshll.u32 %v6171_v5, 16 }
  0xbf   : > { %1086 = vst [vmem:[#allocation2 + $0x20] sm:$0x1] %v1085_v62  ;;  %v620_v7 = vmul.f32 %v6087_v35, %v546_v4  ;;  %v5257_v26 = vrot.slane %v6173_v6, 9  ;;  %v1313_v51 = vrot.slane %v1311_v40, 4  ;;  %v6213_v52 = vld [vmem:[#allocation2 + $0x18] sm:$0xf] }
  0xc0   : > { %1242 = vst.msk [vmem:[#allocation3 + $0x10] sm:$0xf] %vm8656_vm2, %v6173_v6  ;;  %v782_v17 = vshrl.u32 %v716_v11, 16  ;;  %v785_v18 = vshll.u32 %v716_v11, 16  ;;  %v3277_v28 = vrot.slane %v3275_v15, 4  ;;  %v3280_v31 = vrot.slane %v3278_v16, 5 }
  0xc1   : > { %v653_v14 = vadd.f32 %v6092_v36, %v620_v7  ;;  %v5595_v62 = vld [vmem:[%s5922_s21 + $0x30] sm:$0xff]  ;;  %v2305_v63 = vshrl.u32 %v6134_v29, 16  ;;  %v1314_v0 = vor.u32 %v1313_v51, %v6159_v58  ;;  %v2316_v3 = vshrl.u32 %v6213_v52, 16 }
  0xc2   : > { %1661 = vrot.lane.b32.xlu1 %v1310_v9, %s5810_s23  ;;  %v784_v21 = vrot.slane %v782_v17, 7  ;;  %v3281_v46 = vor.u32 %v3280_v31, %v3277_v28  ;;  %5245 = vmatmul.msk.bf16.gmra.mxu0 %vm8654_vm1, %v5595_v62  ;;  %v2319_v4 = vshll.u32 %v6213_v52, 16  ;;  %v5383_v31 = vrot.slane %v6171_v5, 9 }
  0xc3   : > { %2934 = vrot.lane.b32.xlu0 %v2826_v12, %s5813_s17  ;;  %v685_v20 = vmax.f32 %v653_v14, 0.0  ;;  %v2307_v12 = vrot.slane %v2305_v63, 4  ;;  %v1315_v13 = vrot.slane %v1314_v0, 4  ;;  %v1319_v14 = vrot.slane %v1317_v1, 5 }
  0xc4   : > { %v787_v32 = vor.u32 %v785_v18, %v784_v21  ;;  %v788_v41 = vrot.slane %v784_v21, 4  ;;  %v3282_v55 = vrot.slane %v3281_v46, 4  ;;  %v2318_v16 = vrot.slane %v2316_v3, 4  ;;  %v6267_v46 = vpop.permute.xlu0 %1951 }
  0xc5   : > { %v6193_v25 = vld [vmem:[#allocation2 + $0x1c] sm:$0xf]  ;;  %v717_v27 = vpack.c.bf16 %v685_v20, %v685_v20  ;;  %v2321_v17 = vrot.slane %v2319_v4, 5  ;;  %v1320_v28 = vsel %vm6009_vm9, %v1315_v13, %v1319_v14  ;;  %v5320_v0 = vrot.slane %v6213_v52, 9 }
  0xc6   : > { %1955 = vrot.lane.b32.xlu2 %v1850_v23, %s5809_s22  ;;  %v1853_v33 = vrot.slane %v6193_v25, 5  ;;  %1243 = vst.msk [vmem:[#allocation3 + $0x14] sm:$0xf] %vm8656_vm2, %v6193_v25  ;;  %v6200_v34 = vld [vmem:[#allocation2 + $0x1c] sm:$0xf]  ;;  %v1088_v39 = vsel %vm6099_vm11, %v787_v32, %v1087_v24  ;;  %v549_v50 = vpop.f32.mrf.mxu0  ;;  %v2308_v32 = vor.u32 %v2307_v12, %v6146_v43 }
  0xc7   : > { %v790_v37 = vshrl.u32 %v717_v27, 16  ;;  %v793_v38 = vshll.u32 %v717_v27, 16  ;;  %1089 = vst [vmem:[#allocation2 + $0x24] sm:$0xf] %v1088_v39  ;;  %v3284_v47 = vshll.u32 %v6200_v34, 16  ;;  %v621_v60 = vmul.f32 %v6087_v35, %v549_v50 }
  0xc8   : > { %v1854_v44 = vsel %vm5951_vm6, %v5257_v26, %v1853_v33  ;;  %v3805_v9 = vrot.slane %v6200_v34, 5  ;;  %v6244_v10 = vld [vmem:[#allocation2 + $0x20] sm:$0x1]  ;;  %v6246_v18 = vld [vmem:[#allocation2 + $0x1c] sm:$0xf] }
  0xc9   : > { %v792_v42 = vrot.slane %v790_v37, 7  ;;  %v6222_v59 = vrot.slane %v3284_v47, 5  ;;  %v654_v2 = vadd.f32 %v6092_v36, %v621_v60  ;;  %v3808_v23 = vrot.slane %v6244_v10, 5  ;;  %v1094_v39 = vld [vmem:[#allocation2 + $0x30] sm:$0xf] }
  0xca   : > { %3145 = vrot.lane.b32.xlu1 %v6171_v5, %s5814_s18  ;;  %v3807_v21 = vrot.slane %v3805_v9, 4  ;;  %v3806_v43 = vsel %vm5951_vm6, %v5383_v31, %v3805_v9  ;;  %v2309_v47 = vrot.slane %v2308_v32, 4  ;;  %v2829_v1 = vrot.slane %v6246_v18, 5 }
  0xcb   : > { %1957 = vrot.lane.b32.xlu0 %v1854_v44, %s5809_s22  ;;  %v795_v30 = vor.u32 %v793_v38, %v792_v42  ;;  %v797_v49 = vrot.slane %v792_v42, 4  ;;  %v3287_v29 = vsel %vm6009_vm9, %v3282_v55, %v6222_v59  ;;  %v686_v58 = vmax.f32 %v654_v2, 0.0  ;;  %v1098_v2 = vld [vmem:[#allocation2 + $0x38] sm:$0x1] }
  0xcc   : > { %v2311_v38 = vshll.u32 %v6157_v56, 16  ;;  %v2322_v42 = vor.u32 %v2321_v17, %v2318_v16  ;;  %v2325_v44 = vshll.u32 %v6246_v18, 16  ;;  %v1855_v16 = vrot.slane %v1853_v33, 4 }
  0xcd   : > { %v796_v53 = vsel %vm6106_vm14, %v788_v41, %v795_v30  ;;  %v1092_v54 = vsel %vm6112_vm15, %v797_v49, %v1091_v45  ;;  %v718_v15 = vpack.c.bf16 %v686_v58, %v686_v58  ;;  %v3809_v41 = vsel %vm5951_vm6, %v3807_v21, %v3808_v23 }
  0xce   : > { %3147 = vrot.lane.b32.xlu2 %v6200_v34, %s5814_s18  ;;  %1090 = vst.msk [vmem:[#allocation2 + $0x28] sm:$0xf] %vm8656_vm2, %v796_v53  ;;  %v6235_v7 = vld [vmem:[#allocation2 + $0x24] sm:$0xf]  ;;  %v551_v11 = vpop.f32.mrf.mxu0  ;;  %v1322_v30 = vshrl.u32 %v6173_v6, 16  ;;  %v1325_v49 = vshll.u32 %v6173_v6, 16 }
  0xcf   : > { %1093 = vst [vmem:[#allocation2 + $0x2c] sm:$0x1] %v1092_v54  ;;  %v622_v20 = vmul.f32 %v6087_v35, %v551_v11  ;;  %v799_v24 = vshrl.u32 %v718_v15, 16  ;;  %v802_v26 = vshll.u32 %v718_v15, 16  ;;  %v2313_v53 = vrot.slane %v2311_v38, 5 }
  0xd0   : > { %1244 = vst.msk [vmem:[#allocation3 + $0x18] sm:$0xf] %vm8656_vm2, %v6235_v7  ;;  %v2323_v54 = vrot.slane %v2322_v42, 4  ;;  %v6276_v55 = vrot.slane %v2325_v44, 5  ;;  %v1197_v6 = vld [vmem:[#allocation2 + $0x20] sm:$0x1]  ;;  %v2830_v15 = vsel %vm5951_vm6, %v5320_v0, %v2829_v1 }
  0xd1   : > { %v655_v27 = vadd.f32 %v6092_v36, %v622_v20  ;;  %v801_v37 = vrot.slane %v799_v24, 7  ;;  %v2314_v63 = vsel %vm6009_vm9, %v2309_v47, %v2313_v53  ;;  %v1324_v3 = vrot.slane %v1322_v30, 4  ;;  %v1658_v20 = vpop.permute.xlu0 %1657  ;;  %v6318_v47 = vld [vmem:[#allocation2 + $0x24] sm:$0xf] }
  0xd2   : > { %2166 = vrot.lane.b32.xlu1 %v6213_v52, %s5811_s15  ;;  %v1327_v4 = vrot.slane %v1325_v49, 5  ;;  %v2328_v58 = vsel %vm6009_vm9, %v2323_v54, %v6276_v55  ;;  %v1346_v11 = vshrl.u32 %v6235_v7, 16  ;;  %v1349_v12 = vshll.u32 %v6235_v7, 16  ;;  %v6289_v52 = vld [vmem:[#allocation2 + $0x20] sm:$0x1] }
  0xd3   : > { %3658 = vrot.lane.b32.xlu0 %v3287_v29, %s5815_s19  ;;  %v687_v40 = vmax.f32 %v655_v27, 0.0  ;;  %v804_v45 = vor.u32 %v802_v26, %v801_v37  ;;  %v805_v60 = vrot.slane %v801_v37, 4  ;;  %v1856_v17 = vrot.slane %v1197_v6, 5  ;;  %1754 = vst.msk [vmem:[#allocation3] sm:$0xf] %vm1753_vm3, %v1658_v20 }
  0xd4   : > { %v1328_v21 = vor.u32 %v1327_v4, %v1324_v3  ;;  %v1331_v23 = vshll.u32 %v6193_v25, 16  ;;  %v1335_v24 = vshrl.u32 %v6193_v25, 16  ;;  %v2831_v26 = vrot.slane %v2829_v1, 4  ;;  %v1950_v25 = vpop.permute.xlu2 %1949  ;;  %v6344_v4 = vld [vmem:[#allocation2 + $0x24] sm:$0xf] }
  0xd5   : > { %v6248_v19 = vld [vmem:[#allocation2 + $0x28] sm:$0xf]  ;;  %v719_v5 = vpack.c.bf16 %v687_v40, %v687_v40  ;;  %v1095_v56 = vsel %vm6099_vm11, %v804_v45, %v1094_v39  ;;  %v2832_v27 = vrot.slane %v6289_v52, 5  ;;  %v1351_v31 = vrot.slane %v1349_v12, 5  ;;  %2046 = vst.msk [vmem:[#allocation3] sm:$0xf] %vm8655_vm4, %v1950_v25 }
  0xd6   : > { %2168 = vrot.lane.b32.xlu2 %v6246_v18, %s5811_s15  ;;  %1245 = vst.msk [vmem:[#allocation3 + $0x1c] sm:$0xf] %vm8656_vm2, %v6248_v19  ;;  %v1857_v33 = vsel %vm5951_vm6, %v1855_v16, %v1856_v17  ;;  %v1329_v32 = vrot.slane %v1328_v21, 4  ;;  %v1333_v37 = vrot.slane %v1331_v23, 5  ;;  %v1337_v38 = vrot.slane %v1335_v24, 4  ;;  %v554_v17 = vpop.f32.mrf.mxu0 }
  0xd7   : > { %1096 = vst [vmem:[#allocation2 + $0x30] sm:$0xf] %v1095_v56  ;;  %v807_v50 = vshrl.u32 %v719_v5, 16  ;;  %v810_v51 = vshll.u32 %v719_v5, 16  ;;  %v2833_v39 = vsel %vm5951_vm6, %v2831_v26, %v2832_v27  ;;  %v1355_v42 = vshll.u32 %v6248_v19, 16 }
  0xd8   : > { %v1334_v44 = vsel %vm6009_vm9, %v1329_v32, %v1333_v37  ;;  %v1338_v45 = vor.u32 %v1337_v38, %v1333_v37  ;;  %v1341_v56 = vshll.u32 %v1197_v6, 16  ;;  %v3288_v30 = vshrl.u32 %v6200_v34, 16  ;;  %v6376_v32 = vld [vmem:[#allocation2 + $0x2c] sm:$0x1] }
  0xd9   : > { %v809_v62 = vrot.slane %v807_v50, 7  ;;  %v6322_v49 = vrot.slane %v1355_v42, 5  ;;  %v3302_v53 = vshll.u32 %v6318_v47, 16  ;;  %v2329_v3 = vshrl.u32 %v6246_v18, 16 }
  0xda   : > { %1663 = vrot.lane.b32.xlu1 %v1320_v28, %s5810_s23  ;;  %v1348_v28 = vrot.slane %v1346_v11, 4  ;;  %v1339_v50 = vrot.slane %v1338_v45, 4  ;;  %v1343_v34 = vrot.slane %v1341_v56, 5  ;;  %v3294_v11 = vshll.u32 %v6244_v10, 16 }
  0xdb   : > { %3917 = vrot.lane.b32.xlu0 %v3809_v41, %s5816_s20  ;;  %v812_v9 = vor.u32 %v810_v51, %v809_v62  ;;  %v814_v29 = vrot.slane %v809_v62, 4  ;;  %v5596_v41 = vld [vmem:[%s5922_s21 + $0x38] sm:$0xff]  ;;  %v3299_v51 = vshrl.u32 %v6318_v47, 16  ;;  %v6335_v62 = vld [vmem:[#allocation2 + $0x2c] sm:$0x1]  ;;  %v3304_v1 = vrot.slane %v3302_v53, 5 }
  0xdc   : > { %v1352_v40 = vor.u32 %v1351_v31, %v1348_v28  ;;  %5246 = vmatmul.msk.bf16.gmra.mxu0 %vm8654_vm1, %v5596_v41  ;;  %v1863_v6 = vrot.slane %v6335_v62, 5  ;;  %v623_v20 = vmul.f32 %v6087_v35, %v554_v17  ;;  %v2340_v24 = vshrl.u32 %v6344_v4, 16 }
  0xdd   : > { %v813_v13 = vsel %vm6106_vm14, %v805_v60, %v812_v9  ;;  %v1099_v14 = vsel %vm6112_vm15, %v814_v29, %v1098_v2  ;;  %v1860_v60 = vrot.slane %v6248_v19, 5  ;;  %v3301_v0 = vrot.slane %v3299_v51, 4  ;;  %v6349_v29 = vld [vmem:[#allocation2 + $0x28] sm:$0xf] }
  0xde   : > { %3915 = vrot.lane.b32.xlu2 %v3806_v43, %s5816_s20  ;;  %1097 = vst.msk [vmem:[#allocation2 + $0x34] sm:$0xf] %vm8656_vm2, %v813_v13  ;;  %v1353_v5 = vrot.slane %v1352_v40, 4  ;;  %v1660_v43 = vpop.permute.xlu0 %1659  ;;  %v5597_v13 = vld [vmem:[%s5922_s21 + $0x40] sm:$0xff]  ;;  %v656_v26 = vadd.f32 %v6092_v36, %v623_v20  ;;  %v2343_v27 = vshll.u32 %v6344_v4, 16  ;;  %v3812_v28 = vrot.slane %v6349_v29, 5 }
  0xdf   : > { %1100 = vst [vmem:[#allocation2 + $0x38] sm:$0x1] %v1099_v14  ;;  %v1862_v2 = vrot.slane %v1860_v60, 4  ;;  %v3305_v12 = vor.u32 %v3304_v1, %v3301_v0  ;;  %v2331_v14 = vrot.slane %v2329_v3, 4  ;;  %v6378_v37 = vld [vmem:[#allocation2 + $0x30] sm:$0xf] }
  0xe0   : > { %1755 = vst.msk [vmem:[#allocation3 + $0x4] sm:$0xf] %vm1753_vm3, %v1660_v43  ;;  %v1358_v54 = vsel %vm6009_vm9, %v1353_v5, %v6322_v49  ;;  %v2342_v25 = vrot.slane %v2340_v24, 4  ;;  %v2345_v42 = vrot.slane %v2343_v27, 5  ;;  %v3815_v45 = vrot.slane %v6376_v32, 5  ;;  %v556_v5 = vpop.f32.mrf.mxu0 }
  0xe1   : > { %2047 = vst.msk [vmem:[#allocation3 + $0x4] sm:$0xf] %vm8655_vm4, %v6267_v46  ;;  %v3290_v46 = vrot.slane %v3288_v30, 4  ;;  %v3306_v16 = vrot.slane %v3305_v12, 4  ;;  %v2332_v23 = vor.u32 %v2331_v14, %v6276_v55  ;;  %v688_v55 = vmax.f32 %v656_v26, 0.0 }
  0xe2   : > { %2677 = vrot.lane.b32.xlu1 %v2314_v63, %s5812_s16  ;;  %v1344_v63 = vsel %vm6009_vm9, %v1339_v50, %v1343_v34  ;;  %1246 = vst.msk [vmem:[#allocation3 + $0x20] sm:$0xf] %vm8656_vm2, %v6378_v37  ;;  %v624_v30 = vmul.f32 %v6087_v35, %v556_v5  ;;  %v5258_v51 = vrot.slane %v6235_v7, 9  ;;  %v6428_v24 = vld [vmem:[#allocation2 + $0x2c] sm:$0x1]  ;;  %v1365_v5 = vshll.u32 %v6335_v62, 16 }
  0xe3   : > { %2679 = vrot.lane.b32.xlu0 %v2328_v58, %s5812_s16  ;;  %v3291_v9 = vor.u32 %v3290_v46, %v6222_v59  ;;  %v1864_v58 = vsel %vm5951_vm6, %v1862_v2, %v1863_v6  ;;  %v3296_v59 = vrot.slane %v3294_v11, 5  ;;  %v2333_v38 = vrot.slane %v2332_v23, 4  ;;  %v5598_v2 = vld [vmem:[%s5922_s21 + $0x48] sm:$0xff]  ;;  %v6412_v11 = vld [vmem:[#allocation2 + $0x30] sm:$0xf] }
  0xe4   : > { %v720_v40 = vpack.c.bf16 %v688_v55, %v688_v55  ;;  %v2346_v46 = vor.u32 %v2345_v42, %v2342_v25  ;;  %v1861_v7 = vsel %vm5951_vm6, %v5258_v51, %v1860_v60  ;;  %v1359_v60 = vshrl.u32 %v6248_v19, 16  ;;  %v1105_v19 = vld [vmem:[#allocation2 + $0x44] sm:$0x1] }
  0xe5   : > { %v3292_v18 = vrot.slane %v3291_v9, 4  ;;  %v6384_v41 = vld [vmem:[#allocation2 + $0x34] sm:$0xf]  ;;  %v3323_v20 = vshrl.u32 %v6412_v11, 16  ;;  %v2839_v42 = vrot.slane %v6428_v24, 5 }
  0xe6   : > { %2936 = vrot.lane.b32.xlu2 %v2830_v15, %s5813_s17  ;;  %v3308_v15 = vshll.u32 %v6349_v29, 16  ;;  %1247 = vst.msk [vmem:[#allocation3 + $0x24] sm:$0xf] %vm8656_vm2, %v6384_v41  ;;  %v816_v43 = vshrl.u32 %v720_v40, 16  ;;  %v819_v56 = vshll.u32 %v720_v40, 16 }
  0xe7   : > { %v3297_v10 = vsel %vm6009_vm9, %v3292_v18, %v3296_v59 }
  0xe8   : > { %v6363_v21 = vrot.slane %v3308_v15, 5  ;;  %v818_v53 = vrot.slane %v816_v43, 7  ;;  %v5384_v15 = vrot.slane %v6318_v47, 9  ;;  %v5321_v43 = vrot.slane %v6344_v4, 9 }
  0xea   : > { %1959 = vrot.lane.b32.xlu1 %v1857_v33, %s5809_s22  ;;  %v3311_v31 = vsel %vm6009_vm9, %v3306_v16, %v6363_v21  ;;  %v2335_v33 = vshll.u32 %v6289_v52, 16  ;;  %v821_v0 = vor.u32 %v819_v56, %v818_v53  ;;  %v822_v59 = vrot.slane %v818_v53, 4  ;;  %v6451_v56 = vld [vmem:[#allocation2 + $0x34] sm:$0xf] }
  0xeb   : > { %2938 = vrot.lane.b32.xlu0 %v2833_v39, %s5813_s17  ;;  %v6382_v39 = vld [vmem:[#allocation2 + $0x28] sm:$0xf]  ;;  %v1367_v53 = vrot.slane %v1365_v5, 5 }
  0xec   : > { %5247 = vmatmul.msk.bf16.gmra.mxu0 %vm8654_vm1, %v5597_v13  ;;  %v2337_v52 = vrot.slane %v2335_v33, 5  ;;  %v2349_v6 = vshll.u32 %v6382_v39, 16  ;;  %v2836_v17 = vrot.slane %v6382_v39, 5 }
  0xee   : > { %1665 = vrot.lane.b32.xlu2 %v1334_v44, %s5810_s23  ;;  %v3814_v44 = vrot.slane %v3812_v28, 4  ;;  %v2338_v50 = vsel %vm6009_vm9, %v2333_v38, %v2337_v52  ;;  %v6414_v18 = vrot.slane %v2349_v6, 5  ;;  %v3325_v38 = vrot.slane %v3323_v20, 4 }
  0xef   : > { %v2838_v40 = vrot.slane %v2836_v17, 4  ;;  %v3312_v52 = vshrl.u32 %v6349_v29, 16  ;;  %v2837_v62 = vsel %vm5951_vm6, %v5321_v43, %v2836_v17  ;;  %v3318_v6 = vshll.u32 %v6376_v32, 16 }
  0xf0   : > { %v3816_v34 = vsel %vm5951_vm6, %v3814_v44, %v3815_v45  ;;  %v6444_v44 = vld [vmem:[#allocation2 + $0x30] sm:$0xf]  ;;  %v2359_v20 = vshll.u32 %v6428_v24, 16 }
  0xf2   : > { %3149 = vrot.lane.b32.xlu1 %v6318_v47, %s5814_s18  ;;  %v1361_v47 = vrot.slane %v1359_v60, 4 }
  0xf3   : > { %1669 = vrot.lane.b32.xlu0 %v1358_v54, %s5810_s23  ;;  %v657_v54 = vadd.f32 %v6092_v36, %v624_v30  ;;  %v2840_v30 = vsel %vm5951_vm6, %v2838_v40, %v2839_v42  ;;  %v5600_v42 = vld [vmem:[%s5922_s21 + $0x58] sm:$0xff] }
  0xf4   : > { %v1362_v45 = vor.u32 %v1361_v47, %v6322_v49  ;;  %v3332_v49 = vshll.u32 %v6451_v56, 16 }
  0xf5   : > { %v689_v1 = vmax.f32 %v657_v54, 0.0  ;;  %v5599_v54 = vld [vmem:[%s5922_s21 + $0x50] sm:$0xff] }
  0xf6   : > { %1667 = vrot.lane.b32.xlu2 %v1344_v63, %s5810_s23  ;;  %v1101_v63 = vld [vmem:[#allocation2 + $0x3c] sm:$0xf]  ;;  %v1363_v51 = vrot.slane %v1362_v45, 4 }
  0xf7   : > { %v1102_v3 = vsel %vm6099_vm11, %v821_v0, %v1101_v63  ;;  %v721_v9 = vpack.c.bf16 %v689_v1, %v689_v1  ;;  %v6467_v1 = vrot.slane %v3332_v49, 5 }
  0xf8   : > { %1103 = vst [vmem:[#allocation2 + $0x3c] sm:$0xf] %v1102_v3  ;;  %v1368_v0 = vsel %vm6009_vm9, %v1363_v51, %v1367_v53  ;;  %v1379_v51 = vshll.u32 %v6384_v41, 16  ;;  %v1383_v53 = vshrl.u32 %v6384_v41, 16 }
  0xf9   : > { %v824_v12 = vshrl.u32 %v721_v9, 16  ;;  %v827_v13 = vshll.u32 %v721_v9, 16  ;;  %v3819_v9 = vrot.slane %v6451_v56, 5 }
  0xfa   : > { %2170 = vrot.lane.b32.xlu1 %v6344_v4, %s5811_s15 }
  0xfb   : > { %1963 = vrot.lane.b32.xlu0 %v1864_v58, %s5809_s22  ;;  %v2347_v58 = vrot.slane %v2346_v46, 4  ;;  %v826_v16 = vrot.slane %v824_v12, 7  ;;  %v3320_v12 = vrot.slane %v3318_v6, 5  ;;  %v3821_v60 = vrot.slane %v3819_v9, 4 }
  0xfc   : > { %5248 = vmatmul.msk.bf16.gmra.mxu0 %vm8654_vm1, %v5598_v2 }
  0xfd   : > { %v2352_v23 = vsel %vm6009_vm9, %v2347_v58, %v6414_v18  ;;  %v829_v26 = vor.u32 %v827_v13, %v826_v16  ;;  %v831_v27 = vrot.slane %v826_v16, 4  ;;  %v6480_v58 = vld [vmem:[#allocation2 + $0x38] sm:$0x1] }
  0xfe   : > { %3151 = vrot.lane.b32.xlu2 %v6349_v29, %s5814_s18  ;;  %v3314_v29 = vrot.slane %v3312_v52, 4 }
  0xff   : > { %v830_v33 = vsel %vm6106_vm14, %v822_v59, %v829_v26  ;;  %v1106_v55 = vsel %vm6112_vm15, %v831_v27, %v1105_v19  ;;  %v559_v26 = vpop.f32.mrf.mxu0  ;;  %v6507_v40 = vld [vmem:[#allocation2 + $0x3c] sm:$0xf] }
 0x100   : > { %1104 = vst.msk [vmem:[#allocation2 + $0x40] sm:$0xf] %vm8656_vm2, %v830_v33  ;;  %v3315_v2 = vor.u32 %v3314_v29, %v6363_v21  ;;  %v625_v47 = vmul.f32 %v6087_v35, %v559_v26 }
 0x101   : > { %1107 = vst [vmem:[#allocation2 + $0x44] sm:$0x1] %v1106_v55 }
 0x102   : > { %3660 = vrot.lane.b32.xlu1 %v3297_v10, %s5815_s19  ;;  %v3326_v10 = vshll.u32 %v6412_v11, 16  ;;  %v3316_v32 = vrot.slane %v3315_v2, 4  ;;  %v658_v55 = vadd.f32 %v6092_v36, %v625_v47  ;;  %1248 = vst.msk [vmem:[#allocation3 + $0x28] sm:$0xf] %vm8656_vm2, %v6507_v40  ;;  %v1370_v2 = vshrl.u32 %v6378_v37, 16 }
 0x103   : > { %3662 = vrot.lane.b32.xlu0 %v3311_v31, %s5815_s19  ;;  %v3813_v31 = vsel %vm5951_vm6, %v5384_v15, %v3812_v28  ;;  %v3822_v15 = vrot.slane %v6480_v58, 5 }
 0x104   : > { %v3328_v25 = vrot.slane %v3326_v10, 5  ;;  %v3321_v16 = vsel %vm6009_vm9, %v3316_v32, %v3320_v12  ;;  %v6494_v10 = vld [vmem:[#allocation2 + $0x34] sm:$0xf]  ;;  %v1381_v12 = vrot.slane %v1379_v51, 5  ;;  %v3336_v51 = vshrl.u32 %v6451_v56, 16 }
 0x105   : > { %v2373_v24 = vshll.u32 %v6494_v10, 16 }
 0x106   : > { %2172 = vrot.lane.b32.xlu2 %v6382_v39, %s5811_s15 }
 0x107   : > { %v6514_v5 = vrot.slane %v2373_v24, 5  ;;  %v6516_v43 = vld [vmem:[#allocation2 + $0x40] sm:$0xf]  ;;  %v561_v49 = vpop.f32.mrf.mxu0 }
 0x108   : > { %1249 = vst.msk [vmem:[#allocation3 + $0x2c] sm:$0xf] %vm8656_vm2, %v6516_v43 }
 0x10a   : > { %2681 = vrot.lane.b32.xlu1 %v2338_v50, %s5812_s16  ;;  %v3329_v50 = vor.u32 %v3328_v25, %v3325_v38  ;;  %v690_v25 = vmax.f32 %v658_v55, 0.0 }
 0x10b   : > { %3921 = vrot.lane.b32.xlu0 %v3816_v34, %s5816_s20  ;;  %v2353_v34 = vshrl.u32 %v6382_v39, 16  ;;  %v2367_v39 = vshll.u32 %v6444_v44, 16 }
 0x10c   : > { %v3330_v4 = vrot.slane %v3329_v50, 4  ;;  %5249 = vmatmul.msk.bf16.gmra.mxu0 %vm8654_vm1, %v5599_v54  ;;  %v2843_v50 = vrot.slane %v6494_v10, 5 }
 0x10d   : > { %v2355_v21 = vrot.slane %v2353_v34, 4  ;;  %v626_v34 = vmul.f32 %v6087_v35, %v561_v49 }
 0x10e   : > { %1961 = vrot.lane.b32.xlu2 %v1861_v7, %s5809_s22  ;;  %v2364_v7 = vshrl.u32 %v6444_v44, 16  ;;  %v3335_v3 = vsel %vm6009_vm9, %v3330_v4, %v6467_v1 }
 0x10f   : > { %v2356_v17 = vor.u32 %v2355_v21, %v6414_v18  ;;  %v2361_v18 = vrot.slane %v2359_v20, 5  ;;  %v2845_v21 = vrot.slane %v2843_v50, 4 }
 0x110   : > { %v2165_v14 = vpop.permute.xlu2 %2164  ;;  %v2366_v13 = vrot.slane %v2364_v7, 4 }
 0x111   : > { %2260 = vst.msk [vmem:[#allocation3 + $0x4] sm:$0xf] %vm2258_vm5, %v2165_v14  ;;  %v2369_v14 = vrot.slane %v2367_v39, 5  ;;  %v1373_v39 = vshll.u32 %v6378_v37, 16 }
 0x112   : > { %3153 = vrot.lane.b32.xlu1 %v6412_v11, %s5814_s18 }
 0x113   : > { %2683 = vrot.lane.b32.xlu0 %v2352_v23, %s5812_s16  ;;  %v3823_v23 = vsel %vm5951_vm6, %v3821_v60, %v3822_v15  ;;  %v2370_v19 = vor.u32 %v2369_v14, %v2366_v13  ;;  %v1385_v13 = vrot.slane %v1383_v53, 4  ;;  %v1108_v14 = vld [vmem:[#allocation2 + $0x48] sm:$0xf]  ;;  %v6550_v60 = vld [vmem:[#allocation2 + $0x38] sm:$0x1]  ;;  %v1375_v20 = vrot.slane %v1373_v39, 5 }
 0x114   : > { %v1389_v47 = vshll.u32 %v6550_v60, 16 }
 0x115   : > { %v2371_v38 = vrot.slane %v2370_v19, 4 }
 0x116   : > { %3919 = vrot.lane.b32.xlu2 %v3813_v31, %s5816_s20  ;;  %v2357_v31 = vrot.slane %v2356_v17, 4 }
 0x117   : > { %v2376_v29 = vsel %vm6009_vm9, %v2371_v38, %v6514_v5 }
 0x118   : > { %v6442_v28 = vpop.permute.xlu2 %2932  ;;  %v2362_v45 = vsel %vm6009_vm9, %v2357_v31, %v2361_v18 }
 0x11a   : > { %2174 = vrot.lane.b32.xlu1 %v6444_v44, %s5811_s15 }
 0x11b   : > { %2942 = vrot.lane.b32.xlu0 %v2840_v30, %s5813_s17  ;;  %v722_v30 = vpack.c.bf16 %v690_v25, %v690_v25 }
 0x11c   : > { %5250 = vmatmul.msk.bf16.gmra.mxu0 %vm8654_vm1, %v5600_v42 }
 0x11d   : > { %v836_v4 = vshll.u32 %v722_v30, 16 }
 0x11e   : > { %2940 = vrot.lane.b32.xlu2 %v2837_v62, %s5813_s17  ;;  %v833_v62 = vshrl.u32 %v722_v30, 16  ;;  %v5601_v30 = vld [vmem:[%s5922_s21 + $0x60] sm:$0xff] }
 0x120   : > { %v2163_v46 = vpop.permute.xlu1 %2162  ;;  %v6463_v63 = vpop.permute.xlu2 %1955  ;;  %v835_v35 = vrot.slane %v833_v62, 7 }
 0x121   : > { %2259 = vst.msk [vmem:[#allocation3] sm:$0xf] %vm2258_vm5, %v2163_v46  ;;  %v5259_v46 = vrot.slane %v6378_v37, 9 }
 0x122   : > { %1671 = vrot.lane.b32.xlu1 %v1368_v0, %s5810_s23  ;;  %v1867_v0 = vrot.slane %v6384_v41, 5  ;;  %v838_v15 = vor.u32 %v836_v4, %v835_v35  ;;  %v839_v38 = vrot.slane %v835_v35, 4 }
 0x123   : > { %3666 = vrot.lane.b32.xlu0 %v3335_v3, %s5815_s19  ;;  %v659_v3 = vadd.f32 %v6092_v36, %v626_v34  ;;  %v5322_v36 = vrot.slane %v6444_v44, 9 }
 0x124   : > { %v1868_v37 = vsel %vm5951_vm6, %v5259_v46, %v1867_v0 }
 0x126   : > { %3155 = vrot.lane.b32.xlu2 %v6451_v56, %s5814_s18 }
 0x128   : > { %v6487_v59 = vpop.permute.xlu2 %3147 }
 0x12a   : > { %3664 = vrot.lane.b32.xlu1 %v3321_v16, %s5815_s19  ;;  %v691_v16 = vmax.f32 %v659_v3, 0.0 }
 0x12b   : > { %3925 = vrot.lane.b32.xlu0 %v3823_v23, %s5816_s20  ;;  %v1109_v23 = vsel %vm6099_vm11, %v838_v15, %v1108_v14  ;;  %v2377_v14 = vshrl.u32 %v6494_v10, 16 }
 0x12c   : > { %v1954_v27 = vpop.permute.xlu1 %1953  ;;  %v723_v19 = vpack.c.bf16 %v691_v16, %v691_v16  ;;  %1110 = vst [vmem:[#allocation2 + $0x48] sm:$0xf] %v1109_v23  ;;  %5251 = vmatmul.msk.bf16.gmra.mxu0 %vm8654_vm1, %v5601_v30  ;;  %v3342_v16 = vshll.u32 %v6480_v58, 16 }
 0x12d   : > { %v2676_v33 = vpop.permute.xlu0 %2675 }
 0x12e   : > { %2772 = vst.msk [vmem:[#allocation3] sm:$0xf] %vm2771_vm7, %v2676_v33  ;;  %2176 = vrot.lane.b32.xlu2 %v6494_v10, %s5811_s15  ;;  %v841_v44 = vshrl.u32 %v723_v19, 16  ;;  %v844_v18 = vshll.u32 %v723_v19, 16  ;;  %v2844_v33 = vsel %vm5951_vm6, %v5322_v36, %v2843_v50  ;;  %v1869_v36 = vrot.slane %v1867_v0, 4 }
 0x12f   : > { %3029 = vst.msk [vmem:[#allocation3] sm:$0xf] %vm3028_vm8, %v6442_v28  ;;  %v5385_v28 = vrot.slane %v6412_v11, 9  ;;  %v6532_v11 = vld [vmem:[#allocation2 + $0x38] sm:$0x1]  ;;  %v3344_v19 = vrot.slane %v3342_v16, 5 }
 0x130   : > { %v6510_v52 = vpop.permute.xlu2 %2168  ;;  %v2846_v32 = vrot.slane %v6532_v11, 5  ;;  %v843_v25 = vrot.slane %v841_v44, 7  ;;  %v6606_v10 = vld [vmem:[#allocation2 + $0x40] sm:$0xf] }
 0x131   : > { %v3820_v7 = vsel %vm5951_vm6, %v5385_v28, %v3819_v9  ;;  %v1372_v9 = vrot.slane %v1370_v2, 4  ;;  %v1112_v28 = vld [vmem:[#allocation2 + $0x50] sm:$0x1]  ;;  %v3356_v41 = vshll.u32 %v6606_v10, 16 }
 0x132   : > { %2685 = vrot.lane.b32.xlu1 %v2362_v45, %s5812_s16  ;;  %v2847_v26 = vsel %vm5951_vm6, %v2845_v21, %v2846_v32  ;;  %v1391_v45 = vrot.slane %v1389_v47, 5  ;;  %v846_v53 = vor.u32 %v844_v18, %v843_v25  ;;  %v848_v49 = vrot.slane %v843_v25, 4  ;;  %v6628_v47 = vld [vmem:[%s8649_s4] ss:$0 sm:$0xff] }
 0x133   : > { %2687 = vrot.lane.b32.xlu0 %v2376_v29, %s5812_s16  ;;  %v1376_v55 = vor.u32 %v1375_v20, %v1372_v9  ;;  %v6569_v29 = vld [vmem:[#allocation2 + $0x3c] sm:$0xf]  ;;  %v5260_v32 = vrot.slane %v6507_v40, 9  ;;  %v1870_v9 = vrot.slane %v6550_v60, 5  ;;  %v2383_v18 = vshll.u32 %v6532_v11, 16 }
 0x134   : > { %v1662_v54 = vpop.permute.xlu1 %1661  ;;  %v847_v62 = vsel %vm6106_vm14, %v839_v38, %v846_v53  ;;  %v1113_v4 = vsel %vm6112_vm15, %v848_v49, %v1112_v28  ;;  %v3347_v34 = vshrl.u32 %v6569_v29, 16  ;;  %v3350_v56 = vshll.u32 %v6569_v29, 16  ;;  %v6642_v38 = vld [vmem:[%s8649_s4 + $0x1] ss:$0 sm:$0xff] }
 0x135   : > { %1756 = vst.msk [vmem:[#allocation3 + $0x8] sm:$0xf] %vm1753_vm3, %v1662_v54  ;;  %v6540_v6 = vpop.permute.xlu0 %2934  ;;  %v1377_v50 = vrot.slane %v1376_v55, 4  ;;  %v1871_v60 = vsel %vm5951_vm6, %v1869_v36, %v1870_v9  ;;  %v1397_v55 = vshll.u32 %v6507_v40, 16  ;;  %v2385_v53 = vrot.slane %v2383_v18, 5  ;;  %v5622_v18 = vld [vmem:[%s8647_s2 + $0x8] sm:$0xff] }
 0x136   : > { %2048 = vst.msk [vmem:[#allocation3 + $0x8] sm:$0xf] %vm8655_vm4, %v1954_v27  ;;  %3923 = vrot.lane.b32.xlu2 %v3820_v7, %s5816_s20  ;;  %v1386_v27 = vor.u32 %v1385_v13, %v1381_v12  ;;  %v3338_v7 = vrot.slane %v3336_v51, 4  ;;  %v3349_v3 = vrot.slane %v3347_v34, 4  ;;  %v3352_v21 = vrot.slane %v3350_v56, 5 }
 0x137   : > { %1111 = vst.msk [vmem:[#allocation2 + $0x4c] sm:$0xf] %vm8656_vm2, %v847_v62  ;;  %v1382_v35 = vsel %vm6009_vm9, %v1377_v50, %v1381_v12  ;;  %v1874_v13 = vrot.slane %v6516_v43, 5  ;;  %v6598_v12 = vld [vmem:[#allocation2 + $0x3c] sm:$0xf]  ;;  %v1399_v50 = vrot.slane %v1397_v55, 5 }
 0x138   : > { %v3916_v17 = vpop.permute.xlu2 %3915  ;;  %v1387_v42 = vrot.slane %v1386_v27, 4  ;;  %1114 = vst [vmem:[#allocation2 + $0x50] sm:$0x1] %v1113_v4  ;;  %v3339_v15 = vor.u32 %v3338_v7, %v6467_v1  ;;  %v3353_v58 = vor.u32 %v3352_v21, %v3349_v3  ;;  %v6654_v51 = vld [vmem:[#allocation2 + $0x44] sm:$0x1]  ;;  %v1403_v9 = vshll.u32 %v6516_v43, 16 }
 0x139   : > { %v1875_v1 = vsel %vm5951_vm6, %v5260_v32, %v1874_v13  ;;  %v1115_v3 = vld [vmem:[#allocation2 + $0x54] sm:$0xf] }
 0x13a   : > { %1965 = vrot.lane.b32.xlu1 %v1868_v37, %s5809_s22  ;;  %v1392_v46 = vsel %vm6009_vm9, %v1387_v42, %v1391_v45  ;;  %v3340_v23 = vrot.slane %v3339_v15, 4  ;;  %v3354_v27 = vrot.slane %v3353_v58, 4  ;;  %v2388_v42 = vshrl.u32 %v6598_v12, 16 }
 0x13b   : > { %2946 = vrot.lane.b32.xlu0 %v2847_v26, %s5813_s17 }
 0x13c   : > { %v3146_v31 = vpop.permute.xlu1 %3145  ;;  %v2390_v4 = vrot.slane %v2388_v42, 4 }
 0x13d   : > { %3242 = vst.msk [vmem:[#allocation3] sm:$0xf] %vm3241_vm10, %v3146_v31  ;;  %v1958_v24 = vpop.permute.xlu0 %1957 }
 0x13e   : > { %2944 = vrot.lane.b32.xlu2 %v2844_v33, %s5813_s17  ;;  %v6635_v33 = vrot.slane %v3356_v41, 5 }
 0x13f   : > { %v564_v26 = vpop.f32.mrf.mxu0 }
 0x140   : > { %v6572_v54 = vpop.permute.xlu2 %2936  ;;  %v627_v31 = vmul.f32 %v6628_v47, %v564_v26  ;;  %v3359_v11 = vsel %vm6009_vm9, %v3354_v27, %v6635_v33 }
 0x142   : > { %3157 = vrot.lane.b32.xlu1 %v6569_v29, %s5814_s18  ;;  %v660_v25 = vadd.f32 %v6642_v38, %v627_v31 }
 0x143   : > { %1675 = vrot.lane.b32.xlu0 %v1392_v46, %s5810_s23 }
 0x144   : > { %v2167_v2 = vpop.permute.xlu1 %2166  ;;  %v692_v45 = vmax.f32 %v660_v25, 0.0 }
 0x145   : > { %2261 = vst.msk [vmem:[#allocation3 + $0x8] sm:$0xf] %vm2258_vm5, %v2167_v2  ;;  %v3659_v39 = vpop.permute.xlu0 %3658  ;;  %v3829_v2 = vrot.slane %v6654_v51, 5 }
 0x146   : > { %3755 = vst.msk [vmem:[#allocation3] sm:$0xf] %vm3754_vm12, %v3659_v39  ;;  %1673 = vrot.lane.b32.xlu2 %v1382_v35, %s5810_s23  ;;  %v724_v62 = vpack.c.bf16 %v692_v45, %v692_v45  ;;  %v6667_v35 = vld [vmem:[#allocation2 + $0x40] sm:$0xf]  ;;  %v5386_v45 = vrot.slane %v6569_v29, 9 }
 0x147   : > { %4012 = vst.msk [vmem:[#allocation3] sm:$0xf] %vm4011_vm13, %v3916_v17  ;;  %v2379_v17 = vrot.slane %v2377_v14, 4  ;;  %v566_v21 = vpop.f32.mrf.mxu0  ;;  %v2397_v26 = vshll.u32 %v6667_v35, 16  ;;  %v6732_v29 = vld [vmem:[#allocation2 + $0x44] sm:$0x1] }
 0x148   : > { %v1666_v37 = vpop.permute.xlu2 %1665  ;;  %v850_v7 = vshrl.u32 %v724_v62, 16  ;;  %v853_v39 = vshll.u32 %v724_v62, 16 }
 0x149   : > { %1758 = vst.msk [vmem:[#allocation3 + $0x10] sm:$0xf] %vm1753_vm3, %v1666_v37  ;;  %v2380_v44 = vor.u32 %v2379_v17, %v6514_v5  ;;  %v2391_v5 = vshll.u32 %v6598_v12, 16  ;;  %v6681_v37 = vld [vmem:[#allocation2 + $0x48] sm:$0xf] }
 0x14a   : > { %2178 = vrot.lane.b32.xlu1 %v6598_v12, %s5811_s15  ;;  %2050 = vst.msk [vmem:[#allocation3 + $0x10] sm:$0xf] %vm8655_vm4, %v1958_v24  ;;  %v6679_v16 = vrot.slane %v850_v7, 7  ;;  %v1418_v62 = vshrl.u32 %v6681_v37, 16 }
 0x14b   : > { %1969 = vrot.lane.b32.xlu0 %v1875_v1, %s5809_s22  ;;  %v2381_v30 = vrot.slane %v2380_v44, 4  ;;  %v2393_v34 = vrot.slane %v2391_v5, 5  ;;  %v6685_v1 = vld [vmem:[#allocation2 + $0x4c] sm:$0xf]  ;;  %1250 = vst.msk [vmem:[#allocation3 + $0x30] sm:$0xf] %vm8656_vm2, %v6681_v37 }
 0x14c   : > { %v1664_v20 = vpop.permute.xlu1 %1663  ;;  %1251 = vst.msk [vmem:[#allocation3 + $0x34] sm:$0xf] %vm8656_vm2, %v6685_v1  ;;  %v6715_v5 = vrot.slane %v2397_v26, 5 }
 0x14d   : > { %1757 = vst.msk [vmem:[#allocation3 + $0xc] sm:$0xf] %vm1753_vm3, %v1664_v20  ;;  %v6618_v0 = vpop.permute.xlu0 %3917  ;;  %v2386_v14 = vsel %vm6009_vm9, %v2381_v30, %v2385_v53  ;;  %v2394_v17 = vor.u32 %v2393_v34, %v2390_v4  ;;  %v855_v20 = vor.u32 %v853_v39, %v6679_v16  ;;  %v5621_v53 = vld [vmem:[%s8647_s2] sm:$0xff]  ;;  %v1421_v4 = vshll.u32 %v6681_v37, 16  ;;  %v1119_v39 = vld [vmem:[#allocation2 + $0x5c] sm:$0x1] }
 0x14e   : > { %2049 = vst.msk [vmem:[#allocation3 + $0xc] sm:$0xf] %vm8655_vm4, %v6463_v63  ;;  %1967 = vrot.lane.b32.xlu2 %v1871_v60, %s5809_s22  ;;  %v3345_v63 = vsel %vm6009_vm9, %v3340_v23, %v3344_v19 }
 0x14f   : > { %2262 = vst.msk [vmem:[#allocation3 + $0xc] sm:$0xf] %vm2258_vm5, %v6510_v52  ;;  %v1394_v52 = vshrl.u32 %v6507_v40, 16  ;;  %v3826_v40 = vrot.slane %v6606_v10, 5  ;;  %v1116_v27 = vsel %vm6099_vm11, %v855_v20, %v1115_v3 }
 0x150   : > { %v1668_v24 = vpop.permute.xlu2 %1667  ;;  %1117 = vst [vmem:[#allocation2 + $0x54] sm:$0xf] %v1116_v27  ;;  %v1427_v27 = vshll.u32 %v6685_v1, 16 }
 0x151   : > { %1759 = vst.msk [vmem:[#allocation3 + $0x14] sm:$0xf] %vm1753_vm3, %v1668_v24  ;;  %v1396_v49 = vrot.slane %v1394_v52, 4  ;;  %v3828_v46 = vrot.slane %v3826_v40, 4  ;;  %v6710_v24 = vrot.slane %v1403_v9, 5  ;;  %v2395_v52 = vrot.slane %v2394_v17, 4 }
 0x152   : > { %3668 = vrot.lane.b32.xlu1 %v3345_v63, %s5815_s19  ;;  %v1423_v9 = vrot.slane %v1421_v4, 5  ;;  %v5323_v17 = vrot.slane %v6598_v12, 9 }
 0x153   : > { %3670 = vrot.lane.b32.xlu0 %v3359_v11, %s5815_s19  ;;  %v1400_v15 = vor.u32 %v1399_v50, %v1396_v49  ;;  %v3830_v58 = vsel %vm5951_vm6, %v3828_v46, %v3829_v2  ;;  %v6717_v11 = vld [vmem:[#allocation2 + $0x44] sm:$0x1]  ;;  %v2850_v49 = vrot.slane %v6667_v35, 5  ;;  %v2400_v50 = vsel %vm6009_vm9, %v2395_v52, %v6715_v5 }
 0x154   : > { %v2678_v28 = vpop.permute.xlu1 %2677  ;;  %v1876_v2 = vrot.slane %v1874_v13, 4  ;;  %v1877_v7 = vrot.slane %v6717_v11, 5  ;;  %v1413_v12 = vshll.u32 %v6717_v11, 16 }
 0x155   : > { %2773 = vst.msk [vmem:[#allocation3 + $0x4] sm:$0xf] %vm2771_vm7, %v2678_v28  ;;  %v2680_v56 = vpop.permute.xlu0 %2679  ;;  %v1401_v60 = vrot.slane %v1400_v15, 4  ;;  %v5603_v15 = vld [vmem:[%s5922_s21 + $0x70] sm:$0xff]  ;;  %v2852_v13 = vrot.slane %v2850_v49, 4 }
 0x156   : > { %3030 = vst.msk [vmem:[#allocation3 + $0x4] sm:$0xf] %vm3028_vm8, %v6540_v6  ;;  %3159 = vrot.lane.b32.xlu2 %v6606_v10, %s5814_s18  ;;  %v5602_v6 = vld [vmem:[%s5922_s21 + $0x68] sm:$0xff]  ;;  %v1415_v11 = vrot.slane %v1413_v12, 5 }
 0x157   : > { %3243 = vst.msk [vmem:[#allocation3 + $0x4] sm:$0xf] %vm3241_vm10, %v6487_v59  ;;  %v4080_v59 = vld [vmem:[%s8647_s2 + $0x10] sm:$0x3]  ;;  %5252 = vmatmul.msk.bf16.gmra.mxu0 %vm8654_vm1, %v5602_v6  ;;  %v1406_v42 = vsel %vm6009_vm9, %v1401_v60, %v6710_v24  ;;  %v3827_v6 = vsel %vm5951_vm6, %v5386_v45, %v3826_v40 }
 0x158   : > { %2774 = vst.msk [vmem:[#allocation3 + $0x8] sm:$0xf] %vm2771_vm7, %v2680_v56  ;;  %v6675_v32 = vpop.permute.xlu2 %3151  ;;  %v4170_v36 = vunpack.c.l.b16 %v4080_v59  ;;  %v856_v56 = vrot.slane %v6679_v16, 4  ;;  %v2853_v16 = vrot.slane %v6732_v29, 5 }
 0x159   : > { %3031 = vst.msk [vmem:[#allocation3 + $0x8] sm:$0xf] %vm3028_vm8, %v6572_v54  ;;  %v628_v54 = vmul.f32 %v6628_v47, %v566_v21 }
 0x15a   : > { %2689 = vrot.lane.b32.xlu1 %v2386_v14, %s5812_s16  ;;  %v4173_v23 = vpack.c.b16 %v4170_v36, %v4170_v36  ;;  %v1407_v14 = vshrl.u32 %v6516_v43, 16  ;;  %v1420_v36 = vrot.slane %v1418_v62, 4  ;;  %v1878_v43 = vsel %vm5951_vm6, %v1876_v2, %v1877_v7 }
 0x15b   : > { %3929 = vrot.lane.b32.xlu0 %v3830_v58, %s5816_s20  ;;  %v661_v41 = vadd.f32 %v6642_v38, %v628_v54 }
 0x15c   : > { %v1960_v19 = vpop.permute.xlu1 %1959  ;;  %v4227_v31 = vsel %vm4225_vm0, %v4173_v23, 0  ;;  %v1409_v20 = vrot.slane %v1407_v14, 4  ;;  %v2854_v23 = vsel %vm5951_vm6, %v2852_v13, %v2853_v16  ;;  %v1122_v16 = vld [vmem:[#allocation2 + $0x60] sm:$0xf] }
 0x15d   : > { %2051 = vst.msk [vmem:[#allocation3 + $0x14] sm:$0xf] %vm8655_vm4, %v1960_v19  ;;  %v6703_v63 = vpop.permute.xlu0 %2938  ;;  %4234 = vmatpush.bf16.msra.mxu1 %v4227_v31  ;;  %v693_v44 = vmax.f32 %v661_v41, 0.0  ;;  %v1424_v19 = vor.u32 %v1423_v9, %v1420_v36  ;;  %v569_v41 = vpop.f32.mrf.mxu0  ;;  %v3366_v9 = vshll.u32 %v6654_v51, 16 }
 0x15e   : > { %2180 = vrot.lane.b32.xlu2 %v6667_v35, %s5811_s15  ;;  %v629_v26 = vmul.f32 %v6628_v47, %v569_v41 }
 0x15f   : > { %v725_v55 = vpack.c.bf16 %v693_v44, %v693_v44  ;;  %v2851_v44 = vsel %vm5951_vm6, %v5323_v17, %v2850_v49  ;;  %v6811_v17 = vld [vmem:[#allocation2 + $0x4c] sm:$0xf] }
 0x160   : > { %v2173_v25 = vpop.permute.xlu2 %2172  ;;  %v662_v52 = vadd.f32 %v6642_v38, %v629_v26 }
 0x161   : > { %2264 = vst.msk [vmem:[#allocation3 + $0x14] sm:$0xf] %vm2258_vm5, %v2173_v25  ;;  %v858_v28 = vshrl.u32 %v725_v55, 16  ;;  %v861_v30 = vshll.u32 %v725_v55, 16  ;;  %4235 = vmatpush.bf16.msra.mxu1 %v5622_v18  ;;  %v1410_v18 = vor.u32 %v1409_v20, %v6710_v24  ;;  %v6773_v55 = vld [vmem:[#allocation2 + $0x48] sm:$0xf] }
 0x162   : > { %1677 = vrot.lane.b32.xlu1 %v1406_v42, %s5810_s23  ;;  %v1425_v25 = vrot.slane %v1424_v19, 4  ;;  %v3360_v42 = vshrl.u32 %v6606_v10, 16  ;;  %v694_v45 = vmax.f32 %v662_v52, 0.0  ;;  %v3374_v24 = vshll.u32 %v6773_v55, 16 }
 0x163   : > { %2691 = vrot.lane.b32.xlu0 %v2400_v50, %s5812_s16  ;;  %v860_v46 = vrot.slane %v858_v28, 7  ;;  %v1411_v49 = vrot.slane %v1410_v18, 4  ;;  %v1881_v10 = vrot.slane %v6685_v1, 5  ;;  %v3380_v18 = vshll.u32 %v6811_v17, 16 }
 0x164   : > { %v3150_v34 = vpop.permute.xlu1 %3149  ;;  %v726_v50 = vpack.c.bf16 %v694_v45, %v694_v45 }
 0x165   : > { %3244 = vst.msk [vmem:[#allocation3 + $0x8] sm:$0xf] %vm3241_vm10, %v3150_v34  ;;  %v1670_v3 = vpop.permute.xlu0 %1669  ;;  %v863_v59 = vor.u32 %v861_v30, %v860_v46  ;;  %v865_v21 = vrot.slane %v860_v46, 4  ;;  %4236 = vmatpush.bf16.msra.mxu1 %v5621_v53  ;;  %v6776_v30 = vrot.slane %v1427_v27, 5  ;;  %v3371_v53 = vshrl.u32 %v6773_v55, 16  ;;  %v571_v4 = vpop.f32.mrf.mxu0 }
 0x166   : > { %1760 = vst.msk [vmem:[#allocation3 + $0x18] sm:$0xf] %vm1753_vm3, %v1670_v3  ;;  %3927 = vrot.lane.b32.xlu2 %v3827_v6, %s5816_s20  ;;  %v3362_v46 = vrot.slane %v3360_v42, 4  ;;  %v867_v2 = vshrl.u32 %v726_v50, 16  ;;  %v870_v7 = vshll.u32 %v726_v50, 16  ;;  %v630_v3 = vmul.f32 %v6628_v47, %v571_v4 }
 0x167   : > { %v864_v54 = vsel %vm6106_vm14, %v856_v56, %v863_v59  ;;  %v1120_v40 = vsel %vm6112_vm15, %v865_v21, %v1119_v39  ;;  %5253 = vmatmul.msk.bf16.gmra.mxu0 %vm8654_vm1, %v5603_v15  ;;  %v1430_v62 = vsel %vm6009_vm9, %v1425_v25, %v6776_v30  ;;  %v6787_v56 = vld [vmem:[#allocation2 + $0x50] sm:$0x1]  ;;  %v2401_v39 = vshrl.u32 %v6667_v35, 16 }
 0x168   : > { %v1962_v58 = vpop.permute.xlu2 %1961  ;;  %1118 = vst.msk [vmem:[#allocation2 + $0x58] sm:$0xf] %vm8656_vm2, %v864_v54  ;;  %v3373_v6 = vrot.slane %v3371_v53, 4  ;;  %v3376_v59 = vrot.slane %v3374_v24, 5  ;;  %v1416_v14 = vsel %vm6009_vm9, %v1411_v49, %v1415_v11  ;;  %v869_v15 = vrot.slane %v867_v2, 7 }
 0x169   : > { %2052 = vst.msk [vmem:[#allocation3 + $0x18] sm:$0xf] %vm8655_vm4, %v1962_v58  ;;  %v1883_v35 = vrot.slane %v1881_v10, 4  ;;  %v1884_v13 = vrot.slane %v6787_v56, 5  ;;  %v663_v36 = vadd.f32 %v6642_v38, %v630_v3  ;;  %v6807_v58 = vld [vmem:[#allocation2 + $0x48] sm:$0xf] }
 0x16a   : > { %1971 = vrot.lane.b32.xlu1 %v1878_v43, %s5809_s22  ;;  %1121 = vst [vmem:[#allocation2 + $0x5c] sm:$0x1] %v1120_v40  ;;  %v872_v54 = vor.u32 %v870_v7, %v869_v15  ;;  %v3377_v19 = vor.u32 %v3376_v59, %v3373_v6  ;;  %vm4176_vm1 = vcmask 293888   ;;  %v3368_v27 = vrot.slane %v3366_v9, 5 }
 0x16b   : > { %2950 = vrot.lane.b32.xlu0 %v2854_v23, %s5813_s17  ;;  %v695_v43 = vmax.f32 %v663_v36, 0.0  ;;  %v2403_v23 = vrot.slane %v2401_v39, 4  ;;  %v873_v11 = vrot.slane %v869_v15, 4  ;;  %v2407_v49 = vshll.u32 %v6732_v29, 16 }
 0x16c   : > { %v2171_v60 = vpop.permute.xlu1 %2170  ;;  %v1123_v20 = vsel %vm6099_vm11, %v872_v54, %v1122_v16  ;;  %v2412_v2 = vshrl.u32 %v6807_v58, 16  ;;  %v2415_v7 = vshll.u32 %v6807_v58, 16  ;;  %v3833_v29 = vrot.slane %v6811_v17, 5 }
 0x16d   : > { %2263 = vst.msk [vmem:[#allocation3 + $0x10] sm:$0xf] %vm2258_vm5, %v2171_v60  ;;  %v6766_v31 = vpop.permute.xlu0 %1963  ;;  %v727_v51 = vpack.c.bf16 %v695_v43, %v695_v43  ;;  %v574_v41 = vpop.f32.mrf.mxu0  ;;  %v2404_v24 = vor.u32 %v2403_v23, %v6715_v5  ;;  %v2409_v36 = vrot.slane %v2407_v49, 5  ;;  %v6855_v43 = vld [vmem:[#allocation2 + $0x4c] sm:$0xf] }
 0x16e   : > { %2948 = vrot.lane.b32.xlu2 %v2851_v44, %s5813_s17  ;;  %1124 = vst [vmem:[#allocation2 + $0x60] sm:$0xf] %v1123_v20  ;;  %v631_v12 = vmul.f32 %v6628_v47, %v574_v41  ;;  %v2417_v9 = vrot.slane %v2415_v7, 5 }
 0x16f   : > { %v875_v52 = vshrl.u32 %v727_v51, 16  ;;  %v878_v25 = vshll.u32 %v727_v51, 16  ;;  %v2405_v16 = vrot.slane %v2404_v24, 4  ;;  %v1129_v51 = vld [vmem:[#allocation2 + $0x6c] sm:$0xf] }
 0x170   : > { %v3920_v28 = vpop.permute.xlu2 %3919  ;;  %v664_v45 = vadd.f32 %v6642_v38, %v631_v12  ;;  %v1431_v12 = vshrl.u32 %v6685_v1, 16 }
 0x171   : > { %v877_v53 = vrot.slane %v875_v52, 7 }
 0x172   : > { %3161 = vrot.lane.b32.xlu1 %v6773_v55, %s5814_s18  ;;  %v696_v50 = vmax.f32 %v664_v45, 0.0 }
 0x173   : > { %1681 = vrot.lane.b32.xlu0 %v1430_v62, %s5810_s23 }
 0x174   : > { %v3661_v34 = vpop.permute.xlu1 %3660  ;;  %v728_v5 = vpack.c.bf16 %v696_v50, %v696_v50  ;;  %v1433_v50 = vrot.slane %v1431_v12, 4 }
 0x175   : > { %3756 = vst.msk [vmem:[#allocation3 + $0x4] sm:$0xf] %vm3754_vm12, %v3661_v34  ;;  %v3663_v21 = vpop.permute.xlu0 %3662  ;;  %v880_v34 = vor.u32 %v878_v25, %v877_v53  ;;  %v576_v59 = vpop.f32.mrf.mxu0 }
 0x176   : > { %4013 = vst.msk [vmem:[#allocation3 + $0x4] sm:$0xf] %vm4011_vm13, %v6618_v0  ;;  %1679 = vrot.lane.b32.xlu2 %v1416_v14, %s5810_s23  ;;  %v3363_v0 = vor.u32 %v3362_v46, %v6635_v33  ;;  %v1885_v33 = vsel %vm5951_vm6, %v1883_v35, %v1884_v13  ;;  %v882_v46 = vrot.slane %v877_v53, 4  ;;  %v6851_v14 = vld [vmem:[#allocation2 + $0x50] sm:$0x1]  ;;  %v884_v15 = vshrl.u32 %v728_v5, 16 }
 0x177   : > { %3757 = vst.msk [vmem:[#allocation3 + $0x8] sm:$0xf] %vm3754_vm12, %v3663_v21  ;;  %v881_v3 = vsel %vm6106_vm14, %v873_v11, %v880_v34  ;;  %v887_v35 = vshll.u32 %v728_v5, 16  ;;  %v632_v13 = vmul.f32 %v6628_v47, %v576_v59  ;;  %v6882_v11 = vld [vmem:[#allocation2 + $0x54] sm:$0xf] }
 0x178   : > { %4014 = vst.msk [vmem:[#allocation3 + $0x8] sm:$0xf] %vm4011_vm13, %v3920_v28  ;;  %v6805_v40 = vpop.permute.xlu2 %2940  ;;  %v3364_v26 = vrot.slane %v3363_v0, 4  ;;  %v3378_v28 = vrot.slane %v3377_v19, 4  ;;  %v2414_v0 = vrot.slane %v2412_v2, 4  ;;  %v886_v20 = vrot.slane %v884_v15, 7 }
 0x179   : > { %1125 = vst.msk [vmem:[#allocation2 + $0x64] sm:$0xf] %vm8656_vm2, %v881_v3  ;;  %v665_v23 = vadd.f32 %v6642_v38, %v632_v13  ;;  %v3836_v19 = vrot.slane %v6851_v14, 5  ;;  %v2857_v3 = vrot.slane %v6855_v43, 5  ;;  %v1133_v59 = vld [vmem:[#allocation2 + $0x74] sm:$0x1] }
 0x17a   : > { %2182 = vrot.lane.b32.xlu1 %v6807_v58, %s5811_s15  ;;  %v3369_v4 = vsel %vm6009_vm9, %v3364_v26, %v3368_v27  ;;  %v889_v41 = vor.u32 %v887_v35, %v886_v20  ;;  %v2410_v27 = vsel %vm6009_vm9, %v2405_v16, %v2409_v36  ;;  %v2418_v45 = vor.u32 %v2417_v9, %v2414_v0 }
 0x17b   : > { %1975 = vrot.lane.b32.xlu0 %v1885_v33, %s5809_s22  ;;  %v3835_v33 = vrot.slane %v3833_v29, 4  ;;  %1252 = vst.msk [vmem:[#allocation3 + $0x38] sm:$0xf] %vm8656_vm2, %v6882_v11  ;;  %v890_v2 = vrot.slane %v886_v20, 4  ;;  %v1434_v36 = vor.u32 %v1433_v50, %v6776_v30  ;;  %v1437_v0 = vshll.u32 %v6787_v56, 16 }
 0x17c   : > { %v2682_v60 = vpop.permute.xlu1 %2681  ;;  %v5387_v9 = vrot.slane %v6773_v55, 9  ;;  %v6921_v55 = vld [vmem:[#allocation2 + $0x50] sm:$0x1] }
 0x17d   : > { %2775 = vst.msk [vmem:[#allocation3 + $0xc] sm:$0xf] %vm2771_vm7, %v2682_v60  ;;  %v5605_v44 = vld [vmem:[#allocation3] sm:$0xff]  ;;  %v6823_v42 = vpop.permute.xlu0 %3921  ;;  %v697_v60 = vmax.f32 %v665_v23, 0.0  ;;  %v3837_v25 = vsel %vm5951_vm6, %v3835_v33, %v3836_v19  ;;  %v2425_v19 = vshrl.u32 %v6855_v43, 16 }
 0x17e   : > { %3032 = vst.msk [vmem:[#allocation3 + $0xc] sm:$0xf] %vm3028_vm8, %v6703_v63  ;;  %3163 = vrot.lane.b32.xlu2 %v6811_v17, %s5814_s18  ;;  %5471 = vmatmul.msk.bf16.vlgmr.msra.gmra.mxu1 %vm4176_vm1, %v5605_v44  ;;  %v1126_v63 = vld [vmem:[#allocation2 + $0x68] sm:$0x1]  ;;  %v6872_v44 = vld [vmem:[#allocation2 + $0x58] sm:$0xf] }
 0x17f   : > { %3245 = vst.msk [vmem:[#allocation3 + $0xc] sm:$0xf] %vm3241_vm10, %v6675_v32  ;;  %v6837_v32 = vrot.slane %v3380_v18, 5  ;;  %v1127_v6 = vsel %vm6112_vm15, %v882_v46, %v1126_v63  ;;  %v5261_v18 = vrot.slane %v6681_v37, 9  ;;  %v729_v52 = vpack.c.bf16 %v697_v60, %v697_v60  ;;  %v6896_v46 = vld [vmem:[#allocation2 + $0x54] sm:$0xf] }
 0x180   : > { %v6833_v62 = vpop.permute.xlu2 %3155  ;;  %1128 = vst [vmem:[#allocation2 + $0x68] sm:$0x1] %v1127_v6  ;;  %v2421_v37 = vshll.u32 %v6855_v43, 16  ;;  %v2419_v6 = vrot.slane %v2418_v45, 4  ;;  %v3395_v13 = vshrl.u32 %v6896_v46, 16  ;;  %v3398_v16 = vshll.u32 %v6896_v46, 16 }
 0x181   : > { %v3383_v39 = vsel %vm6009_vm9, %v3378_v28, %v6837_v32  ;;  %1253 = vst.msk [vmem:[#allocation3 + $0x3c] sm:$0xf] %vm8656_vm2, %v6872_v44  ;;  %v579_v28 = vpop.f32.mrf.mxu0  ;;  %v892_v24 = vshrl.u32 %v729_v52, 16  ;;  %v895_v49 = vshll.u32 %v729_v52, 16  ;;  %v1882_v34 = vsel %vm5951_vm6, %v5261_v18, %v1881_v10 }
 0x182   : > { %3672 = vrot.lane.b32.xlu1 %v3369_v4, %s5815_s19  ;;  %v633_v63 = vmul.f32 %v6628_v47, %v579_v28  ;;  %v3397_v12 = vrot.slane %v3395_v13, 4  ;;  %v3400_v18 = vrot.slane %v3398_v16, 5  ;;  %v1439_v52 = vrot.slane %v1437_v0, 5 }
 0x183   : > { %3674 = vrot.lane.b32.xlu0 %v3383_v39, %s5815_s19  ;;  %v894_v7 = vrot.slane %v892_v24, 7  ;;  %v3384_v39 = vshrl.u32 %v6811_v17, 16  ;;  %v3834_v45 = vsel %vm5951_vm6, %v5387_v9, %v3833_v29  ;;  %v2859_v28 = vrot.slane %v2857_v3, 4 }
 0x184   : > { %v3154_v21 = vpop.permute.xlu1 %3153  ;;  %v666_v5 = vadd.f32 %v6642_v38, %v633_v63  ;;  %v3390_v17 = vshll.u32 %v6851_v14, 16  ;;  %v1455_v14 = vshrl.u32 %v6872_v44, 16  ;;  %v1445_v16 = vshll.u32 %v6882_v11, 16 }
 0x185   : > { %v2684_v54 = vpop.permute.xlu0 %2683  ;;  %v897_v1 = vor.u32 %v895_v49, %v894_v7  ;;  %v899_v15 = vrot.slane %v894_v7, 4  ;;  %v3386_v33 = vrot.slane %v3384_v39, 4  ;;  %v1136_v49 = vld [vmem:[#allocation2 + $0x78] sm:$0xf]  ;;  %v2427_v7 = vrot.slane %v2425_v19, 4 }
 0x186   : > { %2776 = vst.msk [vmem:[#allocation3 + $0x10] sm:$0xf] %vm2771_vm7, %v2684_v54  ;;  %2184 = vrot.lane.b32.xlu2 %v6855_v43, %s5811_s15  ;;  %v698_v35 = vmax.f32 %v666_v5, 0.0  ;;  %v5324_v5 = vrot.slane %v6807_v58, 9  ;;  %v6985_v43 = vld [vmem:[#allocation2 + $0x5c] sm:$0x1] }
 0x187   : > { %3033 = vst.msk [vmem:[#allocation3 + $0x10] sm:$0xf] %vm3028_vm8, %v6805_v40  ;;  %v1130_v40 = vsel %vm6099_vm11, %v889_v41, %v1129_v51  ;;  %v898_v54 = vsel %vm6106_vm14, %v890_v2, %v897_v1  ;;  %v1134_v20 = vsel %vm6112_vm15, %v899_v15, %v1133_v59  ;;  %v3387_v24 = vor.u32 %v3386_v33, %v6837_v32 }
 0x188   : > { %3246 = vst.msk [vmem:[#allocation3 + $0x10] sm:$0xf] %vm3241_vm10, %v3154_v21  ;;  %v6867_v26 = vpop.permute.xlu2 %2176  ;;  %v6902_v21 = vrot.slane %v2421_v37, 5  ;;  %v730_v23 = vpack.c.bf16 %v698_v35, %v698_v35  ;;  %v3401_v2 = vor.u32 %v3400_v18, %v3397_v12  ;;  %v1451_v32 = vshll.u32 %v6872_v44, 16 }
 0x189   : > { %1131 = vst [vmem:[#allocation2 + $0x6c] sm:$0xf] %v1130_v40  ;;  %v581_v56 = vpop.f32.mrf.mxu0  ;;  %v1435_v40 = vrot.slane %v1434_v36, 4  ;;  %v3388_v1 = vrot.slane %v3387_v24, 4  ;;  %v3392_v15 = vrot.slane %v3390_v17, 5  ;;  %v1442_v35 = vshrl.u32 %v6882_v11, 16 }
 0x18a   : > { %2693 = vrot.lane.b32.xlu1 %v2410_v27, %s5812_s16  ;;  %v2424_v30 = vsel %vm6009_vm9, %v2419_v6, %v6902_v21  ;;  %1132 = vst.msk [vmem:[#allocation2 + $0x70] sm:$0xf] %vm8656_vm2, %v898_v54  ;;  %v901_v41 = vshrl.u32 %v730_v23, 16  ;;  %v904_v60 = vshll.u32 %v730_v23, 16  ;;  %v634_v27 = vmul.f32 %v6628_v47, %v581_v56 }
 0x18b   : > { %3933 = vrot.lane.b32.xlu0 %v3837_v25, %s5816_s20  ;;  %1135 = vst [vmem:[#allocation2 + $0x74] sm:$0x1] %v1134_v20  ;;  %v3402_v9 = vrot.slane %v3401_v2, 4  ;;  %v6964_v54 = vrot.slane %v1451_v32, 5  ;;  %v1457_v20 = vrot.slane %v1455_v14, 4  ;;  %v2858_v19 = vsel %vm5951_vm6, %v5324_v5, %v2857_v3 }
 0x18c   : > { %v2175_v53 = vpop.permute.xlu1 %2174  ;;  %v667_v37 = vadd.f32 %v6642_v38, %v634_v27  ;;  %v6980_v27 = vld [vmem:[#allocation2 + $0x64] sm:$0xf] }
 0x18d   : > { %2265 = vst.msk [vmem:[#allocation3 + $0x18] sm:$0xf] %vm2258_vm5, %v2175_v53  ;;  %v6890_v4 = vpop.permute.xlu0 %2942  ;;  %v6933_v53 = vrot.slane %v901_v41, 7  ;;  %v1140_v41 = vld [vmem:[#allocation2 + $0x80] sm:$0x1]  ;;  %v1458_v24 = vor.u32 %v1457_v20, %v6964_v54 }
 0x18e   : > { %1973 = vrot.lane.b32.xlu2 %v1882_v34, %s5809_s22  ;;  %v699_v63 = vmax.f32 %v667_v37, 0.0  ;;  %v6949_v34 = vld [vmem:[#allocation2 + $0x58] sm:$0xf]  ;;  %1255 = vst.msk [vmem:[#allocation3 + $0x44] sm:$0xf] %vm8656_vm2, %v6980_v27 }
 0x18f   : > { %v906_v29 = vor.u32 %v904_v60, %v6933_v53  ;;  %v3404_v13 = vshll.u32 %v6949_v34, 16  ;;  %v5352_v20 = vld [vmem:[#allocation2 + $0x5c] sm:$0x1] }
 0x190   : > { %v3924_v10 = vpop.permute.xlu2 %3923  ;;  %v731_v6 = vpack.c.bf16 %v699_v63, %v699_v63 }
 0x191   : > { %v1137_v39 = vsel %vm6099_vm11, %v906_v29, %v1136_v49  ;;  %v584_v0 = vpop.f32.mrf.mxu0 }
 0x192   : > { %3165 = vrot.lane.b32.xlu1 %v6896_v46, %s5814_s18  ;;  %1138 = vst [vmem:[#allocation2 + $0x78] sm:$0xf] %v1137_v39  ;;  %v909_v58 = vshrl.u32 %v731_v6, 16  ;;  %v912_v36 = vshll.u32 %v731_v6, 16  ;;  %v635_v23 = vmul.f32 %v6628_v47, %v584_v0  ;;  %v1459_v6 = vrot.slane %v1458_v24, 4 }
 0x193   : > { %2695 = vrot.lane.b32.xlu0 %v2424_v30, %s5812_s16  ;;  %v907_v30 = vrot.slane %v6933_v53, 4  ;;  %v3840_v0 = vrot.slane %v6949_v34, 5 }
 0x194   : > { %v1672_v51 = vpop.permute.xlu1 %1671  ;;  %v911_v56 = vrot.slane %v909_v58, 7  ;;  %v668_v60 = vadd.f32 %v6642_v38, %v635_v23  ;;  %v7025_v58 = vld [vmem:[#allocation2 + $0x6c] sm:$0xf] }
 0x195   : > { %1761 = vst.msk [vmem:[#allocation3 + $0x1c] sm:$0xf] %vm1753_vm3, %v1672_v51  ;;  %v3667_v25 = vpop.permute.xlu0 %3666  ;;  %v6976_v51 = vld [vmem:[#allocation2 + $0x60] sm:$0xf] }
 0x196   : > { %2053 = vst.msk [vmem:[#allocation3 + $0x1c] sm:$0xf] %vm8655_vm4, %v6766_v31  ;;  %3931 = vrot.lane.b32.xlu2 %v3834_v45, %s5816_s20  ;;  %v2860_v31 = vrot.slane %v6921_v55, 5  ;;  %v914_v3 = vor.u32 %v912_v36, %v911_v56  ;;  %v916_v12 = vrot.slane %v911_v56, 4  ;;  %v700_v45 = vmax.f32 %v668_v60, 0.0 }
 0x197   : > { %2266 = vst.msk [vmem:[#allocation3 + $0x1c] sm:$0xf] %vm2258_vm5, %v6867_v26  ;;  %v1440_v26 = vsel %vm6009_vm9, %v1435_v40, %v1439_v52  ;;  %v3393_v40 = vsel %vm6009_vm9, %v3388_v1, %v3392_v15  ;;  %v6991_v52 = vrot.slane %v3404_v13, 5  ;;  %v5262_v56 = vrot.slane %v6882_v11, 9 }
 0x198   : > { %3759 = vst.msk [vmem:[#allocation3 + $0x10] sm:$0xf] %vm3754_vm12, %v3667_v25  ;;  %v6945_v50 = vpop.permute.xlu2 %2944  ;;  %v2861_v59 = vsel %vm5951_vm6, %v2859_v28, %v2860_v31  ;;  %v2431_v25 = vshll.u32 %v6921_v55, 16  ;;  %v1447_v28 = vrot.slane %v1445_v16, 5  ;;  %v915_v53 = vsel %vm6106_vm14, %v907_v30, %v914_v3 }
 0x199   : > { %4016 = vst.msk [vmem:[#allocation3 + $0x10] sm:$0xf] %vm4011_vm13, %v3924_v10  ;;  %v1141_v37 = vsel %vm6112_vm15, %v916_v12, %v1140_v41  ;;  %v3407_v31 = vsel %vm6009_vm9, %v3402_v9, %v6991_v52  ;;  %v1461_v55 = vshll.u32 %v6985_v43, 16  ;;  %v732_v17 = vpack.c.bf16 %v700_v45, %v700_v45  ;;  %v586_v63 = vpop.f32.mrf.mxu0  ;;  %v7029_v9 = vld [vmem:[#allocation2 + $0x70] sm:$0xf] }
 0x19a   : > { %1683 = vrot.lane.b32.xlu1 %v1440_v26, %s5810_s23  ;;  %1254 = vst.msk [vmem:[#allocation3 + $0x40] sm:$0xf] %vm8656_vm2, %v6976_v51  ;;  %v2433_v2 = vrot.slane %v2431_v25, 5  ;;  %v1888_v41 = vrot.slane %v6872_v44, 5  ;;  %v3843_v25 = vrot.slane %v5352_v20, 5 }
 0x19b   : > { %2954 = vrot.lane.b32.xlu0 %v2861_v59, %s5813_s17  ;;  %1139 = vst.msk [vmem:[#allocation2 + $0x7c] sm:$0xf] %vm8656_vm2, %v915_v53  ;;  %v918_v32 = vshrl.u32 %v732_v17, 16  ;;  %v921_v14 = vshll.u32 %v732_v17, 16  ;;  %v1463_v59 = vrot.slane %v1461_v55, 5  ;;  %v3414_v53 = vshll.u32 %v5352_v20, 16 }
 0x19c   : > { %v3665_v10 = vpop.permute.xlu1 %3664  ;;  %1142 = vst [vmem:[#allocation2 + $0x80] sm:$0x1] %v1141_v37  ;;  %v1147_v37 = vld [vmem:[#allocation2 + $0x8c] sm:$0x1]  ;;  %v1469_v55 = vshll.u32 %v6976_v51, 16 }
 0x19d   : > { %3758 = vst.msk [vmem:[#allocation3 + $0xc] sm:$0xf] %vm3754_vm12, %v3665_v10  ;;  %v6969_v33 = vpop.permute.xlu0 %3925  ;;  %v920_v1 = vrot.slane %v918_v32, 7 }
 0x19e   : > { %4015 = vst.msk [vmem:[#allocation3 + $0xc] sm:$0xf] %vm4011_vm13, %v6823_v42  ;;  %2952 = vrot.lane.b32.xlu2 %v2858_v19, %s5813_s17  ;;  %v2428_v42 = vor.u32 %v2427_v7, %v6902_v21  ;;  %v1444_v21 = vrot.slane %v1442_v35, 4  ;;  %v636_v7 = vmul.f32 %v6628_v47, %v586_v63  ;;  %v3408_v35 = vshrl.u32 %v6949_v34, 16 }
 0x19f   : > { %v923_v13 = vor.u32 %v921_v14, %v920_v1  ;;  %1256 = vst.msk [vmem:[#allocation3 + $0x48] sm:$0xf] %vm8656_vm2, %v7025_v58  ;;  %v924_v11 = vrot.slane %v920_v1, 4  ;;  %v1890_v63 = vrot.slane %v1888_v41, 4  ;;  %v1490_v14 = vshrl.u32 %v7025_v58, 16 }
 0x1a0   : > { %v1674_v18 = vpop.permute.xlu2 %1673  ;;  %v2429_v29 = vrot.slane %v2428_v42, 4  ;;  %v1448_v39 = vor.u32 %v1447_v28, %v1444_v21  ;;  %v669_v15 = vadd.f32 %v6642_v38, %v636_v7  ;;  %1257 = vst.msk [vmem:[#allocation3 + $0x4c] sm:$0xf] %vm8656_vm2, %v7029_v9  ;;  %v3410_v60 = vrot.slane %v3408_v35, 4 }
 0x1a1   : > { %1762 = vst.msk [vmem:[#allocation3 + $0x20] sm:$0xf] %vm1753_vm3, %v1674_v18  ;;  %v589_v45 = vpop.f32.mrf.mxu0  ;;  %v1889_v21 = vsel %vm5951_vm6, %v5262_v56, %v1888_v41  ;;  %v1493_v7 = vshll.u32 %v7025_v58, 16  ;;  %v1471_v1 = vrot.slane %v1469_v55, 5 }
 0x1a2   : > { %3676 = vrot.lane.b32.xlu1 %v3393_v40, %s5815_s19  ;;  %v701_v16 = vmax.f32 %v669_v15, 0.0  ;;  %v1449_v36 = vrot.slane %v1448_v39, 4  ;;  %v3842_v40 = vrot.slane %v3840_v0, 4  ;;  %v3411_v28 = vor.u32 %v3410_v60, %v6991_v52 }
 0x1a3   : > { %3678 = vrot.lane.b32.xlu0 %v3407_v31, %s5815_s19  ;;  %v637_v31 = vmul.f32 %v6628_v47, %v589_v45  ;;  %v1891_v52 = vrot.slane %v6985_v43, 5  ;;  %v1495_v20 = vrot.slane %v1493_v7, 5 }
 0x1a4   : > { %v2686_v49 = vpop.permute.xlu1 %2685  ;;  %v733_v19 = vpack.c.bf16 %v701_v16, %v701_v16  ;;  %v1454_v18 = vsel %vm6009_vm9, %v1449_v36, %v6964_v54  ;;  %v1466_v54 = vshrl.u32 %v6976_v51, 16  ;;  %v3412_v43 = vrot.slane %v3411_v28, 4 }
 0x1a5   : > { %2777 = vst.msk [vmem:[#allocation3 + $0x14] sm:$0xf] %vm2771_vm7, %v2686_v49  ;;  %v5606_v26 = vld [vmem:[#allocation3 + $0x8] sm:$0xff]  ;;  %v2688_v5 = vpop.permute.xlu0 %2687  ;;  %v1892_v35 = vsel %vm5951_vm6, %v1890_v63, %v1891_v52  ;;  %v5263_v16 = vrot.slane %v6976_v51, 9  ;;  %v1895_v36 = vrot.slane %v6980_v27, 5 }
 0x1a6   : > { %3034 = vst.msk [vmem:[#allocation3 + $0x14] sm:$0xf] %vm3028_vm8, %v6890_v4  ;;  %3167 = vrot.lane.b32.xlu2 %v6949_v34, %s5814_s18  ;;  %5472 = vmatmul.msk.bf16.gmra.mxu1 %vm4176_vm1, %v5606_v26  ;;  %v1143_v4 = vld [vmem:[#allocation2 + $0x84] sm:$0xf]  ;;  %v926_v42 = vshrl.u32 %v733_v19, 16  ;;  %v929_v3 = vshll.u32 %v733_v19, 16  ;;  %v670_v26 = vadd.f32 %v6642_v38, %v637_v31 }
 0x1a7   : > { %3247 = vst.msk [vmem:[#allocation3 + $0x14] sm:$0xf] %vm3241_vm10, %v6833_v62  ;;  %v2434_v62 = vsel %vm6009_vm9, %v2429_v29, %v2433_v2  ;;  %v1144_v23 = vsel %vm6099_vm11, %v923_v13, %v1143_v4  ;;  %v3844_v29 = vsel %vm5951_vm6, %v3842_v40, %v3843_v25  ;;  %v1475_v4 = vshll.u32 %v6980_v27, 16  ;;  %v7108_v31 = vld [vmem:[#allocation2 + $0x7c] sm:$0xf] }
 0x1a8   : > { %2778 = vst.msk [vmem:[#allocation3 + $0x18] sm:$0xf] %vm2771_vm7, %v2688_v5  ;;  %v7021_v10 = vpop.permute.xlu2 %1967  ;;  %v928_v44 = vrot.slane %v926_v42, 7  ;;  %v702_v39 = vmax.f32 %v670_v26, 0.0  ;;  %v5388_v42 = vrot.slane %v6896_v46, 9 }
 0x1a9   : > { %3035 = vst.msk [vmem:[#allocation3 + $0x18] sm:$0xf] %vm3028_vm8, %v6945_v50  ;;  %v1464_v50 = vsel %vm6009_vm9, %v1459_v6, %v1463_v59  ;;  %v3416_v6 = vrot.slane %v3414_v53, 5  ;;  %v1468_v59 = vrot.slane %v1466_v54, 4  ;;  %v1477_v51 = vrot.slane %v1475_v4, 5 }
 0x1aa   : > { %2697 = vrot.lane.b32.xlu1 %v2434_v62, %s5812_s16  ;;  %1145 = vst [vmem:[#allocation2 + $0x84] sm:$0xf] %v1144_v23  ;;  %v931_v17 = vor.u32 %v929_v3, %v928_v44  ;;  %v933_v49 = vrot.slane %v928_v44, 4  ;;  %v1479_v62 = vshrl.u32 %v6980_v27, 16  ;;  %v734_v13 = vpack.c.bf16 %v702_v39, %v702_v39  ;;  %v591_v23 = vpop.f32.mrf.mxu0  ;;  %v1150_v46 = vld [vmem:[#allocation2 + $0x90] sm:$0xf] }
 0x1ab   : > { %1687 = vrot.lane.b32.xlu0 %v1464_v50, %s5810_s23  ;;  %v1492_v50 = vrot.slane %v1490_v14, 4  ;;  %v638_v56 = vmul.f32 %v6628_v47, %v591_v23  ;;  %v3417_v60 = vsel %vm6009_vm9, %v3412_v43, %v3416_v6  ;;  %v1472_v3 = vor.u32 %v1471_v1, %v1468_v59  ;;  %1259 = vst.msk [vmem:[#allocation3 + $0x54] sm:$0xf] %vm8656_vm2, %v7108_v31  ;;  %v7118_v63 = vld [vmem:[#allocation2 + $0x78] sm:$0xf] }
 0x1ac   : > { %v1966_v30 = vpop.permute.xlu1 %1965  ;;  %v932_v2 = vsel %vm6106_vm14, %v924_v11, %v931_v17  ;;  %v1148_v32 = vsel %vm6112_vm15, %v933_v49, %v1147_v37  ;;  %v935_v19 = vshrl.u32 %v734_v13, 16  ;;  %v1896_v47 = vsel %vm5951_vm6, %v5263_v16, %v1895_v36  ;;  %v7096_v11 = vld [vmem:[#allocation2 + $0x68] sm:$0x1]  ;;  %1258 = vst.msk [vmem:[#allocation3 + $0x50] sm:$0xf] %vm8656_vm2, %v7118_v63 }
 0x1ad   : > { %2054 = vst.msk [vmem:[#allocation3 + $0x20] sm:$0xf] %vm8655_vm4, %v1966_v30  ;;  %v7043_v12 = vpop.permute.xlu0 %2946  ;;  %v938_v30 = vshll.u32 %v734_v13, 16  ;;  %v1496_v25 = vor.u32 %v1495_v20, %v1492_v50  ;;  %v1473_v53 = vrot.slane %v1472_v3, 4  ;;  %v1499_v37 = vshll.u32 %v7029_v9, 16 }
 0x1ae   : > { %1685 = vrot.lane.b32.xlu2 %v1454_v18, %s5810_s23  ;;  %1146 = vst.msk [vmem:[#allocation2 + $0x88] sm:$0xf] %vm8656_vm2, %v932_v2  ;;  %v1481_v18 = vrot.slane %v1479_v62, 4  ;;  %v7089_v40 = vrot.slane %v935_v19, 7  ;;  %v1485_v17 = vshll.u32 %v7096_v11, 16  ;;  %v1902_v4 = vrot.slane %v7029_v9, 5 }
 0x1af   : > { %1149 = vst [vmem:[#allocation2 + $0x8c] sm:$0x1] %v1148_v32  ;;  %v1497_v34 = vrot.slane %v1496_v25, 4  ;;  %v1478_v14 = vsel %vm6009_vm9, %v1473_v53, %v1477_v51  ;;  %v7125_v7 = vrot.slane %v1499_v37, 5  ;;  %v7131_v39 = vld [vmem:[%s8649_s4] ss:$0 sm:$0xff] }
 0x1b0   : > { %v7055_v24 = vpop.permute.xlu2 %3159  ;;  %v940_v45 = vor.u32 %v938_v30, %v7089_v40  ;;  %v1482_v55 = vor.u32 %v1481_v18, %v1477_v51  ;;  %v1487_v59 = vrot.slane %v1485_v17, 5  ;;  %v941_v1 = vrot.slane %v7089_v40, 4  ;;  %v7143_v62 = vld [vmem:[%s8649_s4 + $0x1] ss:$0 sm:$0xff]  ;;  %v7147_v50 = vld [vmem:[#allocation2 + $0x74] sm:$0x1] }
 0x1b1   : > { %v1154_v19 = vld [vmem:[#allocation2 + $0x98] sm:$0x1]  ;;  %v1897_v30 = vrot.slane %v1895_v36, 4  ;;  %v1904_v27 = vrot.slane %v1902_v4, 4  ;;  %v1905_v36 = vrot.slane %v7147_v50, 5  ;;  %v1523_v17 = vshll.u32 %v7108_v31, 16 }
 0x1b2   : > { %1977 = vrot.lane.b32.xlu1 %v1889_v21, %s5809_s22  ;;  %v7100_v21 = vld [vmem:[#allocation2 + $0x54] sm:$0xf]  ;;  %v1151_v49 = vsel %vm6099_vm11, %v940_v45, %v1150_v46  ;;  %v1483_v6 = vrot.slane %v1482_v55, 4  ;;  %v7164_v40 = vld [vmem:[#allocation2 + $0x58] sm:$0xf] }
 0x1b3   : > { %3937 = vrot.lane.b32.xlu0 %v3844_v29, %s5816_s20  ;;  %1152 = vst [vmem:[#allocation2 + $0x90] sm:$0xf] %v1151_v49  ;;  %v2436_v52 = vshrl.u32 %v7100_v21, 16  ;;  %v2445_v53 = vshll.u32 %v7164_v40, 16  ;;  %v1906_v55 = vsel %vm5951_vm6, %v1904_v27, %v1905_v36  ;;  %v1527_v49 = vshrl.u32 %v7108_v31, 16 }
 0x1b4   : > { %v3158_v5 = vpop.permute.xlu1 %3157 }
 0x1b5   : > { %3248 = vst.msk [vmem:[#allocation3 + $0x18] sm:$0xf] %vm3241_vm10, %v3158_v5  ;;  %v1676_v15 = vpop.permute.xlu0 %1675  ;;  %v2439_v5 = vshll.u32 %v7100_v21, 16  ;;  %v2438_v3 = vrot.slane %v2436_v52, 4  ;;  %v1157_v52 = vld [vmem:[#allocation2 + $0x9c] sm:$0xf] }
 0x1b6   : > { %1763 = vst.msk [vmem:[#allocation3 + $0x24] sm:$0xf] %vm1753_vm3, %v1676_v15  ;;  %1979 = vrot.lane.b32.xlu2 %v1892_v35, %s5809_s22  ;;  %v1502_v35 = vsel %vm6009_vm9, %v1497_v34, %v7125_v7 }
 0x1b7   : > { %2055 = vst.msk [vmem:[#allocation3 + $0x24] sm:$0xf] %vm8655_vm4, %v7021_v10  ;;  %v671_v10 = vadd.f32 %v6642_v38, %v638_v56  ;;  %v3841_v38 = vsel %vm5951_vm6, %v5388_v42, %v3840_v0  ;;  %v594_v0 = vpop.f32.mrf.mxu0  ;;  %v1898_v56 = vrot.slane %v7096_v11, 5  ;;  %v1488_v42 = vsel %vm6009_vm9, %v1483_v6, %v1487_v59 }
 0x1b8   : > { %v2181_v41 = vpop.permute.xlu2 %2180  ;;  %v639_v43 = vmul.f32 %v7131_v39, %v594_v0  ;;  %v2441_v51 = vrot.slane %v2439_v5, 5  ;;  %v2449_v0 = vshrl.u32 %v7164_v40, 16  ;;  %v1514_v5 = vshrl.u32 %v7118_v63, 16 }
 0x1b9   : > { %2268 = vst.msk [vmem:[#allocation3 + $0x24] sm:$0xf] %vm2258_vm5, %v2181_v41  ;;  %v703_v28 = vmax.f32 %v671_v10, 0.0  ;;  %v1899_v46 = vsel %vm5951_vm6, %v1897_v30, %v1898_v56  ;;  %v1509_v56 = vshll.u32 %v7147_v50, 16 }
 0x1ba   : > { %3680 = vrot.lane.b32.xlu1 %v3417_v60, %s5815_s19  ;;  %v672_v13 = vadd.f32 %v7143_v62, %v639_v43  ;;  %v1517_v43 = vshll.u32 %v7118_v63, 16 }
 0x1bb   : > { %1981 = vrot.lane.b32.xlu0 %v1896_v47, %s5809_s22  ;;  %v735_v29 = vpack.c.bf16 %v703_v28, %v703_v28 }
 0x1bc   : > { %v2179_v44 = vpop.permute.xlu1 %2178  ;;  %v704_v41 = vmax.f32 %v672_v13, 0.0  ;;  %v7200_v13 = vld [vmem:[#allocation2 + $0x80] sm:$0x1] }
 0x1bd   : > { %2267 = vst.msk [vmem:[#allocation3 + $0x20] sm:$0xf] %vm2258_vm5, %v2179_v44  ;;  %v7110_v54 = vpop.permute.xlu0 %1969  ;;  %v943_v26 = vshrl.u32 %v735_v29, 16  ;;  %v946_v2 = vshll.u32 %v735_v29, 16  ;;  %v1503_v44 = vshrl.u32 %v7029_v9, 16 }
 0x1be   : > { %3935 = vrot.lane.b32.xlu2 %v3841_v38, %s5816_s20  ;;  %v736_v10 = vpack.c.bf16 %v704_v41, %v704_v41  ;;  %v2442_v38 = vor.u32 %v2441_v51, %v2438_v3  ;;  %v1516_v41 = vrot.slane %v1514_v5, 4  ;;  %v7215_v51 = vld [vmem:[#allocation2 + $0x88] sm:$0xf] }
 0x1bf   : > { %v945_v15 = vrot.slane %v943_v26, 7  ;;  %v596_v47 = vpop.f32.mrf.mxu0  ;;  %1261 = vst.msk [vmem:[#allocation3 + $0x5c] sm:$0xf] %vm8656_vm2, %v7215_v51 }
 0x1c0   : > { %v3928_v32 = vpop.permute.xlu2 %3927  ;;  %v640_v25 = vmul.f32 %v7131_v39, %v596_v47  ;;  %v952_v45 = vshrl.u32 %v736_v10, 16  ;;  %v955_v28 = vshll.u32 %v736_v10, 16  ;;  %v2443_v59 = vrot.slane %v2442_v38, 4  ;;  %v1161_v10 = vld [vmem:[#allocation2 + $0xa4] sm:$0x1] }
 0x1c1   : > { %v948_v20 = vor.u32 %v946_v2, %v945_v15  ;;  %v950_v23 = vrot.slane %v945_v15, 4  ;;  %v5264_v15 = vrot.slane %v7025_v58, 9  ;;  %v2451_v47 = vrot.slane %v2449_v0, 4  ;;  %v5291_v38 = vld [vmem:[#allocation2 + $0x5c] sm:$0x1] }
 0x1c2   : > { %1689 = vrot.lane.b32.xlu1 %v1478_v14, %s5810_s23  ;;  %v673_v37 = vadd.f32 %v7143_v62, %v640_v25  ;;  %v954_v29 = vrot.slane %v952_v45, 7 }
 0x1c3   : > { %1693 = vrot.lane.b32.xlu0 %v1502_v35, %s5810_s23  ;;  %v949_v18 = vsel %vm6106_vm14, %v941_v1, %v948_v20  ;;  %v7192_v1 = vrot.slane %v2445_v53, 5  ;;  %v1903_v45 = vsel %vm5951_vm6, %v5264_v15, %v1902_v4 }
 0x1c4   : > { %v3669_v16 = vpop.permute.xlu1 %3668  ;;  %1153 = vst.msk [vmem:[#allocation2 + $0x94] sm:$0xf] %vm8656_vm2, %v949_v18  ;;  %v705_v26 = vmax.f32 %v673_v37, 0.0  ;;  %v957_v14 = vor.u32 %v955_v28, %v954_v29  ;;  %v1533_v18 = vshll.u32 %v7200_v13, 16 }
 0x1c5   : > { %3760 = vst.msk [vmem:[#allocation3 + $0x14] sm:$0xf] %vm3754_vm12, %v3669_v16  ;;  %v3671_v60 = vpop.permute.xlu0 %3670  ;;  %v7202_v16 = vrot.slane %v1523_v17, 5 }
 0x1c6   : > { %4017 = vst.msk [vmem:[#allocation3 + $0x14] sm:$0xf] %vm4011_vm13, %v6969_v33  ;;  %1691 = vrot.lane.b32.xlu2 %v1488_v42, %s5810_s23  ;;  %v1155_v33 = vsel %vm6112_vm15, %v950_v23, %v1154_v19  ;;  %v737_v35 = vpack.c.bf16 %v705_v26, %v705_v26  ;;  %v1158_v20 = vsel %vm6099_vm11, %v957_v14, %v1157_v52  ;;  %v7206_v19 = vld [vmem:[#allocation2 + $0x84] sm:$0xf]  ;;  %v958_v42 = vrot.slane %v954_v29, 4 }
 0x1c7   : > { %3761 = vst.msk [vmem:[#allocation3 + $0x18] sm:$0xf] %vm3754_vm12, %v3671_v60  ;;  %v1519_v60 = vrot.slane %v1517_v43, 5  ;;  %v2452_v29 = vor.u32 %v2451_v47, %v7192_v1  ;;  %v7249_v26 = vld [vmem:[#allocation2 + $0x90] sm:$0xf]  ;;  %v5265_v47 = vrot.slane %v7118_v63, 9 }
 0x1c8   : > { %4018 = vst.msk [vmem:[#allocation3 + $0x18] sm:$0xf] %vm4011_vm13, %v3928_v32  ;;  %v7170_v11 = vpop.permute.xlu2 %2948  ;;  %v1505_v32 = vrot.slane %v1503_v44, 4  ;;  %v960_v23 = vshrl.u32 %v737_v35, 16  ;;  %v963_v58 = vshll.u32 %v737_v35, 16  ;;  %v1909_v35 = vrot.slane %v7108_v31, 5 }
 0x1c9   : > { %1156 = vst [vmem:[#allocation2 + $0x98] sm:$0x1] %v1155_v33  ;;  %v1520_v28 = vor.u32 %v1519_v60, %v1516_v41  ;;  %v2453_v43 = vrot.slane %v2452_v29, 4  ;;  %v1541_v31 = vshll.u32 %v7206_v19, 16 }
 0x1ca   : > { %1983 = vrot.lane.b32.xlu1 %v1899_v46, %s5809_s22  ;;  %1159 = vst [vmem:[#allocation2 + $0x9c] sm:$0xf] %v1158_v20  ;;  %v962_v3 = vrot.slane %v960_v23, 7  ;;  %v1511_v46 = vrot.slane %v1509_v56, 5  ;;  %v2867_v23 = vrot.slane %v5291_v38, 5 }
 0x1cb   : > { %1987 = vrot.lane.b32.xlu0 %v1906_v55, %s5809_s22  ;;  %1260 = vst.msk [vmem:[#allocation3 + $0x58] sm:$0xf] %vm8656_vm2, %v7206_v19  ;;  %v1535_v55 = vrot.slane %v1533_v18, 5  ;;  %v1521_v0 = vrot.slane %v1520_v28, 4  ;;  %v1551_v28 = vshrl.u32 %v7215_v51, 16 }
 0x1cc   : > { %v2690_v34 = vpop.permute.xlu1 %2689  ;;  %v965_v36 = vor.u32 %v963_v58, %v962_v3  ;;  %v967_v33 = vrot.slane %v962_v3, 4  ;;  %1262 = vst.msk [vmem:[#allocation3 + $0x60] sm:$0xf] %vm8656_vm2, %v7249_v26  ;;  %v1912_v3 = vrot.slane %v7200_v13, 5 }
 0x1cd   : > { %2779 = vst.msk [vmem:[#allocation3 + $0x1c] sm:$0xf] %vm2771_vm7, %v2690_v34  ;;  %v5607_v2 = vld [vmem:[#allocation3 + $0x10] sm:$0xff]  ;;  %v7190_v6 = vpop.permute.xlu0 %3929  ;;  %v2455_v34 = vshll.u32 %v5291_v38, 16  ;;  %v1526_v15 = vsel %vm6009_vm9, %v1521_v0, %v7202_v16 }
 0x1ce   : > { %3036 = vst.msk [vmem:[#allocation3 + $0x1c] sm:$0xf] %vm3028_vm8, %v7043_v12  ;;  %2188 = vrot.lane.b32.xlu2 %v7164_v40, %s5811_s15  ;;  %5473 = vmatmul.msk.bf16.gmra.mxu1 %vm4176_vm1, %v5607_v2  ;;  %v1529_v12 = vrot.slane %v1527_v49, 4  ;;  %v966_v53 = vsel %vm6106_vm14, %v958_v42, %v965_v36  ;;  %v1911_v42 = vrot.slane %v1909_v35, 4  ;;  %v1562_v36 = vshrl.u32 %v7249_v26, 16 }
 0x1cf   : > { %3249 = vst.msk [vmem:[#allocation3 + $0x1c] sm:$0xf] %vm3241_vm10, %v7055_v24  ;;  %v1506_v24 = vor.u32 %v1505_v32, %v7125_v7  ;;  %v2448_v7 = vsel %vm6009_vm9, %v2443_v59, %v7192_v1  ;;  %v7254_v32 = vld [vmem:[#allocation2 + $0x94] sm:$0xf]  ;;  %v2457_v59 = vrot.slane %v2455_v34, 5 }
 0x1d0   : > { %v1680_v30 = vpop.permute.xlu2 %1679  ;;  %v1530_v50 = vor.u32 %v1529_v12, %v7202_v16  ;;  %1160 = vst.msk [vmem:[#allocation2 + $0xa0] sm:$0xf] %vm8656_vm2, %v966_v53  ;;  %v1538_v16 = vshrl.u32 %v7206_v19, 16  ;;  %v1913_v53 = vsel %vm5951_vm6, %v1911_v42, %v1912_v3 }
 0x1d1   : > { %1765 = vst.msk [vmem:[#allocation3 + $0x2c] sm:$0xf] %vm1753_vm3, %v1680_v30  ;;  %v1507_v25 = vrot.slane %v1506_v24, 4  ;;  %v2458_v60 = vsel %vm6009_vm9, %v2453_v43, %v2457_v59  ;;  %v1553_v43 = vrot.slane %v1551_v28, 4  ;;  %v7307_v59 = vld [vmem:[#allocation2 + $0x8c] sm:$0x1] }
 0x1d2   : > { %2186 = vrot.lane.b32.xlu1 %v7100_v21, %s5811_s15  ;;  %v1531_v37 = vrot.slane %v1530_v50, 4  ;;  %1263 = vst.msk [vmem:[#allocation3 + $0x64] sm:$0xf] %vm8656_vm2, %v7254_v32 }
 0x1d3   : > { %2699 = vrot.lane.b32.xlu0 %v2448_v7, %s5812_s16  ;;  %v1512_v49 = vsel %vm6009_vm9, %v1507_v25, %v1511_v46  ;;  %v1540_v46 = vrot.slane %v1538_v16, 4 }
 0x1d4   : > { %v1678_v27 = vpop.permute.xlu1 %1677  ;;  %v599_v17 = vpop.f32.mrf.mxu0  ;;  %v1536_v2 = vsel %vm6009_vm9, %v1531_v37, %v1535_v55  ;;  %v5325_v37 = vrot.slane %v7100_v21, 9 }
 0x1d5   : > { %1764 = vst.msk [vmem:[#allocation3 + $0x28] sm:$0xf] %vm1753_vm3, %v1678_v27  ;;  %v2692_v44 = vpop.permute.xlu0 %2691  ;;  %v641_v9 = vmul.f32 %v7131_v39, %v599_v17  ;;  %v1164_v27 = vld [vmem:[#allocation2 + $0xa8] sm:$0xf]  ;;  %v1916_v17 = vrot.slane %v7215_v51, 5 }
 0x1d6   : > { %2056 = vst.msk [vmem:[#allocation3 + $0x28] sm:$0xf] %vm8655_vm4, %v7110_v54  ;;  %1985 = vrot.lane.b32.xlu2 %v1903_v45, %s5809_s22  ;;  %v1162_v54 = vsel %vm6112_vm15, %v967_v33, %v1161_v10  ;;  %v1565_v33 = vshll.u32 %v7249_v26, 16  ;;  %v1547_v45 = vshll.u32 %v7215_v51, 16 }
 0x1d7   : > { %2780 = vst.msk [vmem:[#allocation3 + $0x20] sm:$0xf] %vm2771_vm7, %v2692_v44  ;;  %v674_v52 = vadd.f32 %v7143_v62, %v641_v9  ;;  %v1543_v44 = vrot.slane %v1541_v31, 5  ;;  %v1564_v9 = vrot.slane %v1562_v36, 4  ;;  %v1571_v31 = vshll.u32 %v7254_v32, 16 }
 0x1d8   : > { %3037 = vst.msk [vmem:[#allocation3 + $0x20] sm:$0xf] %vm3028_vm8, %v7170_v11  ;;  %v7241_v4 = vpop.permute.xlu2 %3163  ;;  %v2864_v11 = vrot.slane %v7164_v40, 5 }
 0x1d9   : > { %1163 = vst [vmem:[#allocation2 + $0xa4] sm:$0x1] %v1162_v54  ;;  %v706_v5 = vmax.f32 %v674_v52, 0.0  ;;  %v5266_v54 = vrot.slane %v7206_v19, 9 }
 0x1da   : > { %1695 = vrot.lane.b32.xlu1 %v1512_v49, %s5810_s23  ;;  %v2866_v20 = vrot.slane %v2864_v11, 4  ;;  %v1567_v49 = vrot.slane %v1565_v33, 5  ;;  %v5623_v33 = vld [vmem:[%s5922_s21] sm:$0xff] }
 0x1db   : > { %1699 = vrot.lane.b32.xlu0 %v1536_v2, %s5810_s23  ;;  %v738_v12 = vpack.c.bf16 %v706_v5, %v706_v5  ;;  %v1910_v2 = vsel %vm5951_vm6, %v5265_v47, %v1909_v35  ;;  %v1549_v5 = vrot.slane %v1547_v45, 5  ;;  %v2865_v35 = vsel %vm5951_vm6, %v5325_v37, %v2864_v11  ;;  %v7339_v47 = vld [vmem:[#allocation2 + $0x60] sm:$0xf]  ;;  %v7351_v37 = vld [vmem:[#allocation2 + $0x9c] sm:$0xf] }
 0x1dc   : > { %v1972_v14 = vpop.permute.xlu1 %1971  ;;  %v601_v58 = vpop.f32.mrf.mxu0  ;;  %v2868_v18 = vsel %vm5951_vm6, %v2866_v20, %v2867_v23  ;;  %v1917_v20 = vsel %vm5951_vm6, %v5266_v54, %v1916_v17  ;;  %v1568_v23 = vor.u32 %v1567_v49, %v1564_v9  ;;  %v7342_v45 = vld [vmem:[#allocation2 + $0xa0] sm:$0xf]  ;;  %1264 = vst.msk [vmem:[#allocation3 + $0x68] sm:$0xf] %vm8656_vm2, %v7351_v37  ;;  %v1923_v49 = vrot.slane %v7254_v32, 5 }
 0x1dd   : > { %2057 = vst.msk [vmem:[#allocation3 + $0x2c] sm:$0xf] %vm8655_vm4, %v1972_v14  ;;  %v7262_v1 = vpop.permute.xlu0 %2950  ;;  %v969_v30 = vshrl.u32 %v738_v12, 16  ;;  %v972_v24 = vshll.u32 %v738_v12, 16  ;;  %v642_v56 = vmul.f32 %v7131_v39, %v601_v58  ;;  %v1544_v14 = vor.u32 %v1543_v44, %v1540_v46  ;;  %v1168_v58 = vld [vmem:[#allocation2 + $0xb0] sm:$0x1] }
 0x1de   : > { %1697 = vrot.lane.b32.xlu2 %v1526_v15, %s5810_s23  ;;  %v1554_v42 = vor.u32 %v1553_v43, %v1549_v5  ;;  %1265 = vst.msk [vmem:[#allocation3 + $0x6c] sm:$0xf] %vm8656_vm2, %v7342_v45  ;;  %v1925_v51 = vrot.slane %v1923_v49, 4 }
 0x1df   : > { %v7279_v7 = vrot.slane %v969_v30, 7  ;;  %v675_v50 = vadd.f32 %v7143_v62, %v642_v56  ;;  %v4432_v30 = vld [vmem:[%s8648_s3] sm:$0x3]  ;;  %v1545_v11 = vrot.slane %v1544_v14, 4  ;;  %v1918_v14 = vrot.slane %v1916_v17, 4 }
 0x1e0   : > { %v2185_v41 = vpop.permute.xlu2 %2184  ;;  %v4483_v16 = vsel %vm4225_vm0, %v4432_v30, 0  ;;  %vm8671_vm0 = vcmask 64512  }
 0x1e1   : > { %2270 = vst.msk [vmem:[#allocation3 + $0x2c] sm:$0xf] %vm2258_vm5, %v2185_v41  ;;  %v974_v25 = vor.u32 %v972_v24, %v7279_v7  ;;  %v707_v13 = vmax.f32 %v675_v50, 0.0  ;;  %v975_v19 = vrot.slane %v7279_v7, 4  ;;  %v4677_v24 = vld [vmem:[%s8651_s6] sm:$0xf]  ;;  %4492 = vmatpush.bf16.msra.mxu2 %v4483_v16 }
 0x1e2   : > { %2701 = vrot.lane.b32.xlu1 %v2458_v60, %s5812_s16  ;;  %v1557_v50 = vshll.u32 %v7307_v59, 16 }
 0x1e3   : > { %2958 = vrot.lane.b32.xlu0 %v2868_v18, %s5813_s17  ;;  %v1165_v63 = vsel %vm6099_vm11, %v974_v25, %v1164_v27  ;;  %v739_v55 = vpack.c.bf16 %v707_v13, %v707_v13 }
 0x1e4   : > { %v3162_v10 = vpop.permute.xlu1 %3161  ;;  %v604_v29 = vpop.f32.mrf.mxu0  ;;  %1166 = vst [vmem:[#allocation2 + $0xa8] sm:$0xf] %v1165_v63  ;;  %v1555_v63 = vrot.slane %v1554_v42, 4  ;;  %v1599_v42 = vshrl.u32 %v7342_v45, 16 }
 0x1e5   : > { %3250 = vst.msk [vmem:[#allocation3 + $0x20] sm:$0xf] %vm3241_vm10, %v3162_v10  ;;  %v1682_v38 = vpop.permute.xlu0 %1681  ;;  %v977_v34 = vshrl.u32 %v739_v55, 16  ;;  %v980_v0 = vshll.u32 %v739_v55, 16  ;;  %v643_v21 = vmul.f32 %v7131_v39, %v604_v29  ;;  %v1569_v10 = vrot.slane %v1568_v23, 4 }
 0x1e6   : > { %1766 = vst.msk [vmem:[#allocation3 + $0x30] sm:$0xf] %vm1753_vm3, %v1682_v38  ;;  %1991 = vrot.lane.b32.xlu2 %v1913_v53, %s5809_s22  ;;  %v1550_v38 = vsel %vm6009_vm9, %v1545_v11, %v1549_v5  ;;  %v7346_v53 = vrot.slane %v1571_v31, 5  ;;  %v1559_v55 = vrot.slane %v1557_v50, 5  ;;  %v3419_v29 = vshrl.u32 %v7339_v47, 16 }
 0x1e7   : > { %v979_v15 = vrot.slane %v977_v34, 7  ;;  %v676_v12 = vadd.f32 %v7143_v62, %v643_v21  ;;  %v3422_v34 = vshll.u32 %v7339_v47, 16  ;;  %v1919_v5 = vrot.slane %v7307_v59, 5  ;;  %v1175_v11 = vld [vmem:[#allocation2 + $0xbc] sm:$0x1] }
 0x1e8   : > { %v1974_v52 = vpop.permute.xlu2 %1973  ;;  %v1574_v9 = vsel %vm6009_vm9, %v1569_v10, %v7346_v53  ;;  %v1595_v31 = vshll.u32 %v7342_v45, 16 }
 0x1e9   : > { %2058 = vst.msk [vmem:[#allocation3 + $0x30] sm:$0xf] %vm8655_vm4, %v1974_v52  ;;  %v982_v41 = vor.u32 %v980_v0, %v979_v15  ;;  %v984_v60 = vrot.slane %v979_v15, 4  ;;  %v708_v40 = vmax.f32 %v676_v12, 0.0  ;;  %vm8670_vm4 = vcmask 1043456  }
 0x1ea   : > { %1989 = vrot.lane.b32.xlu1 %v1910_v2, %s5809_s22  ;;  %v4809_v3 = vsel %vm8670_vm4, %v4677_v24, 0  ;;  %v1171_v0 = vld [vmem:[#allocation2 + $0xb4] sm:$0xf]  ;;  %v7364_v52 = vld [vmem:[#allocation2 + $0x98] sm:$0x1]  ;;  %v3424_v59 = vrot.slane %v3422_v34, 5  ;;  %v1920_v30 = vsel %vm5951_vm6, %v1918_v14, %v1919_v5 }
 0x1eb   : > { %1993 = vrot.lane.b32.xlu0 %v1917_v20, %s5809_s22  ;;  %v983_v18 = vsel %vm6106_vm14, %v975_v19, %v982_v41  ;;  %v1169_v27 = vsel %vm6112_vm15, %v984_v60, %v1168_v58  ;;  %v740_v36 = vpack.c.bf16 %v708_v40, %v708_v40  ;;  %4818 = vmatpush.bf16.msra.mxu3 %v4809_v3  ;;  %v7374_v15 = vld [vmem:[#allocation2 + $0x64] sm:$0xf]  ;;  %v1926_v17 = vrot.slane %v7364_v52, 5 }
 0x1ec   : > { %v2183_v56 = vpop.permute.xlu1 %2182  ;;  %1167 = vst.msk [vmem:[#allocation2 + $0xac] sm:$0xf] %vm8656_vm2, %v983_v18  ;;  %v606_v25 = vpop.f32.mrf.mxu0  ;;  %v1560_v19 = vsel %vm6009_vm9, %v1555_v63, %v1559_v55  ;;  %v1575_v24 = vshrl.u32 %v7254_v32, 16  ;;  %v3428_v41 = vshll.u32 %v7374_v15, 16  ;;  %v3432_v18 = vshrl.u32 %v7374_v15, 16 }
 0x1ed   : > { %2269 = vst.msk [vmem:[#allocation3 + $0x28] sm:$0xf] %vm2258_vm5, %v2183_v56  ;;  %v7329_v7 = vpop.permute.xlu0 %1975  ;;  %v986_v13 = vshrl.u32 %v740_v36, 16  ;;  %v989_v46 = vshll.u32 %v740_v36, 16  ;;  %v644_v44 = vmul.f32 %v7131_v39, %v606_v25  ;;  %v1927_v40 = vsel %vm5951_vm6, %v1925_v51, %v1926_v17 }
 0x1ee   : > { %2956 = vrot.lane.b32.xlu2 %v2865_v35, %s5813_s17  ;;  %1170 = vst [vmem:[#allocation2 + $0xb0] sm:$0x1] %v1169_v27  ;;  %5567 = vmatmul.msk.bf16.vlgmr.msra.gmra.mxu3 %vm8671_vm0, %v5623_v33  ;;  %v7401_v33 = vld [vmem:[%s8649_s4 + $0x2] ss:$0 sm:$0xff]  ;;  %v1577_v25 = vrot.slane %v1575_v24, 4  ;;  %v3430_v63 = vrot.slane %v3428_v41, 5 }
 0x1ef   : > { %v988_v39 = vrot.slane %v986_v13, 7  ;;  %v677_v54 = vadd.f32 %v7143_v62, %v644_v44  ;;  %v7418_v55 = vrot.slane %v1595_v31, 5  ;;  %v5267_v34 = vrot.slane %v7249_v26, 9 }
 0x1f0   : > { %v3932_v28 = vpop.permute.xlu2 %3931  ;;  %vm4433_vm4 = vcmask 31744   ;;  %vm8672_vm0 = vcmask 93248  }
 0x1f1   : > { %v991_v62 = vor.u32 %v989_v46, %v988_v39  ;;  %v709_v2 = vmax.f32 %v677_v54, 0.0  ;;  %v992_v56 = vrot.slane %v988_v39, 4  ;;  %v1601_v39 = vrot.slane %v1599_v42, 4  ;;  %v7423_v54 = vld [vmem:[%s8649_s4 + $0x3] ss:$0 sm:$0xff] }
 0x1f2   : > { %1701 = vrot.lane.b32.xlu1 %v1550_v38, %s5810_s23  ;;  %v1589_v38 = vshll.u32 %v7351_v37, 16  ;;  %v3847_v42 = vrot.slane %v7374_v15, 5 }
 0x1f3   : > { %1705 = vrot.lane.b32.xlu0 %v1574_v9, %s5810_s23  ;;  %v1172_v12 = vsel %vm6099_vm11, %v991_v62, %v1171_v0  ;;  %v741_v20 = vpack.c.bf16 %v709_v2, %v709_v2  ;;  %v7426_v9 = vld [vmem:[#allocation2 + $0xa4] sm:$0x1]  ;;  %v1578_v0 = vor.u32 %v1577_v25, %v7346_v53  ;;  %v7434_v62 = vld [vmem:[#allocation2 + $0xa8] sm:$0xf]  ;;  %v7438_v5 = vld [vmem:[#allocation2 + $0xac] sm:$0xf]  ;;  %v1602_v53 = vor.u32 %v1601_v39, %v7418_v55 }
 0x1f4   : > { %v3673_v21 = vpop.permute.xlu1 %3672  ;;  %1173 = vst [vmem:[#allocation2 + $0xb4] sm:$0xf] %v1172_v12  ;;  %v1591_v14 = vrot.slane %v1589_v38, 5  ;;  %v1930_v25 = vrot.slane %v7342_v45, 5 }
 0x1f5   : > { %3762 = vst.msk [vmem:[#allocation3 + $0x1c] sm:$0xf] %vm3754_vm12, %v3673_v21  ;;  %v3675_v43 = vpop.permute.xlu0 %3674  ;;  %v994_v35 = vshrl.u32 %v741_v20, 16  ;;  %v997_v23 = vshll.u32 %v741_v20, 16  ;;  %v1581_v21 = vshll.u32 %v7364_v52, 16  ;;  %v1605_v52 = vshll.u32 %v7426_v9, 16 }
 0x1f6   : > { %4019 = vst.msk [vmem:[#allocation3 + $0x1c] sm:$0xf] %vm4011_vm13, %v7190_v6  ;;  %1703 = vrot.lane.b32.xlu2 %v1560_v19, %s5810_s23  ;;  %v3421_v6 = vrot.slane %v3419_v29, 4  ;;  %v1579_v17 = vrot.slane %v1578_v0, 4 }
 0x1f7   : > { %3763 = vst.msk [vmem:[#allocation3 + $0x20] sm:$0xf] %vm3754_vm12, %v3675_v43  ;;  %v996_v60 = vrot.slane %v994_v35, 7  ;;  %v3434_v43 = vrot.slane %v3432_v18, 4  ;;  %v1607_v41 = vrot.slane %v1605_v52, 5  ;;  %v5269_v52 = vrot.slane %v7434_v62, 9 }
 0x1f8   : > { %4020 = vst.msk [vmem:[#allocation3 + $0x20] sm:$0xf] %vm4011_vm13, %v3932_v28  ;;  %v7384_v58 = vpop.permute.xlu2 %2952  ;;  %v3425_v16 = vor.u32 %v3424_v59, %v3421_v6  ;;  %v1586_v28 = vshrl.u32 %v7351_v37, 16  ;;  %v1583_v6 = vrot.slane %v1581_v21, 5  ;;  %v5355_v59 = vld [vmem:[#allocation2 + $0x68] sm:$0x1] }
 0x1f9   : > { %v999_v27 = vor.u32 %v997_v23, %v996_v60  ;;  %v1001_v36 = vrot.slane %v996_v60, 4  ;;  %1266 = vst.msk [vmem:[#allocation3 + $0x70] sm:$0xf] %vm8656_vm2, %v7434_v62  ;;  %v1924_v23 = vsel %vm5951_vm6, %v5267_v34, %v1923_v49  ;;  %v3438_v60 = vshll.u32 %v5355_v59, 16 }
 0x1fa   : > { %1995 = vrot.lane.b32.xlu1 %v1920_v30, %s5809_s22  ;;  %v1588_v2 = vrot.slane %v1586_v28, 4  ;;  %1267 = vst.msk [vmem:[#allocation3 + $0x74] sm:$0xf] %vm8656_vm2, %v7438_v5  ;;  %v1584_v49 = vsel %vm6009_vm9, %v1579_v17, %v1583_v6  ;;  %v3850_v28 = vrot.slane %v5355_v59, 5  ;;  %v5268_v21 = vrot.slane %v7351_v37, 9 }
 0x1fb   : > { %1999 = vrot.lane.b32.xlu0 %v1927_v40, %s5809_s22  ;;  %v4238_v50 = vpop.f32.mrf.mxu1  ;;  %v1000_v46 = vsel %vm6106_vm14, %v992_v56, %v999_v27  ;;  %v1176_v44 = vsel %vm6112_vm15, %v1001_v36, %v1175_v11  ;;  %v1603_v56 = vrot.slane %v1602_v53, 4  ;;  %v3435_v11 = vor.u32 %v3434_v43, %v3430_v63  ;;  %v5624_v53 = vld [vmem:[%s5922_s21 + $0x8] sm:$0xff] }
 0x1fc   : > { %v2694_v3 = vpop.permute.xlu1 %2693  ;;  %1174 = vst.msk [vmem:[#allocation2 + $0xb8] sm:$0xf] %vm8656_vm2, %v1000_v46  ;;  %v1592_v30 = vor.u32 %v1591_v14, %v1588_v2  ;;  %v3440_v27 = vrot.slane %v3438_v60, 5  ;;  %v7477_v46 = vld [vmem:[#allocation2 + $0xb4] sm:$0xf]  ;;  %v1619_v14 = vshll.u32 %v7438_v5, 16 }
 0x1fd   : > { %2781 = vst.msk [vmem:[#allocation3 + $0x24] sm:$0xf] %vm2771_vm7, %v2694_v3  ;;  %v5608_v10 = vld [vmem:[#allocation3 + $0x18] sm:$0xff]  ;;  %v7405_v13 = vpop.permute.xlu0 %3933  ;;  %v3436_v18 = vrot.slane %v3435_v11, 4  ;;  %v1937_v37 = vrot.slane %v7438_v5, 5  ;;  %v1613_v17 = vshll.u32 %v7434_v62, 16 }
 0x1fe   : > { %3038 = vst.msk [vmem:[#allocation3 + $0x24] sm:$0xf] %vm3028_vm8, %v7262_v1  ;;  %3171 = vrot.lane.b32.xlu2 %v7374_v15, %s5814_s18  ;;  %5474 = vmatmul.msk.bf16.gmra.mxu1 %vm4176_vm1, %v5608_v10  ;;  %v3426_v1 = vrot.slane %v3425_v16, 4  ;;  %v1593_v31 = vrot.slane %v1592_v30, 4  ;;  %v5389_v6 = vrot.slane %v7339_v47, 9  ;;  %v1621_v59 = vrot.slane %v1619_v14, 5 }
 0x1ff   : > { %3251 = vst.msk [vmem:[#allocation3 + $0x24] sm:$0xf] %vm3241_vm10, %v7241_v4  ;;  %v4319_v4 = vmul.f32 %v7401_v33, %v4238_v50  ;;  %v3441_v45 = vsel %vm6009_vm9, %v3436_v18, %v3440_v27 }
 0x200   : > { %v7429_v29 = vpop.permute.xlu2 %3167  ;;  %1177 = vst [vmem:[#allocation2 + $0xbc] sm:$0x1] %v1176_v44  ;;  %v3431_v26 = vsel %vm6009_vm9, %v3426_v1, %v3430_v63  ;;  %v1598_v10 = vsel %vm6009_vm9, %v1593_v31, %v7418_v55  ;;  %v3849_v44 = vrot.slane %v3847_v42, 4  ;;  %v1932_v63 = vrot.slane %v1930_v25, 4 }
 0x201   : > { %v4352_v20 = vadd.f32 %v7423_v54, %v4319_v4  ;;  %1268 = vst.msk [vmem:[#allocation3 + $0x78] sm:$0xf] %vm8656_vm2, %v7477_v46  ;;  %v1933_v55 = vrot.slane %v7426_v9, 5 }
 0x202   : > { %3169 = vrot.lane.b32.xlu1 %v7339_v47, %s5814_s18  ;;  %v3851_v39 = vsel %vm5951_vm6, %v3849_v44, %v3850_v28 }
 0x203   : > { %3682 = vrot.lane.b32.xlu0 %v3431_v26, %s5815_s19  ;;  %v4240_v12 = vpop.f32.mrf.mxu1  ;;  %v4384_v40 = vmax.f32 %v4352_v20, 0.0  ;;  %v7482_v38 = vld [vmem:[#allocation2 + $0xb8] sm:$0xf]  ;;  %v1934_v9 = vsel %vm5951_vm6, %v1932_v63, %v1933_v55  ;;  %v1623_v26 = vshrl.u32 %v7438_v5, 16  ;;  %v7515_v20 = vld [vmem:[#allocation2 + $0x64] sm:$0xf] }
 0x204   : > { %v3166_v19 = vpop.permute.xlu1 %3165  ;;  %v4320_v51 = vmul.f32 %v7401_v33, %v4240_v12  ;;  %1269 = vst.msk [vmem:[#allocation3 + $0x7c] sm:$0xf] %vm8656_vm2, %v7482_v38  ;;  %v1931_v12 = vsel %vm5951_vm6, %v5268_v21, %v1930_v25  ;;  %v2469_v47 = vshll.u32 %v7515_v20, 16  ;;  %v2473_v18 = vshrl.u32 %v7515_v20, 16  ;;  %v5294_v55 = vld [vmem:[#allocation2 + $0x68] sm:$0x1] }
 0x205   : > { %v2696_v35 = vpop.permute.xlu0 %2695  ;;  %v1643_v63 = vshll.u32 %v7482_v38, 16  ;;  %v2479_v21 = vshll.u32 %v5294_v55, 16 }
 0x206   : > { %v4353_v24 = vadd.f32 %v7423_v54, %v4320_v51  ;;  %2782 = vst.msk [vmem:[#allocation3 + $0x28] sm:$0xf] %vm2771_vm7, %v2696_v35  ;;  %1997 = vrot.lane.b32.xlu2 %v1924_v23, %s5809_s22  ;;  %v1610_v51 = vshrl.u32 %v7434_v62, 16  ;;  %v1625_v35 = vrot.slane %v1623_v26, 4  ;;  %v1938_v23 = vsel %vm5951_vm6, %v5269_v52, %v1937_v37 }
 0x207   : > { %3039 = vst.msk [vmem:[#allocation3 + $0x28] sm:$0xf] %vm3028_vm8, %v7384_v58  ;;  %v1608_v58 = vsel %vm6009_vm9, %v1603_v56, %v1607_v41  ;;  %v1634_v56 = vshrl.u32 %v7477_v46, 16  ;;  %v1637_v41 = vshll.u32 %v7477_v46, 16  ;;  %v1647_v52 = vshrl.u32 %v7482_v38, 16 }
 0x208   : > { %v4385_v16 = vmax.f32 %v4353_v24, 0.0  ;;  %3252 = vst.msk [vmem:[#allocation3 + $0x28] sm:$0xf] %vm3241_vm10, %v3166_v19  ;;  %v1686_v32 = vpop.permute.xlu2 %1685  ;;  %v1233_v24 = vld [vmem:[#allocation2 + $0xb0] sm:$0x1]  ;;  %v1626_v11 = vor.u32 %v1625_v35, %v1621_v59 }
 0x209   : > { %1768 = vst.msk [vmem:[#allocation3 + $0x38] sm:$0xf] %vm1753_vm3, %v1686_v32  ;;  %v1629_v31 = vshll.u32 %v1233_v24, 16 }
 0x20a   : > { %1707 = vrot.lane.b32.xlu1 %v1584_v49, %s5810_s23  ;;  %v4416_v3 = vpack.c.bf16 %v4385_v16, %v4384_v40  ;;  %v1612_v40 = vrot.slane %v1610_v51, 4  ;;  %v1615_v16 = vrot.slane %v1613_v17, 5  ;;  %v3848_v49 = vsel %vm5951_vm6, %v5389_v6, %v3847_v42 }
 0x20b   : > { %1711 = vrot.lane.b32.xlu0 %v1608_v58, %s5810_s23  ;;  %v2471_v42 = vrot.slane %v2469_v47, 5 }
 0x20c   : > { %v1684_v50 = vpop.permute.xlu1 %1683  ;;  %5487 = vmatmul.msk.bf16.vlgmr.msra.gmra.mxu2 %vm4433_vm4, %v4416_v3  ;;  %v1636_v3 = vrot.slane %v1634_v56, 4  ;;  %v1616_v27 = vor.u32 %v1615_v16, %v1612_v40  ;;  %v2874_v56 = vrot.slane %v5294_v55, 5 }
 0x20d   : > { %1767 = vst.msk [vmem:[#allocation3 + $0x34] sm:$0xf] %vm1753_vm3, %v1684_v50  ;;  %v2955_v36 = vpop.permute.xlu0 %2954  ;;  %v1639_v50 = vrot.slane %v1637_v41, 5  ;;  %v7572_v41 = vld [vmem:[#allocation2 + $0xbc] sm:$0x1] }
 0x20e   : > { %2059 = vst.msk [vmem:[#allocation3 + $0x34] sm:$0xf] %vm8672_vm0, %v7329_v7  ;;  %1709 = vrot.lane.b32.xlu2 %v1598_v10, %s5810_s23  ;;  %v7486_v7 = vld [vmem:[#allocation2 + $0x60] sm:$0xf]  ;;  %vm8673_vm0 = vcmask 64512  }
 0x20f   : > { %v2460_v4 = vshrl.u32 %v7486_v7, 16  ;;  %v2463_v34 = vshll.u32 %v7486_v7, 16  ;;  %5568 = vmatmul.msk.bf16.gmra.mxu3 %vm8673_vm0, %v5624_v53  ;;  %vm8674_vm0 = vcmask 93248   ;;  %v1640_v25 = vor.u32 %v1639_v50, %v1636_v3  ;;  %v5357_v50 = vld [vmem:[#allocation2 + $0x70] sm:$0xf] }
 0x210   : > { %v1980_v1 = vpop.permute.xlu2 %1979  ;;  %v1645_v53 = vrot.slane %v1643_v63, 5  ;;  %v5326_v3 = vrot.slane %v7486_v7, 9  ;;  %vm8675_vm2 = vmmov %vm8674_vm0  ;;  %v3456_v55 = vshrl.u32 %v5357_v50, 16 }
 0x211   : > { %v2462_v43 = vrot.slane %v2460_v4, 4  ;;  %v2465_v19 = vrot.slane %v2463_v34, 5  ;;  %v1641_v34 = vrot.slane %v1640_v25, 4 }
 0x212   : > { %3684 = vrot.lane.b32.xlu1 %v3441_v45, %s5815_s19  ;;  %v2475_v45 = vrot.slane %v2473_v18, 4 }
 0x213   : > { %3941 = vrot.lane.b32.xlu0 %v3851_v39, %s5816_s20  ;;  %v2466_v30 = vor.u32 %v2465_v19, %v2462_v43  ;;  %v1646_v43 = vsel %vm6009_vm9, %v1641_v34, %v1645_v53  ;;  %v2871_v19 = vrot.slane %v7515_v20, 5 }
 0x214   : > { %v3677_v0 = vpop.permute.xlu1 %3676 }
 0x215   : > { %3764 = vst.msk [vmem:[#allocation3 + $0x24] sm:$0xf] %vm3754_vm12, %v3677_v0  ;;  %v3679_v2 = vpop.permute.xlu0 %3678  ;;  %v2467_v58 = vrot.slane %v2466_v30, 4  ;;  %v2476_v0 = vor.u32 %v2475_v45, %v2471_v42  ;;  %v1649_v30 = vrot.slane %v1647_v52, 4  ;;  %v2872_v25 = vsel %vm5951_vm6, %v5326_v3, %v2871_v19 }
 0x216   : > { %4021 = vst.msk [vmem:[#allocation3 + $0x24] sm:$0xf] %vm4011_vm13, %v7405_v13  ;;  %2003 = vrot.lane.b32.xlu2 %v1934_v9, %s5809_s22 }
 0x217   : > { %3765 = vst.msk [vmem:[#allocation3 + $0x28] sm:$0xf] %vm3754_vm12, %v3679_v2  ;;  %v2472_v10 = vsel %vm6009_vm9, %v2467_v58, %v2471_v42  ;;  %v7554_v2 = vld [vmem:[#allocation2 + $0x6c] sm:$0xf]  ;;  %v2477_v6 = vrot.slane %v2476_v0, 4  ;;  %v1653_v58 = vshll.u32 %v7572_v41, 16 }
 0x218   : > { %v3936_v13 = vpop.permute.xlu2 %3935 }
 0x219   : > { %4022 = vst.msk [vmem:[#allocation3 + $0x28] sm:$0xf] %vm4011_vm13, %v3936_v13  ;;  %v3443_v13 = vshrl.u32 %v7554_v2, 16 }
 0x21a   : > { %2001 = vrot.lane.b32.xlu1 %v1931_v12, %s5809_s22  ;;  %v3446_v12 = vshll.u32 %v7554_v2, 16 }
 0x21b   : > { %2005 = vrot.lane.b32.xlu0 %v1938_v23, %s5809_s22  ;;  %v3445_v47 = vrot.slane %v3443_v13, 4 }
 0x21c   : > { %v2698_v62 = vpop.permute.xlu1 %2697  ;;  %v3448_v40 = vrot.slane %v3446_v12, 5 }
 0x21d   : > { %2783 = vst.msk [vmem:[#allocation3 + $0x2c] sm:$0xf] %vm2771_vm7, %v2698_v62  ;;  %v5609_v60 = vld [vmem:[#allocation3 + $0x20] sm:$0xff]  ;;  %v1688_v32 = vpop.permute.xlu0 %1687 }
 0x21e   : > { %3040 = vst.msk [vmem:[#allocation3 + $0x2c] sm:$0xf] %vm3028_vm8, %v2955_v36  ;;  %3939 = vrot.lane.b32.xlu2 %v3848_v49, %s5816_s20  ;;  %5475 = vmatmul.msk.bf16.gmra.mxu1 %vm4176_vm1, %v5609_v60  ;;  %v1631_v36 = vrot.slane %v1629_v31, 5  ;;  %v2873_v60 = vrot.slane %v2871_v19, 4  ;;  %v1650_v31 = vor.u32 %v1649_v30, %v1645_v53 }
 0x21f   : > { %3253 = vst.msk [vmem:[#allocation3 + $0x2c] sm:$0xf] %vm3241_vm10, %v7429_v29  ;;  %v1627_v29 = vrot.slane %v1626_v11, 4 }
 0x220   : > { %1769 = vst.msk [vmem:[#allocation3 + $0x3c] sm:$0xf] %vm1753_vm3, %v1688_v32  ;;  %v1692_v15 = vpop.permute.xlu2 %1691 }
 0x221   : > { %2061 = vst.msk [vmem:[#allocation3 + $0x3c] sm:$0xf] %vm8674_vm0, %v1980_v1  ;;  %v1617_v1 = vrot.slane %v1616_v27, 4  ;;  %v1632_v4 = vsel %vm6009_vm9, %v1627_v29, %v1631_v36  ;;  %v1651_v29 = vrot.slane %v1650_v31, 4  ;;  %v1655_v36 = vrot.slane %v1653_v58, 5 }
 0x222   : > { %1771 = vst.msk [vmem:[#allocation3 + $0x44] sm:$0xf] %vm1753_vm3, %v1692_v15  ;;  %2190 = vrot.lane.b32.xlu1 %v7486_v7, %s5811_s15  ;;  %v3449_v15 = vor.u32 %v3448_v40, %v3445_v47  ;;  %v1944_v40 = vrot.slane %v7482_v38, 5 }
 0x223   : > { %2703 = vrot.lane.b32.xlu0 %v2472_v10, %s5812_s16  ;;  %v4243_v28 = vpop.f32.mrf.mxu1  ;;  %v1622_v26 = vsel %vm6009_vm9, %v1617_v1, %v1621_v59  ;;  %v2481_v59 = vrot.slane %v2479_v21, 5  ;;  %v3452_v10 = vshll.u32 %v5357_v50, 16  ;;  %v1656_v1 = vsel %vm6009_vm9, %v1651_v29, %v1655_v36  ;;  %v5297_v29 = vld [vmem:[#allocation2 + $0x74] sm:$0x1] }
 0x224   : > { %v1978_v44 = vpop.permute.xlu1 %1977  ;;  %v4321_v9 = vmul.f32 %v7401_v33, %v4243_v28  ;;  %v7594_v28 = vld [vmem:[#allocation2 + $0x6c] sm:$0xf] }
 0x225   : > { %2060 = vst.msk [vmem:[#allocation3 + $0x38] sm:$0xf] %vm8674_vm0, %v1978_v44  ;;  %v3938_v39 = vpop.permute.xlu0 %3937  ;;  %v2482_v16 = vsel %vm6009_vm9, %v2477_v6, %v2481_v59  ;;  %v3450_v44 = vrot.slane %v3449_v15, 4  ;;  %v3454_v63 = vrot.slane %v3452_v10, 5  ;;  %v2484_v34 = vshrl.u32 %v7594_v28, 16 }
 0x226   : > { %1715 = vrot.lane.b32.xlu2 %v1632_v4, %s5810_s23  ;;  %v4354_v35 = vadd.f32 %v7423_v54, %v4321_v9  ;;  %v3854_v4 = vrot.slane %v5357_v50, 5  ;;  %v2487_v0 = vshll.u32 %v7594_v28, 16  ;;  %v5358_v9 = vld [vmem:[#allocation2 + $0x74] sm:$0x1]  ;;  %v5390_v6 = vrot.slane %v7554_v2, 9 }
 0x227   : > { %v2486_v19 = vrot.slane %v2484_v34, 4  ;;  %v7612_v59 = vld [vmem:[#allocation2 + $0x70] sm:$0xf]  ;;  %v7658_v34 = vld [vmem:[#allocation2 + $0x7c] sm:$0xf] }
 0x228   : > { %v2189_v14 = vpop.permute.xlu2 %2188  ;;  %v4386_v32 = vmax.f32 %v4354_v35, 0.0  ;;  %v3856_v52 = vrot.slane %v3854_v4, 4  ;;  %v2489_v13 = vrot.slane %v2487_v0, 5  ;;  %v3855_v47 = vsel %vm5951_vm6, %v5390_v6, %v3854_v4  ;;  %v7674_v6 = vld [vmem:[#allocation2 + $0x78] sm:$0xf] }
 0x229   : > { %2272 = vst.msk [vmem:[#allocation3 + $0x34] sm:$0xf] %vm2258_vm5, %v2189_v14  ;;  %v3458_v14 = vrot.slane %v3456_v55, 4  ;;  %v2878_v38 = vrot.slane %v7612_v59, 5  ;;  %v5327_v4 = vrot.slane %v7594_v28, 9 }
 0x22a   : > { %1713 = vrot.lane.b32.xlu1 %v1622_v26, %s5810_s23  ;;  %v5625_v26 = vld [vmem:[%s5922_s21 + $0x10] sm:$0xff] }
 0x22b   : > { %1717 = vrot.lane.b32.xlu0 %v1646_v43, %s5810_s23  ;;  %v4245_v17 = vpop.f32.mrf.mxu1  ;;  %v3857_v43 = vrot.slane %v5358_v9, 5 }
 0x22c   : > { %v3681_v51 = vpop.permute.xlu1 %3680  ;;  %v4322_v23 = vmul.f32 %v7401_v33, %v4245_v17  ;;  %v3462_v17 = vshll.u32 %v5358_v9, 16 }
 0x22d   : > { %3766 = vst.msk [vmem:[#allocation3 + $0x2c] sm:$0xf] %vm3754_vm12, %v3681_v51  ;;  %v1982_v24 = vpop.permute.xlu0 %1981  ;;  %v3459_v51 = vor.u32 %v3458_v14, %v3454_v63  ;;  %v3858_v35 = vsel %vm5951_vm6, %v3856_v52, %v3857_v43 }
 0x22e   : > { %4023 = vst.msk [vmem:[#allocation3 + $0x2c] sm:$0xf] %vm4011_vm13, %v3938_v39  ;;  %v4355_v62 = vadd.f32 %v7423_v54, %v4322_v23  ;;  %2192 = vrot.lane.b32.xlu2 %v7515_v20, %s5811_s15  ;;  %v2875_v20 = vsel %vm5951_vm6, %v2873_v60, %v2874_v56  ;;  %v3455_v39 = vsel %vm6009_vm9, %v3450_v44, %v3454_v63  ;;  %v3464_v56 = vrot.slane %v3462_v17, 5 }
 0x22f   : > { %v2490_v23 = vor.u32 %v2489_v13, %v2486_v19  ;;  %v2503_v63 = vshll.u32 %v5297_v29, 16  ;;  %v2879_v13 = vsel %vm5951_vm6, %v5327_v4, %v2878_v38 }
 0x230   : > { %v4387_v49 = vmax.f32 %v4355_v62, 0.0  ;;  %v1986_v11 = vpop.permute.xlu2 %1985  ;;  %v2493_v62 = vshll.u32 %v7612_v59, 16 }
 0x232   : > { %2705 = vrot.lane.b32.xlu1 %v2482_v16, %s5812_s16  ;;  %v4417_v18 = vpack.c.bf16 %v4387_v49, %v4386_v32  ;;  %v1947_v16 = vrot.slane %v7572_v41, 5  ;;  %v2497_v32 = vshrl.u32 %v7612_v59, 16  ;;  %v7626_v49 = vld [vmem:[#allocation2 + $0x78] sm:$0xf]  ;;  %v2495_v3 = vrot.slane %v2493_v62, 5 }
 0x233   : > { %2962 = vrot.lane.b32.xlu0 %v2875_v20, %s5813_s17  ;;  %v5604_v62 = vld [vmem:[%s5922_s21 + $0x78] sm:$0xff] }
 0x234   : > { %v1690_v42 = vpop.permute.xlu1 %1689  ;;  %5488 = vmatmul.msk.bf16.gmra.mxu2 %vm4433_vm4, %v4417_v18  ;;  %v3470_v18 = vshll.u32 %v7626_v49, 16  ;;  %v2499_v36 = vrot.slane %v2497_v32, 4  ;;  %v5361_v32 = vld [vmem:[#allocation2 + $0x80] sm:$0x1] }
 0x235   : > { %1770 = vst.msk [vmem:[#allocation3 + $0x40] sm:$0xf] %vm1753_vm3, %v1690_v42  ;;  %v5610_v27 = vld [vmem:[#allocation3 + $0x28] sm:$0xff]  ;;  %v1694_v7 = vpop.permute.xlu0 %1693 }
 0x236   : > { %2062 = vst.msk [vmem:[#allocation3 + $0x40] sm:$0xf] %vm8674_vm0, %v1982_v24  ;;  %2960 = vrot.lane.b32.xlu2 %v2872_v25, %s5813_s17  ;;  %5476 = vmatmul.msk.bf16.gmra.mxu1 %vm4176_vm1, %v5610_v27  ;;  %v3460_v24 = vrot.slane %v3459_v51, 4  ;;  %v2881_v25 = vrot.slane %v5297_v29, 5 }
 0x237   : > { %1772 = vst.msk [vmem:[#allocation3 + $0x48] sm:$0xf] %vm1753_vm3, %v1694_v7  ;;  %v2880_v7 = vrot.slane %v2878_v38, 4 }
 0x238   : > { %2064 = vst.msk [vmem:[#allocation3 + $0x48] sm:$0xf] %vm8675_vm2, %v1986_v11  ;;  %v1698_v45 = vpop.permute.xlu2 %1697  ;;  %vm8676_vm2 = vmmov %vm8674_vm0  ;;  %vm8677_vm0 = vcmask 64512   ;;  %v5270_v11 = vrot.slane %v7477_v46, 9  ;;  %v3465_v58 = vsel %vm6009_vm9, %v3460_v24, %v3464_v56  ;;  %v3467_v46 = vshrl.u32 %v7626_v49, 16 }
 0x239   : > { %1774 = vst.msk [vmem:[#allocation3 + $0x50] sm:$0xf] %vm1753_vm3, %v1698_v45  ;;  %5569 = vmatmul.msk.bf16.gmra.mxu3 %vm8677_vm0, %v5625_v26  ;;  %v3472_v45 = vrot.slane %v3470_v18, 5  ;;  %vm8678_vm0 = vmmov %vm8676_vm2  ;;  %v2882_v0 = vsel %vm5951_vm6, %v2880_v7, %v2881_v25  ;;  %v3480_v24 = vshrl.u32 %v7658_v34, 16  ;;  %v3861_v56 = vrot.slane %v7658_v34, 5 }
 0x23a   : > { %1719 = vrot.lane.b32.xlu1 %v1656_v1, %s5810_s23  ;;  %v7636_v41 = vsel %vm5951_vm6, %v5270_v11, %v1944_v40  ;;  %v3469_v44 = vrot.slane %v3467_v46, 4  ;;  %v2500_v1 = vor.u32 %v2499_v36, %v2495_v3  ;;  %v3486_v18 = vshll.u32 %v5361_v32, 16  ;;  %s7832_s23 = scalar_lea.vmem [#allocation4], %s5172_s8  ;;  %s8702_s8 = sand.u32 1, %s5790_s25  }
 0x23b   : > { %3686 = vrot.lane.b32.xlu0 %v3455_v39, %s5815_s19  ;;  %v3482_v11 = vrot.slane %v3480_v24, 4  ;;  %s5079_s12 = sshll.u32 %s7832_s23, 4  ;;  %s5064_s10 = scalar_lea.sflag [#allocation5], %s8702_s8  ;;  %s5080_s12 = int_to_ptr.vmem [resolvable:$true] %s5079_s12 }
 0x23c   : > { %v1984_v21 = vpop.permute.xlu1 %1983  ;;  %v2501_v26 = vrot.slane %v2500_v1, 4  ;;  %v3488_v25 = vrot.slane %v3486_v18, 5 }
 0x23d   : > { %2063 = vst.msk [vmem:[#allocation3 + $0x44] sm:$0xf] %vm8676_vm2, %v1984_v21  ;;  %v1988_v53 = vpop.permute.xlu0 %1987  ;;  %v3473_v21 = vor.u32 %v3472_v45, %v3469_v44 }
 0x23e   : > { %3175 = vrot.lane.b32.xlu2 %v5357_v50, %s5814_s18  ;;  %v1946_v50 = vrot.slane %v1944_v40, 4  ;;  %v2511_v40 = vshll.u32 %v7674_v6, 16 }
 0x23f   : > { %v3474_v51 = vrot.slane %v3473_v21, 4 }
 0x240   : > { %v1992_v12 = vpop.permute.xlu2 %1991  ;;  %v7644_v15 = vsel %vm5951_vm6, %v1946_v50, %v1947_v16  ;;  %v2513_v38 = vrot.slane %v2511_v40, 5 }
 0x242   : > { %3173 = vrot.lane.b32.xlu1 %v7554_v2, %s5814_s18  ;;  %v2491_v2 = vrot.slane %v2490_v23, 4 }
 0x243   : > { %3945 = vrot.lane.b32.xlu0 %v3858_v35, %s5816_s20 }
 0x244   : > { %v2187_v30 = vpop.permute.xlu1 %2186  ;;  %v2496_v20 = vsel %vm6009_vm9, %v2491_v2, %v2495_v3  ;;  %v2508_v2 = vshrl.u32 %v7674_v6, 16  ;;  %v3864_v3 = vrot.slane %v5361_v32, 5 }
 0x245   : > { %2271 = vst.msk [vmem:[#allocation3 + $0x30] sm:$0xf] %vm2258_vm5, %v2187_v30  ;;  %v2700_v60 = vpop.permute.xlu0 %2699 }
 0x246   : > { %2784 = vst.msk [vmem:[#allocation3 + $0x30] sm:$0xf] %vm2771_vm7, %v2700_v60  ;;  %3943 = vrot.lane.b32.xlu2 %v3855_v47, %s5816_s20  ;;  %v2510_v50 = vrot.slane %v2508_v2, 4 }
 0x248   : > { %v2957_v31 = vpop.permute.xlu2 %2956  ;;  %v2514_v36 = vor.u32 %v2513_v38, %v2510_v50 }
 0x249   : > { %3041 = vst.msk [vmem:[#allocation3 + $0x30] sm:$0xf] %vm3028_vm8, %v2957_v31 }
 0x24a   : > { %3688 = vrot.lane.b32.xlu1 %v3465_v58, %s5815_s19  ;;  %v3863_v58 = vrot.slane %v3861_v56, 4 }
 0x24b   : > { %2707 = vrot.lane.b32.xlu0 %v2496_v20, %s5812_s16  ;;  %v4248_v27 = vpop.f32.mrf.mxu1 }
 0x24c   : > { %v1696_v42 = vpop.permute.xlu1 %1695  ;;  %v4323_v55 = vmul.f32 %v7401_v33, %v4248_v27  ;;  %v5299_v27 = vld [vmem:[#allocation2 + $0x7c] sm:$0xf]  ;;  %v3865_v29 = vsel %vm5951_vm6, %v3863_v58, %v3864_v3 }
 0x24d   : > { %1773 = vst.msk [vmem:[#allocation3 + $0x4c] sm:$0xf] %vm1753_vm3, %v1696_v42  ;;  %v1700_v10 = vpop.permute.xlu0 %1699  ;;  %v5391_v42 = vrot.slane %v7626_v49, 9  ;;  %v2517_v44 = vshll.u32 %v5299_v27, 16  ;;  %v2885_v21 = vrot.slane %v5299_v27, 5 }
 0x24e   : > { %2065 = vst.msk [vmem:[#allocation3 + $0x4c] sm:$0xf] %vm8676_vm2, %v1988_v53  ;;  %2196 = vrot.lane.b32.xlu2 %v7612_v59, %s5811_s15  ;;  %v2505_v53 = vrot.slane %v2503_v63, 5  ;;  %v4356_v52 = vadd.f32 %v7423_v54, %v4323_v55  ;;  %vm8679_vm2 = vcmask 64512   ;;  %v7704_v63 = vld [vmem:[#allocation2 + $0x84] sm:$0xf] }
 0x24f   : > { %1775 = vst.msk [vmem:[#allocation3 + $0x54] sm:$0xf] %vm1753_vm3, %v1700_v10  ;;  %5254 = vmatmul.msk.bf16.gmra.mxu0 %vm8679_vm2, %v5604_v62  ;;  %vm8680_vm2 = vmmov %vm8678_vm0  ;;  %v3862_v1 = vsel %vm5951_vm6, %v5391_v42, %v3861_v56  ;;  %v2519_v4 = vrot.slane %v2517_v44, 5 }
 0x250   : > { %2067 = vst.msk [vmem:[#allocation3 + $0x54] sm:$0xf] %vm8678_vm0, %v1992_v12  ;;  %v1704_v39 = vpop.permute.xlu2 %1703  ;;  %v2506_v17 = vsel %vm6009_vm9, %v2501_v26, %v2505_v53  ;;  %v4388_v59 = vmax.f32 %v4356_v52, 0.0  ;;  %v5300_v53 = vld [vmem:[#allocation2 + $0x80] sm:$0x1] }
 0x251   : > { %1777 = vst.msk [vmem:[#allocation3 + $0x5c] sm:$0xf] %vm1753_vm3, %v1704_v39 }
 0x252   : > { %2194 = vrot.lane.b32.xlu1 %v7594_v28, %s5811_s15  ;;  %v3476_v28 = vshll.u32 %v7658_v34, 16 }
 0x253   : > { %2966 = vrot.lane.b32.xlu0 %v2882_v0, %s5813_s17  ;;  %v4250_v14 = vpop.f32.mrf.mxu1 }
 0x254   : > { %v2702_v9 = vpop.permute.xlu1 %2701  ;;  %v4324_v43 = vmul.f32 %v7401_v33, %v4250_v14  ;;  %v3478_v30 = vrot.slane %v3476_v28, 5  ;;  %v3494_v14 = vshll.u32 %v7704_v63, 16 }
 0x255   : > { %2785 = vst.msk [vmem:[#allocation3 + $0x34] sm:$0xf] %vm2771_vm7, %v2702_v9  ;;  %v2959_v19 = vpop.permute.xlu0 %2958  ;;  %v3491_v9 = vshrl.u32 %v7704_v63, 16 }
 0x256   : > { %v4357_v12 = vadd.f32 %v7423_v54, %v4324_v43  ;;  %3042 = vst.msk [vmem:[#allocation3 + $0x34] sm:$0xf] %vm3028_vm8, %v2959_v19  ;;  %2964 = vrot.lane.b32.xlu2 %v2879_v13, %s5813_s17  ;;  %v3479_v60 = vsel %vm6009_vm9, %v3474_v51, %v3478_v30  ;;  %v3483_v46 = vor.u32 %v3482_v11, %v3478_v30  ;;  %v5626_v43 = vld [vmem:[%s5922_s21 + $0x18] sm:$0xff]  ;;  %v2887_v19 = vrot.slane %v2885_v21, 4  ;;  %v5363_v30 = vld [vmem:[#allocation2 + $0x88] sm:$0xf] }
 0x257   : > { %v2888_v13 = vrot.slane %v5300_v53, 5  ;;  %v3496_v51 = vrot.slane %v3494_v14, 5  ;;  %v3500_v2 = vshll.u32 %v5363_v30, 16  ;;  %v3504_v32 = vshrl.u32 %v5363_v30, 16  ;;  %v7730_v11 = vld [vmem:[#allocation2 + $0x84] sm:$0xf] }
 0x258   : > { %v4389_v35 = vmax.f32 %v4357_v12, 0.0  ;;  %v3172_v23 = vpop.permute.xlu2 %3171  ;;  %v3484_v7 = vrot.slane %v3483_v46, 4  ;;  %v3493_v12 = vrot.slane %v3491_v9, 4  ;;  %v3868_v38 = vrot.slane %v5363_v30, 5 }
 0x259   : > { %3255 = vst.msk [vmem:[#allocation3 + $0x34] sm:$0xf] %vm3241_vm10, %v3172_v23  ;;  %v5328_v23 = vrot.slane %v7674_v6, 9  ;;  %v2889_v24 = vsel %vm5951_vm6, %v2887_v19, %v2888_v13  ;;  %v3502_v3 = vrot.slane %v3500_v2, 5  ;;  %v2535_v46 = vshll.u32 %v7730_v11, 16 }
 0x25a   : > { %2709 = vrot.lane.b32.xlu1 %v2506_v17, %s5812_s16  ;;  %v4418_v47 = vpack.c.bf16 %v4389_v35, %v4388_v59  ;;  %v3489_v39 = vsel %vm6009_vm9, %v3484_v7, %v3488_v25  ;;  %v2527_v35 = vshll.u32 %v5300_v53, 16  ;;  %v3497_v56 = vor.u32 %v3496_v51, %v3493_v12 }
 0x25b   : > { %3690 = vrot.lane.b32.xlu0 %v3479_v60, %s5815_s19  ;;  %v2537_v44 = vrot.slane %v2535_v46, 5 }
 0x25c   : > { %v1990_v16 = vpop.permute.xlu1 %1989  ;;  %5489 = vmatmul.msk.bf16.gmra.mxu2 %vm4433_vm4, %v4418_v47  ;;  %v2529_v47 = vrot.slane %v2527_v35, 5 }
 0x25d   : > { %2066 = vst.msk [vmem:[#allocation3 + $0x50] sm:$0xf] %vm8678_vm0, %v1990_v16  ;;  %v1994_v31 = vpop.permute.xlu0 %1993  ;;  %v2886_v16 = vsel %vm5951_vm6, %v5328_v23, %v2885_v21 }
 0x25e   : > { %3179 = vrot.lane.b32.xlu2 %v7658_v34, %s5814_s18  ;;  %v2521_v34 = vshrl.u32 %v5299_v27, 16 }
 0x260   : > { %v1998_v20 = vpop.permute.xlu2 %1997  ;;  %v2523_v52 = vrot.slane %v2521_v34, 4 }
 0x262   : > { %3177 = vrot.lane.b32.xlu1 %v7626_v49, %s5814_s18  ;;  %v2515_v49 = vrot.slane %v2514_v36, 4  ;;  %v2524_v59 = vor.u32 %v2523_v52, %v2519_v4 }
 0x263   : > { %3949 = vrot.lane.b32.xlu0 %v3865_v29, %s5816_s20  ;;  %v3506_v29 = vrot.slane %v3504_v32, 4  ;;  %v7794_v32 = vld [vmem:[%s8650_s5 + $0x3] ss:$0 sm:$0xff] }
 0x264   : > { %v1702_v10 = vpop.permute.xlu1 %1701  ;;  %v2520_v0 = vsel %vm6009_vm9, %v2515_v49, %v2519_v4  ;;  %v2525_v60 = vrot.slane %v2524_v59, 4  ;;  %v7751_v4 = vld [vmem:[#allocation2 + $0x88] sm:$0xf] }
 0x265   : > { %1776 = vst.msk [vmem:[#allocation3 + $0x58] sm:$0xf] %vm1753_vm3, %v1702_v10  ;;  %v1706_v45 = vpop.permute.xlu0 %1705  ;;  %v3870_v10 = vrot.slane %v3868_v38, 4 }
 0x266   : > { %2068 = vst.msk [vmem:[#allocation3 + $0x58] sm:$0xf] %vm8680_vm2, %v1994_v31  ;;  %3947 = vrot.lane.b32.xlu2 %v3862_v1, %s5816_s20  ;;  %vm8681_vm2 = vmmov %vm8678_vm0  ;;  %v2530_v58 = vsel %vm6009_vm9, %v2525_v60, %v2529_v47 }
 0x267   : > { %1778 = vst.msk [vmem:[#allocation3 + $0x60] sm:$0xf] %vm1753_vm3, %v1706_v45  ;;  %v3507_v45 = vor.u32 %v3506_v29, %v3502_v3 }
 0x268   : > { %2070 = vst.msk [vmem:[#allocation3 + $0x60] sm:$0xf] %vm8678_vm0, %v1998_v20  ;;  %v1710_v55 = vpop.permute.xlu2 %1709  ;;  %vm8682_vm0 = vcmask 64512   ;;  %v2532_v20 = vshrl.u32 %v7730_v11, 16 }
 0x269   : > { %1780 = vst.msk [vmem:[#allocation3 + $0x68] sm:$0xf] %vm1753_vm3, %v1710_v55  ;;  %5570 = vmatmul.msk.bf16.gmra.mxu3 %vm8682_vm0, %v5626_v43  ;;  %vm8683_vm0 = vmmov %vm8681_vm2  ;;  %v3508_v14 = vrot.slane %v3507_v45, 4  ;;  %v5329_v45 = vrot.slane %v7730_v11, 9 }
 0x26a   : > { %3692 = vrot.lane.b32.xlu1 %v3489_v39, %s5815_s19  ;;  %v2534_v25 = vrot.slane %v2532_v20, 4  ;;  %v5392_v39 = vrot.slane %v7704_v63, 9 }
 0x26b   : > { %2711 = vrot.lane.b32.xlu0 %v2520_v0, %s5812_s16 }
 0x26c   : > { %v1996_v26 = vpop.permute.xlu1 %1995  ;;  %v2538_v0 = vor.u32 %v2537_v44, %v2534_v25  ;;  %v7811_v44 = vld [vmem:[#allocation2 + $0x94] sm:$0xf] }
 0x26d   : > { %2069 = vst.msk [vmem:[#allocation3 + $0x5c] sm:$0xf] %vm8681_vm2, %v1996_v26  ;;  %v2000_v28 = vpop.permute.xlu0 %1999 }
 0x26e   : > { %2200 = vrot.lane.b32.xlu2 %v5299_v27, %s5811_s15  ;;  %v5364_v27 = vld [vmem:[#allocation2 + $0x8c] sm:$0x1]  ;;  %v2539_v13 = vrot.slane %v2538_v0, 4 }
 0x26f   : > { %v3871_v7 = vrot.slane %v5364_v27, 5  ;;  %v3510_v1 = vshll.u32 %v5364_v27, 16 }
 0x270   : > { %v2004_v17 = vpop.permute.xlu2 %2003 }
 0x271   : > { %v3872_v34 = vsel %vm5951_vm6, %v3870_v10, %v3871_v7  ;;  %v3512_v26 = vrot.slane %v3510_v1, 5  ;;  %v4820_v51 = vpop.f32.mrf.mxu3 }
 0x272   : > { %2198 = vrot.lane.b32.xlu1 %v7674_v6, %s5811_s15  ;;  %v3498_v6 = vrot.slane %v3497_v56, 4 }
 0x273   : > { %2970 = vrot.lane.b32.xlu0 %v2889_v24, %s5813_s17  ;;  %v3513_v12 = vsel %vm6009_vm9, %v3508_v14, %v3512_v26  ;;  %v2892_v24 = vrot.slane %v7751_v4, 5 }
 0x274   : > { %v3170_v62 = vpop.permute.xlu1 %3169  ;;  %v3503_v50 = vsel %vm6009_vm9, %v3498_v6, %v3502_v3 }
 0x275   : > { %3254 = vst.msk [vmem:[#allocation3 + $0x30] sm:$0xf] %vm3241_vm10, %v3170_v62  ;;  %v3683_v40 = vpop.permute.xlu0 %3682  ;;  %v2894_v20 = vrot.slane %v2892_v24, 4  ;;  %v2893_v26 = vsel %vm5951_vm6, %v5329_v45, %v2892_v24 }
 0x276   : > { %3767 = vst.msk [vmem:[#allocation3 + $0x30] sm:$0xf] %vm3754_vm12, %v3683_v40  ;;  %2968 = vrot.lane.b32.xlu2 %v2886_v16, %s5813_s17  ;;  %v7786_v40 = vld [vmem:[%s8650_s5] ss:$0 sm:$0xff]  ;;  %v5303_v16 = vld [vmem:[#allocation2 + $0x8c] sm:$0x1] }
 0x277   : > { %v2895_v46 = vrot.slane %v5303_v16, 5  ;;  %v2551_v25 = vshll.u32 %v5303_v16, 16 }
 0x278   : > { %v3940_v31 = vpop.permute.xlu2 %3939 }
 0x279   : > { %4024 = vst.msk [vmem:[#allocation3 + $0x30] sm:$0xf] %vm4011_vm13, %v3940_v31  ;;  %v4822_v1 = vpop.f32.mrf.mxu3 }
 0x27a   : > { %2713 = vrot.lane.b32.xlu1 %v2530_v58, %s5812_s16  ;;  %v5627_v58 = vld [vmem:[%s5922_s21 + $0x20] sm:$0xff] }
 0x27b   : > { %3694 = vrot.lane.b32.xlu0 %v3503_v50, %s5815_s19  ;;  %v4253_v42 = vpop.f32.mrf.mxu1 }
 0x27c   : > { %v1708_v18 = vpop.permute.xlu1 %1707  ;;  %v4325_v49 = vmul.f32 %v7401_v33, %v4253_v42 }
 0x27d   : > { %1779 = vst.msk [vmem:[#allocation3 + $0x64] sm:$0xf] %vm1753_vm3, %v1708_v18  ;;  %v1712_v36 = vpop.permute.xlu0 %1711 }
 0x27e   : > { %2071 = vst.msk [vmem:[#allocation3 + $0x64] sm:$0xf] %vm8681_vm2, %v2000_v28  ;;  %3183 = vrot.lane.b32.xlu2 %v5363_v30, %s5814_s18  ;;  %v4358_v53 = vadd.f32 %v7423_v54, %v4325_v49  ;;  %v3869_v28 = vsel %vm5951_vm6, %v5392_v39, %v3868_v38  ;;  %v7772_v30 = vld [vmem:[%s8650_s5 + $0x2] ss:$0 sm:$0xff]  ;;  %vm8684_vm2 = vmmov %vm8683_vm0  ;;  %v7804_v38 = vld [vmem:[%s8650_s5 + $0x1] ss:$0 sm:$0xff] }
 0x27f   : > { %1781 = vst.msk [vmem:[#allocation3 + $0x6c] sm:$0xf] %vm1753_vm3, %v1712_v36  ;;  %v4901_v6 = vmul.f32 %v7772_v30, %v4820_v51 }
 0x280   : > { %2073 = vst.msk [vmem:[#allocation3 + $0x6c] sm:$0xf] %vm8683_vm0, %v2004_v17  ;;  %v1716_v55 = vpop.permute.xlu2 %1715  ;;  %v7767_v17 = vld [vmem:[#allocation2 + $0x90] sm:$0xf]  ;;  %vm8685_vm0 = vcmask 64512  }
 0x281   : > { %1783 = vst.msk [vmem:[#allocation3 + $0x74] sm:$0xf] %vm1753_vm3, %v1716_v55  ;;  %v3515_v60 = vshrl.u32 %v7767_v17, 16  ;;  %v3518_v47 = vshll.u32 %v7767_v17, 16  ;;  %5571 = vmatmul.msk.bf16.gmra.mxu3 %vm8685_vm0, %v5627_v58  ;;  %v4934_v36 = vadd.f32 %v7794_v32, %v4901_v6  ;;  %v2896_v55 = vsel %vm5951_vm6, %v2894_v20, %v2895_v46  ;;  %v7860_v46 = vld [vmem:[%s8649_s4 + $0x2] ss:$0 sm:$0xff] }
 0x282   : > { %3181 = vrot.lane.b32.xlu1 %v7704_v63, %s5814_s18  ;;  %v2541_v63 = vshll.u32 %v7751_v4, 16  ;;  %vm8686_vm0 = vcmask 93248  }
 0x283   : > { %3953 = vrot.lane.b32.xlu0 %v3872_v34, %s5816_s20  ;;  %v4255_v9 = vpop.f32.mrf.mxu1  ;;  %v3517_v18 = vrot.slane %v3515_v60, 4  ;;  %v3520_v42 = vrot.slane %v3518_v47, 5  ;;  %v3524_v34 = vshll.u32 %v7811_v44, 16 }
 0x284   : > { %v3685_v21 = vpop.permute.xlu1 %3684  ;;  %v4326_v52 = vmul.f32 %v7401_v33, %v4255_v9  ;;  %v4390_v33 = vmax.f32 %v4358_v53, 0.0  ;;  %v2543_v23 = vrot.slane %v2541_v63, 5  ;;  %v2553_v9 = vrot.slane %v2551_v25, 5 }
 0x285   : > { %3768 = vst.msk [vmem:[#allocation3 + $0x34] sm:$0xf] %vm3754_vm12, %v3685_v21  ;;  %v3942_v43 = vpop.permute.xlu0 %3941  ;;  %v3521_v39 = vor.u32 %v3520_v42, %v3517_v18  ;;  %v4902_v21 = vmul.f32 %v7772_v30, %v4822_v1  ;;  %v7877_v1 = vld [vmem:[%s8649_s4 + $0x3] ss:$0 sm:$0xff] }
 0x286   : > { %v4359_v19 = vadd.f32 %v7423_v54, %v4326_v52  ;;  %4025 = vst.msk [vmem:[#allocation3 + $0x34] sm:$0xf] %vm4011_vm13, %v3942_v43  ;;  %3951 = vrot.lane.b32.xlu2 %v3869_v28, %s5816_s20  ;;  %v2545_v54 = vshrl.u32 %v7751_v4, 16  ;;  %v2544_v56 = vsel %vm6009_vm9, %v2539_v13, %v2543_v23  ;;  %v3526_v43 = vrot.slane %v3524_v34, 5  ;;  %v7830_v28 = vld [vmem:[#allocation2 + $0x90] sm:$0xf] }
 0x287   : > { %v3522_v52 = vrot.slane %v3521_v39, 4  ;;  %v4935_v13 = vadd.f32 %v7794_v32, %v4902_v21  ;;  %v2556_v24 = vshrl.u32 %v7830_v28, 16 }
 0x288   : > { %v4391_v59 = vmax.f32 %v4359_v19, 0.0  ;;  %v2193_v35 = vpop.permute.xlu2 %2192  ;;  %v2547_v31 = vrot.slane %v2545_v54, 4  ;;  %v5367_v54 = vld [vmem:[#allocation2 + $0x98] sm:$0x1] }
 0x289   : > { %2274 = vst.msk [vmem:[#allocation3 + $0x3c] sm:$0xf] %vm2258_vm5, %v2193_v35  ;;  %v3878_v6 = vrot.slane %v5367_v54, 5 }
 0x28a   : > { %3696 = vrot.lane.b32.xlu1 %v3513_v12, %s5815_s19  ;;  %v4419_v62 = vpack.c.bf16 %v4391_v59, %v4390_v33  ;;  %v2548_v7 = vor.u32 %v2547_v31, %v2543_v23  ;;  %v3528_v33 = vshrl.u32 %v7811_v44, 16  ;;  %v3875_v59 = vrot.slane %v7811_v44, 5 }
 0x28b   : > { %2715 = vrot.lane.b32.xlu0 %v2544_v56, %s5812_s16  ;;  %v3527_v23 = vsel %vm6009_vm9, %v3522_v52, %v3526_v43  ;;  %v2559_v56 = vshll.u32 %v7830_v28, 16 }
 0x28c   : > { %v2002_v2 = vpop.permute.xlu1 %2001  ;;  %5490 = vmatmul.msk.bf16.gmra.mxu2 %vm4433_vm4, %v4419_v62  ;;  %v3877_v58 = vrot.slane %v3875_v59, 4 }
 0x28d   : > { %2072 = vst.msk [vmem:[#allocation3 + $0x68] sm:$0xf] %vm8684_vm2, %v2002_v2  ;;  %v7797_v3 = vpop.permute.xlu0 %2005  ;;  %v5611_v50 = vld [vmem:[#allocation3 + $0x30] sm:$0xff]  ;;  %vm5030_vm2 = vcmask 130048   ;;  %v3530_v2 = vrot.slane %v3528_v33, 4  ;;  %v2561_v20 = vrot.slane %v2559_v56, 5 }
 0x28e   : > { %2204 = vrot.lane.b32.xlu2 %v7751_v4, %s5811_s15  ;;  %5477 = vmatmul.msk.bf16.gmra.mxu1 %vm4176_vm1, %v5611_v50  ;;  %v2558_v50 = vrot.slane %v2556_v24, 4 }
 0x28f   : > { %v4494_v27 = vpop.f32.mrf.mxu2  ;;  %v3531_v42 = vor.u32 %v3530_v2, %v3526_v43  ;;  %v5628_v43 = vld [vmem:[%s5922_s21 + $0x28] sm:$0xff] }
 0x290   : > { %v4575_v29 = vmul.f32 %v7786_v40, %v4494_v27  ;;  %v2961_v10 = vpop.permute.xlu2 %2960  ;;  %v3534_v27 = vshll.u32 %v5367_v54, 16 }
 0x292   : > { %2202 = vrot.lane.b32.xlu1 %v7730_v11, %s5811_s15  ;;  %v4608_v49 = vadd.f32 %v7804_v38, %v4575_v29  ;;  %v2549_v11 = vrot.slane %v2548_v7, 4  ;;  %v7865_v29 = vld [vmem:[#allocation2 + $0x94] sm:$0xf]  ;;  %v2562_v7 = vor.u32 %v2561_v20, %v2558_v50  ;;  %v3536_v39 = vrot.slane %v3534_v27, 5 }
 0x293   : > { %2974 = vrot.lane.b32.xlu0 %v2896_v55, %s5813_s17  ;;  %v2565_v45 = vshll.u32 %v7865_v29, 16  ;;  %v3532_v55 = vrot.slane %v3531_v42, 4 }
 0x294   : > { %v2191_v4 = vpop.permute.xlu1 %2190  ;;  %v4966_v0 = vadd.f32 %v4934_v36, %v4608_v49  ;;  %v2554_v51 = vsel %vm6009_vm9, %v2549_v11, %v2553_v9  ;;  %v5393_v36 = vrot.slane %v7767_v17, 9  ;;  %v2563_v21 = vrot.slane %v2562_v7, 4  ;;  %v7888_v9 = vld [vmem:[#allocation2 + $0x9c] sm:$0xf] }
 0x295   : > { %2273 = vst.msk [vmem:[#allocation3 + $0x38] sm:$0xf] %vm2258_vm5, %v2191_v4  ;;  %v2704_v14 = vpop.permute.xlu0 %2703  ;;  %v2567_v11 = vrot.slane %v2565_v45, 5  ;;  %v3537_v52 = vsel %vm6009_vm9, %v3532_v55, %v3536_v39  ;;  %v3542_v33 = vshll.u32 %v7888_v9, 16 }
 0x296   : > { %v4998_v53 = vmax.f32 %v4966_v0, 0.0  ;;  %2786 = vst.msk [vmem:[#allocation3 + $0x38] sm:$0xf] %vm2771_vm7, %v2704_v14  ;;  %2972 = vrot.lane.b32.xlu2 %v2893_v26, %s5813_s17  ;;  %v3876_v34 = vsel %vm5951_vm6, %v5393_v36, %v3875_v59 }
 0x297   : > { %3043 = vst.msk [vmem:[#allocation3 + $0x38] sm:$0xf] %vm3028_vm8, %v2961_v10  ;;  %v4496_v63 = vpop.f32.mrf.mxu2  ;;  %v3879_v10 = vsel %vm5951_vm6, %v3877_v58, %v3878_v6  ;;  %v5330_v58 = vrot.slane %v7830_v28, 9 }
 0x298   : > { %5031 = vst.msk [vmem:[%s7832_s23] sm:$0xff] %vm5030_vm2, %v4998_v53  ;;  %v4576_v19 = vmul.f32 %v7786_v40, %v4496_v63  ;;  %v3176_v12 = vpop.permute.xlu2 %3175  ;;  %v2569_v63 = vshrl.u32 %v7865_v29, 16 }
 0x29a   : > { %2717 = vrot.lane.b32.xlu1 %v2554_v51, %s5812_s16  ;;  %v4609_v35 = vadd.f32 %v7804_v38, %v4576_v19  ;;  %v2899_v19 = vrot.slane %v7865_v29, 5  ;;  %v3539_v51 = vshrl.u32 %v7888_v9, 16 }
 0x29b   : > { %3698 = vrot.lane.b32.xlu0 %v3527_v23, %s5815_s19  ;;  %v4258_v60 = vpop.f32.mrf.mxu1  ;;  %v2571_v23 = vrot.slane %v2569_v63, 4 }
 0x29c   : > { %v1714_v62 = vpop.permute.xlu1 %1713  ;;  %v4967_v47 = vadd.f32 %v4935_v13, %v4609_v35  ;;  %v2568_v13 = vsel %vm6009_vm9, %v2563_v21, %v2567_v11  ;;  %v5306_v35 = vld [vmem:[#allocation2 + $0x98] sm:$0x1]  ;;  %v2901_v24 = vrot.slane %v2899_v19, 4 }
 0x29d   : > { %1782 = vst.msk [vmem:[#allocation3 + $0x70] sm:$0xf] %vm1753_vm3, %v1714_v62  ;;  %v1718_v16 = vpop.permute.xlu0 %1717  ;;  %v2902_v56 = vrot.slane %v5306_v35, 5  ;;  %v3541_v62 = vrot.slane %v3539_v51, 4  ;;  %v2575_v6 = vshll.u32 %v5306_v35, 16 }
 0x29e   : > { %2074 = vst.msk [vmem:[#allocation3 + $0x70] sm:$0xf] %vm8686_vm0, %v7797_v3  ;;  %v4999_v31 = vmax.f32 %v4967_v47, 0.0  ;;  %3187 = vrot.lane.b32.xlu2 %v7811_v44, %s5814_s18  ;;  %v4327_v3 = vmul.f32 %v7860_v46, %v4258_v60  ;;  %vm8687_vm0 = vcmask 64512   ;;  %v3544_v60 = vrot.slane %v3542_v33, 5  ;;  %v4825_v47 = vpop.f32.mrf.mxu3 }
 0x29f   : > { %1784 = vst.msk [vmem:[#allocation3 + $0x78] sm:$0xf] %vm1753_vm3, %v1718_v16  ;;  %5572 = vmatmul.msk.bf16.gmra.mxu3 %vm8687_vm0, %v5628_v43  ;;  %v2572_v16 = vor.u32 %v2571_v23, %v2567_v11  ;;  %v2903_v50 = vsel %vm5951_vm6, %v2901_v24, %v2902_v56 }
 0x2a0   : > { %5032 = vst.msk [vmem:[%s7832_s23 + $0x8] sm:$0xff] %vm5030_vm2, %v4999_v31  ;;  %v7863_v18 = vpop.permute.xlu2 %3943  ;;  %v4360_v49 = vadd.f32 %v7877_v1, %v4327_v3  ;;  %v7909_v31 = vld [vmem:[#allocation2 + $0xa0] sm:$0xf]  ;;  %v3545_v20 = vor.u32 %v3544_v60, %v3541_v62 }
 0x2a1   : > { %v3548_v27 = vshll.u32 %v7909_v31, 16  ;;  %v2573_v36 = vrot.slane %v2572_v16, 4  ;;  %v3882_v21 = vrot.slane %v7909_v31, 5 }
 0x2a2   : > { %3185 = vrot.lane.b32.xlu1 %v7767_v17, %s5814_s18  ;;  %v4392_v14 = vmax.f32 %v4360_v49, 0.0  ;;  %v3552_v49 = vshrl.u32 %v7909_v31, 16 }
 0x2a3   : > { %3957 = vrot.lane.b32.xlu0 %v3879_v10, %s5816_s20  ;;  %v4260_v44 = vpop.f32.mrf.mxu1  ;;  %v2577_v10 = vrot.slane %v2575_v6, 5  ;;  %v3550_v45 = vrot.slane %v3548_v27, 5  ;;  %v3884_v35 = vrot.slane %v3882_v21, 4 }
 0x2a4   : > { %v2706_v25 = vpop.permute.xlu1 %2705  ;;  %v4328_v17 = vmul.f32 %v7860_v46, %v4260_v44 }
 0x2a5   : > { %2787 = vst.msk [vmem:[#allocation3 + $0x3c] sm:$0xf] %vm2771_vm7, %v2706_v25  ;;  %v2963_v4 = vpop.permute.xlu0 %2962  ;;  %v3546_v25 = vrot.slane %v3545_v20, 4 }
 0x2a6   : > { %v4361_v0 = vadd.f32 %v7877_v1, %v4328_v17  ;;  %3044 = vst.msk [vmem:[#allocation3 + $0x3c] sm:$0xf] %vm3028_vm8, %v2963_v4  ;;  %3955 = vrot.lane.b32.xlu2 %v3876_v34, %s5816_s20  ;;  %v7927_v17 = vld [vmem:[#allocation2 + $0x9c] sm:$0xf] }
 0x2a7   : > { %3257 = vst.msk [vmem:[#allocation3 + $0x3c] sm:$0xf] %vm3241_vm10, %v3176_v12 }
 0x2a8   : > { %v4393_v26 = vmax.f32 %v4361_v0, 0.0  ;;  %v2197_v53 = vpop.permute.xlu2 %2196  ;;  %v4827_v0 = vpop.f32.mrf.mxu3 }
 0x2a9   : > { %2276 = vst.msk [vmem:[#allocation3 + $0x44] sm:$0xf] %vm2258_vm5, %v2197_v53  ;;  %v2580_v53 = vshrl.u32 %v7927_v17, 16  ;;  %v4904_v33 = vmul.f32 %v7772_v30, %v4827_v0 }
 0x2aa   : > { %3700 = vrot.lane.b32.xlu1 %v3537_v52, %s5815_s19  ;;  %v4420_v12 = vpack.c.bf16 %v4393_v26, %v4392_v14  ;;  %v3551_v14 = vsel %vm6009_vm9, %v3546_v25, %v3550_v45  ;;  %v5370_v26 = vld [vmem:[#allocation2 + $0xa4] sm:$0x1]  ;;  %v2583_v52 = vshll.u32 %v7927_v17, 16 }
 0x2ab   : > { %2719 = vrot.lane.b32.xlu0 %v2568_v13, %s5812_s16  ;;  %v3885_v23 = vrot.slane %v5370_v26, 5  ;;  %v2582_v56 = vrot.slane %v2580_v53, 4  ;;  %v3558_v16 = vshll.u32 %v5370_v26, 16  ;;  %v4937_v20 = vadd.f32 %v7794_v32, %v4904_v33 }
 0x2ac   : > { %v1720_v59 = vpop.permute.xlu1 %1719  ;;  %5491 = vmatmul.msk.bf16.gmra.mxu2 %vm4433_vm4, %v4420_v12  ;;  %v2585_v62 = vrot.slane %v2583_v52, 5 }
 0x2ad   : > { %1785 = vst.msk [vmem:[#allocation3 + $0x7c] sm:$0xf] %vm1753_vm3, %v1720_v59  ;;  %v3687_v54 = vpop.permute.xlu0 %3686  ;;  %vm8693_vm3 = vcmask 93248  }
 0x2ae   : > { %2208 = vrot.lane.b32.xlu2 %v7865_v29, %s5811_s15  ;;  %v4903_v29 = vmul.f32 %v7772_v30, %v4825_v47 }
 0x2b0   : > { %v7907_v2 = vpop.permute.xlu2 %2964  ;;  %v4936_v4 = vadd.f32 %v7794_v32, %v4903_v29  ;;  %v3886_v29 = vsel %vm5951_vm6, %v3884_v35, %v3885_v23 }
 0x2b2   : > { %2206 = vrot.lane.b32.xlu1 %v7830_v28, %s5811_s15  ;;  %v2900_v28 = vsel %vm5951_vm6, %v5330_v58, %v2899_v19  ;;  %v3554_v19 = vrot.slane %v3552_v49, 4 }
 0x2b3   : > { %2978 = vrot.lane.b32.xlu0 %v2903_v50, %s5813_s17  ;;  %v4263_v42 = vpop.f32.mrf.mxu1 }
 0x2b4   : > { %v3174_v3 = vpop.permute.xlu1 %3173  ;;  %v4329_v55 = vmul.f32 %v7860_v46, %v4263_v42  ;;  %v3555_v47 = vor.u32 %v3554_v19, %v3550_v45  ;;  %v7961_v42 = vld [vmem:[#allocation2 + $0xa0] sm:$0xf] }
 0x2b5   : > { %3256 = vst.msk [vmem:[#allocation3 + $0x38] sm:$0xf] %vm3241_vm10, %v3174_v3  ;;  %v3946_v7 = vpop.permute.xlu0 %3945  ;;  %v2589_v45 = vshll.u32 %v7961_v42, 16  ;;  %v2906_v26 = vrot.slane %v7961_v42, 5 }
 0x2b6   : > { %3769 = vst.msk [vmem:[#allocation3 + $0x38] sm:$0xf] %vm3754_vm12, %v3687_v54  ;;  %2976 = vrot.lane.b32.xlu2 %v2900_v28, %s5813_s17  ;;  %v4362_v13 = vadd.f32 %v7877_v1, %v4329_v55 }
 0x2b7   : > { %4026 = vst.msk [vmem:[#allocation3 + $0x38] sm:$0xf] %vm4011_vm13, %v7863_v18  ;;  %v4499_v44 = vpop.f32.mrf.mxu2  ;;  %v2578_v18 = vsel %vm6009_vm9, %v2573_v36, %v2577_v10  ;;  %v2586_v10 = vor.u32 %v2585_v62, %v2582_v56  ;;  %v8003_v56 = vld [vmem:[#allocation2 + $0xac] sm:$0xf] }
 0x2b8   : > { %v4577_v39 = vmul.f32 %v7786_v40, %v4499_v44  ;;  %v7932_v34 = vpop.permute.xlu2 %3179  ;;  %v4394_v6 = vmax.f32 %v4362_v13, 0.0  ;;  %v3560_v44 = vrot.slane %v3558_v16, 5 }
 0x2ba   : > { %2721 = vrot.lane.b32.xlu1 %v2578_v18, %s5812_s16  ;;  %v4610_v11 = vadd.f32 %v7804_v38, %v4577_v39  ;;  %v7977_v18 = vld [vmem:[#allocation2 + $0xa8] sm:$0xf] }
 0x2bb   : > { %3702 = vrot.lane.b32.xlu0 %v3551_v14, %s5815_s19  ;;  %v4265_v43 = vpop.f32.mrf.mxu1  ;;  %v2591_v14 = vrot.slane %v2589_v45, 5  ;;  %v3563_v53 = vshrl.u32 %v7977_v18, 16  ;;  %v3566_v52 = vshll.u32 %v7977_v18, 16 }
 0x2bc   : > { %v3689_v63 = vpop.permute.xlu1 %3688  ;;  %v4968_v12 = vadd.f32 %v4936_v4, %v4610_v11  ;;  %v4330_v51 = vmul.f32 %v7860_v46, %v4265_v43  ;;  %v2587_v4 = vrot.slane %v2586_v10, 4  ;;  %v5309_v43 = vld [vmem:[#allocation2 + $0xa4] sm:$0x1] }
 0x2bd   : > { %3770 = vst.msk [vmem:[#allocation3 + $0x3c] sm:$0xf] %vm3754_vm12, %v3689_v63  ;;  %v2708_v59 = vpop.permute.xlu0 %2707  ;;  %v3565_v33 = vrot.slane %v3563_v53, 4 }
 0x2be   : > { %4027 = vst.msk [vmem:[#allocation3 + $0x3c] sm:$0xf] %vm4011_vm13, %v3946_v7  ;;  %v5000_v54 = vmax.f32 %v4968_v12, 0.0  ;;  %v4363_v24 = vadd.f32 %v7877_v1, %v4330_v51  ;;  %3191 = vrot.lane.b32.xlu2 %v7909_v31, %s5814_s18  ;;  %v5394_v31 = vrot.slane %v7888_v9, 9  ;;  %v2908_v12 = vrot.slane %v2906_v26, 4 }
 0x2bf   : > { %v4501_v60 = vpop.f32.mrf.mxu2  ;;  %v2909_v51 = vrot.slane %v5309_v43, 5 }
 0x2c0   : > { %5033 = vst.msk [vmem:[%s7832_s23 + $0x10] sm:$0xff] %vm5030_vm2, %v5000_v54  ;;  %v4395_v58 = vmax.f32 %v4363_v24, 0.0  ;;  %v4578_v50 = vmul.f32 %v7786_v40, %v4501_v60  ;;  %v7956_v3 = vpop.permute.xlu2 %3947  ;;  %v3883_v55 = vsel %vm5951_vm6, %v5394_v31, %v3882_v21  ;;  %v2593_v21 = vshrl.u32 %v7961_v42, 16  ;;  %v8016_v31 = vld [vmem:[#allocation2 + $0xa8] sm:$0xf] }
 0x2c1   : > { %v2599_v54 = vshll.u32 %v5309_v43, 16  ;;  %v5331_v24 = vrot.slane %v7927_v17, 9 }
 0x2c2   : > { %3189 = vrot.lane.b32.xlu1 %v7888_v9, %s5814_s18  ;;  %v4611_v27 = vadd.f32 %v7804_v38, %v4578_v50  ;;  %v4421_v36 = vpack.c.bf16 %v4395_v58, %v4394_v6  ;;  %v3556_v9 = vrot.slane %v3555_v47, 4  ;;  %v2595_v19 = vrot.slane %v2593_v21, 4 }
 0x2c3   : > { %3961 = vrot.lane.b32.xlu0 %v3886_v29, %s5816_s20  ;;  %v2601_v16 = vrot.slane %v2599_v54, 5  ;;  %v3572_v6 = vshll.u32 %v8003_v56, 16 }
 0x2c4   : > { %v2195_v7 = vpop.permute.xlu1 %2194  ;;  %v4969_v28 = vadd.f32 %v4937_v20, %v4611_v27  ;;  %5492 = vmatmul.msk.bf16.gmra.mxu2 %vm4433_vm4, %v4421_v36  ;;  %v3561_v11 = vsel %vm6009_vm9, %v3556_v9, %v3560_v44  ;;  %v2596_v23 = vor.u32 %v2595_v19, %v2591_v14  ;;  %v4830_v20 = vpop.f32.mrf.mxu3  ;;  %v3576_v36 = vshrl.u32 %v8003_v56, 16 }
 0x2c5   : > { %2275 = vst.msk [vmem:[#allocation3 + $0x40] sm:$0xf] %vm2258_vm5, %v2195_v7  ;;  %v5612_v25 = vld [vmem:[#allocation3 + $0x38] sm:$0xff]  ;;  %v2967_v49 = vpop.permute.xlu0 %2966  ;;  %v3574_v29 = vrot.slane %v3572_v6, 5  ;;  %v2604_v9 = vshrl.u32 %v8016_v31, 16  ;;  %v2607_v44 = vshll.u32 %v8016_v31, 16 }
 0x2c6   : > { %2788 = vst.msk [vmem:[#allocation3 + $0x40] sm:$0xf] %vm2771_vm7, %v2708_v59  ;;  %v5001_v39 = vmax.f32 %v4969_v28, 0.0  ;;  %3959 = vrot.lane.b32.xlu2 %v3883_v55, %s5816_s20  ;;  %5478 = vmatmul.msk.bf16.gmra.mxu1 %vm4176_vm1, %v5612_v25  ;;  %v3568_v59 = vrot.slane %v3566_v52, 5  ;;  %v2597_v47 = vrot.slane %v2596_v23, 4  ;;  %v3889_v25 = vrot.slane %v8003_v56, 5 }
 0x2c7   : > { %3045 = vst.msk [vmem:[#allocation3 + $0x40] sm:$0xf] %vm3028_vm8, %v7907_v2  ;;  %v2592_v2 = vsel %vm6009_vm9, %v2587_v4, %v2591_v14  ;;  %v5720_v55 = vld [vmem:[%s8649_s4 + $0x1] ss:$0 sm:$0xff]  ;;  %v4905_v4 = vmul.f32 %v7772_v30, %v4830_v20  ;;  %v2609_v53 = vrot.slane %v2607_v44, 5  ;;  %v5395_v23 = vrot.slane %v7977_v18, 9 }
 0x2c8   : > { %5034 = vst.msk [vmem:[%s7832_s23 + $0x18] sm:$0xff] %vm5030_vm2, %v5001_v39  ;;  %v2201_v0 = vpop.permute.xlu2 %2200  ;;  %v3569_v62 = vor.u32 %v3568_v59, %v3565_v33  ;;  %v2602_v27 = vsel %vm6009_vm9, %v2597_v47, %v2601_v16  ;;  %v3891_v21 = vrot.slane %v3889_v25, 4  ;;  %v8045_v33 = vld [vmem:[#allocation2 + $0xac] sm:$0xf] }
 0x2c9   : > { %2278 = vst.msk [vmem:[#allocation3 + $0x4c] sm:$0xf] %vm2258_vm5, %v2201_v0  ;;  %v3578_v0 = vrot.slane %v3576_v36, 4  ;;  %v1178_v36 = vld [vmem:[#allocation2 + $0xc0] sm:$0xf]  ;;  %v2913_v48 = vrot.slane %v8045_v33, 5 }
 0x2ca   : > { %3704 = vrot.lane.b32.xlu1 %v3561_v11, %s5815_s19  ;;  %v3570_v50 = vrot.slane %v3569_v62, 4 }
 0x2cb   : > { %2723 = vrot.lane.b32.xlu0 %v2592_v2, %s5812_s16 }
 0x2cc   : > { %v2710_v63 = vpop.permute.xlu1 %2709  ;;  %v609_v10 = vpop.f32.mrf.mxu0  ;;  %v3575_v28 = vsel %vm6009_vm9, %v3570_v50, %v3574_v29 }
 0x2cd   : > { %2789 = vst.msk [vmem:[#allocation3 + $0x44] sm:$0xf] %vm2771_vm7, %v2710_v63  ;;  %v3691_v13 = vpop.permute.xlu0 %3690  ;;  %v4832_v54 = vpop.f32.mrf.mxu3 }
 0x2ce   : > { %3046 = vst.msk [vmem:[#allocation3 + $0x44] sm:$0xf] %vm3028_vm8, %v2967_v49  ;;  %2212 = vrot.lane.b32.xlu2 %v7961_v42, %s5811_s15  ;;  %v5373_v49 = vld [vmem:[#allocation2 + $0xb0] sm:$0x1] }
 0x2cf   : > { %3259 = vst.msk [vmem:[#allocation3 + $0x44] sm:$0xf] %vm3241_vm10, %v7932_v34  ;;  %v2910_v34 = vsel %vm5951_vm6, %v2908_v12, %v2909_v51  ;;  %v3892_v2 = vrot.slane %v5373_v49, 5  ;;  %v3582_v63 = vshll.u32 %v5373_v49, 16  ;;  %v3579_v51 = vor.u32 %v3578_v0, %v3574_v29 }
 0x2d0   : > { %v7998_v35 = vpop.permute.xlu2 %2968 }
 0x2d1   : > { %v3584_v6 = vrot.slane %v3582_v63, 5  ;;  %v3580_v29 = vrot.slane %v3579_v51, 4 }
 0x2d2   : > { %2210 = vrot.lane.b32.xlu1 %v7927_v17, %s5811_s15  ;;  %v2907_v17 = vsel %vm5951_vm6, %v5331_v24, %v2906_v26  ;;  %v2606_v26 = vrot.slane %v2604_v9, 4 }
 0x2d3   : > { %2982 = vrot.lane.b32.xlu0 %v2910_v34, %s5813_s17 }
 0x2d4   : > { %v3178_v60 = vpop.permute.xlu1 %3177  ;;  %v611_v59 = vpop.f32.mrf.mxu0  ;;  %v2610_v47 = vor.u32 %v2609_v53, %v2606_v26 }
 0x2d5   : > { %3258 = vst.msk [vmem:[#allocation3 + $0x40] sm:$0xf] %vm3241_vm10, %v3178_v60  ;;  %v3950_v58 = vpop.permute.xlu0 %3949  ;;  %v3893_v60 = vsel %vm5951_vm6, %v3891_v21, %v3892_v2 }
 0x2d6   : > { %3771 = vst.msk [vmem:[#allocation3 + $0x40] sm:$0xf] %vm3754_vm12, %v3691_v13  ;;  %2980 = vrot.lane.b32.xlu2 %v2907_v17, %s5813_s17  ;;  %v4938_v13 = vadd.f32 %v7794_v32, %v4905_v4  ;;  %v2611_v44 = vrot.slane %v2610_v47, 4  ;;  %v2915_v47 = vrot.slane %v2913_v48, 4 }
 0x2d7   : > { %4028 = vst.msk [vmem:[#allocation3 + $0x40] sm:$0xf] %vm4011_vm13, %v7956_v3  ;;  %v5719_v3 = vld [vmem:[%s8649_s4] ss:$0 sm:$0xff] }
 0x2d8   : > { %v8018_v42 = vpop.permute.xlu2 %3183  ;;  %v645_v7 = vmul.f32 %v5719_v3, %v609_v10  ;;  %v646_v34 = vmul.f32 %v5719_v3, %v611_v59  ;;  %v3890_v3 = vsel %vm5951_vm6, %v5395_v23, %v3889_v25 }
 0x2da   : > { %2725 = vrot.lane.b32.xlu1 %v2602_v27, %s5812_s16  ;;  %v678_v39 = vadd.f32 %v5720_v55, %v645_v7  ;;  %v679_v50 = vadd.f32 %v5720_v55, %v646_v34  ;;  %v4906_v27 = vmul.f32 %v7772_v30, %v4832_v54  ;;  %v1182_v54 = vld [vmem:[#allocation2 + $0xc8] sm:$0x1] }
 0x2db   : > { %3706 = vrot.lane.b32.xlu0 %v3575_v28, %s5815_s19 }
 0x2dc   : > { %v3693_v45 = vpop.permute.xlu1 %3692  ;;  %v710_v14 = vmax.f32 %v678_v39, 0.0  ;;  %v711_v28 = vmax.f32 %v679_v50, 0.0  ;;  %v8066_v39 = vld [vmem:[#allocation2 + $0xb4] sm:$0xf]  ;;  %v4939_v0 = vadd.f32 %v7794_v32, %v4906_v27 }
 0x2dd   : > { %3772 = vst.msk [vmem:[#allocation3 + $0x44] sm:$0xf] %vm3754_vm12, %v3693_v45  ;;  %v2712_v11 = vpop.permute.xlu0 %2711  ;;  %v3587_v63 = vshrl.u32 %v8066_v39, 16 }
 0x2de   : > { %4029 = vst.msk [vmem:[#allocation3 + $0x44] sm:$0xf] %vm4011_vm13, %v3950_v58  ;;  %3195 = vrot.lane.b32.xlu2 %v8003_v56, %s5814_s18  ;;  %v742_v43 = vpack.c.bf16 %v710_v14, %v710_v14  ;;  %v2613_v58 = vshll.u32 %v8045_v33, 16  ;;  %v743_v4 = vpack.c.bf16 %v711_v28, %v711_v28  ;;  %v2617_v14 = vshrl.u32 %v8045_v33, 16 }
 0x2df   : > { %v4504_v52 = vpop.f32.mrf.mxu2 }
 0x2e0   : > { %v4579_v19 = vmul.f32 %v7786_v40, %v4504_v52  ;;  %v8043_v12 = vpop.permute.xlu2 %3951  ;;  %v1003_v24 = vshrl.u32 %v742_v43, 16  ;;  %v1006_v56 = vshll.u32 %v742_v43, 16  ;;  %v2615_v49 = vrot.slane %v2613_v58, 5  ;;  %v5312_v52 = vld [vmem:[#allocation2 + $0xb0] sm:$0x1] }
 0x2e1   : > { %v1011_v21 = vshrl.u32 %v743_v4, 16  ;;  %v1014_v2 = vshll.u32 %v743_v4, 16  ;;  %v3590_v43 = vshll.u32 %v8066_v39, 16  ;;  %v2619_v23 = vrot.slane %v2617_v14, 4 }
 0x2e2   : > { %3193 = vrot.lane.b32.xlu1 %v7977_v18, %s5814_s18  ;;  %v4612_v62 = vadd.f32 %v7804_v38, %v4579_v19  ;;  %v1005_v17 = vrot.slane %v1003_v24, 7  ;;  %v2616_v53 = vsel %vm6009_vm9, %v2611_v44, %v2615_v49 }
 0x2e3   : > { %3965 = vrot.lane.b32.xlu0 %v3893_v60, %s5816_s20  ;;  %v1013_v51 = vrot.slane %v1011_v21, 7 }
 0x2e4   : > { %v2199_v16 = vpop.permute.xlu1 %2198  ;;  %v4970_v20 = vadd.f32 %v4938_v13, %v4612_v62  ;;  %v1008_v7 = vor.u32 %v1006_v56, %v1005_v17  ;;  %v1009_v13 = vrot.slane %v1005_v17, 4  ;;  %v2916_v56 = vrot.slane %v5312_v52, 5 }
 0x2e5   : > { %2277 = vst.msk [vmem:[#allocation3 + $0x48] sm:$0xf] %vm2258_vm5, %v2199_v16  ;;  %v5613_v18 = vld [vmem:[#allocation3 + $0x40] sm:$0xff]  ;;  %v2971_v10 = vpop.permute.xlu0 %2970  ;;  %v1016_v34 = vor.u32 %v1014_v2, %v1013_v51  ;;  %v1018_v62 = vrot.slane %v1013_v51, 4  ;;  %v3589_v16 = vrot.slane %v3587_v63, 4 }
 0x2e6   : > { %2790 = vst.msk [vmem:[#allocation3 + $0x48] sm:$0xf] %vm2771_vm7, %v2712_v11  ;;  %v5002_v9 = vmax.f32 %v4970_v20, 0.0  ;;  %3963 = vrot.lane.b32.xlu2 %v3890_v3, %s5816_s20  ;;  %5479 = vmatmul.msk.bf16.gmra.mxu1 %vm4176_vm1, %v5613_v18  ;;  %v1179_v55 = vsel %vm6099_vm11, %v1008_v7, %v1178_v36  ;;  %v3585_v11 = vsel %vm6009_vm9, %v3580_v29, %v3584_v6  ;;  %v3592_v6 = vrot.slane %v3590_v43, 5  ;;  %v8123_v2 = vld [vmem:[#allocation2 + $0xb8] sm:$0xf] }
 0x2e7   : > { %3047 = vst.msk [vmem:[#allocation3 + $0x48] sm:$0xf] %vm3028_vm8, %v7998_v35  ;;  %v4506_v45 = vpop.f32.mrf.mxu2  ;;  %v1017_v58 = vsel %vm6106_vm14, %v1009_v13, %v1016_v34  ;;  %v1183_v17 = vsel %vm6112_vm15, %v1018_v62, %v1182_v54  ;;  %v2620_v20 = vor.u32 %v2619_v23, %v2615_v49  ;;  %v2623_v18 = vshll.u32 %v5312_v52, 16  ;;  %vm8689_vm14 = vmmov %vm8687_vm0 }
 0x2e8   : > { %5035 = vst.msk [vmem:[%s7832_s23 + $0x20] sm:$0xff] %vm5030_vm2, %v5002_v9  ;;  %v4580_v25 = vmul.f32 %v7786_v40, %v4506_v45  ;;  %v2205_v35 = vpop.permute.xlu2 %2204  ;;  %vm8688_vm11 = vcmask 27648   ;;  %v2917_v57 = vsel %vm5951_vm6, %v2915_v47, %v2916_v56  ;;  %v3593_v27 = vor.u32 %v3592_v6, %v3589_v16  ;;  %v8148_v6 = vld [vmem:[#allocation2 + $0xbc] sm:$0x1]  ;;  %vm8690_vm15 = vmmov %vm8687_vm0 }
 0x2e9   : > { %2280 = vst.msk [vmem:[#allocation3 + $0x54] sm:$0xf] %vm2258_vm5, %v2205_v35  ;;  %v2621_v29 = vrot.slane %v2620_v20, 4  ;;  %v2625_v36 = vrot.slane %v2623_v18, 5  ;;  %v2637_v43 = vshll.u32 %v8123_v2, 16  ;;  %v2641_v23 = vshrl.u32 %v8123_v2, 16 }
 0x2ea   : > { %3708 = vrot.lane.b32.xlu1 %v3585_v11, %s5815_s19  ;;  %v4613_v26 = vadd.f32 %v7804_v38, %v4580_v25  ;;  %1180 = vst [vmem:[#allocation2 + $0xc0] sm:$0xf] %v1179_v55  ;;  %v3594_v7 = vrot.slane %v3593_v27, 4  ;;  %v1939_v20 = vrot.slane %v1937_v37, 4  ;;  %v5721_v18 = vld [vmem:[#allocation2 + $0xb0] sm:$0x1] }
 0x2eb   : > { %2727 = vrot.lane.b32.xlu0 %v2616_v53, %s5812_s16  ;;  %1181 = vst.msk [vmem:[#allocation2 + $0xc4] sm:$0xf] %vm8688_vm11, %v1017_v58  ;;  %v2626_v9 = vsel %vm6009_vm9, %v2621_v29, %v2625_v36  ;;  %v5396_v53 = vrot.slane %v8066_v39, 9  ;;  %v8144_v47 = vrot.slane %v2637_v43, 5  ;;  %v2643_v16 = vrot.slane %v2641_v23, 4 }
 0x2ec   : > { %v2714_v19 = vpop.permute.xlu1 %2713  ;;  %v4971_v59 = vadd.f32 %v4939_v0, %v4613_v26  ;;  %1184 = vst [vmem:[#allocation2 + $0xc8] sm:$0x1] %v1183_v17  ;;  %v5629_v26 = vld [vmem:[%s5922_s21 + $0x30] sm:$0xff]  ;;  %v4835_v34 = vpop.f32.mrf.mxu3  ;;  %v2920_v5 = vrot.slane %v8123_v2, 5 }
 0x2ed   : > { %2791 = vst.msk [vmem:[#allocation3 + $0x4c] sm:$0xf] %vm2771_vm7, %v2714_v19  ;;  %v3695_v24 = vpop.permute.xlu0 %3694  ;;  %5573 = vmatmul.msk.bf16.gmra.mxu3 %vm8689_vm14, %v5629_v26  ;;  %v5313_v19 = vld [vmem:[#allocation2 + $0xb4] sm:$0xf]  ;;  %v2644_v27 = vor.u32 %v2643_v16, %v8144_v47 }
 0x2ee   : > { %3048 = vst.msk [vmem:[#allocation3 + $0x4c] sm:$0xf] %vm3028_vm8, %v2971_v10  ;;  %v5003_v60 = vmax.f32 %v4971_v59, 0.0  ;;  %2216 = vrot.lane.b32.xlu2 %v8045_v33, %s5811_s15  ;;  %v5375_v33 = vld [vmem:[#allocation2 + $0xb8] sm:$0xf]  ;;  %v2631_v56 = vshll.u32 %v5313_v19, 16 }
 0x2ef   : > { %3261 = vst.msk [vmem:[#allocation3 + $0x4c] sm:$0xf] %vm3241_vm10, %v8018_v42  ;;  %v5332_v42 = vrot.slane %v8016_v31, 9  ;;  %v3596_v10 = vshll.u32 %v5375_v33, 16  ;;  %v3600_v45 = vshrl.u32 %v5375_v33, 16  ;;  %v3896_v55 = vrot.slane %v5375_v33, 5 }
 0x2f0   : > { %5036 = vst.msk [vmem:[%s7832_s23 + $0x28] sm:$0xff] %vm5030_vm2, %v5003_v60  ;;  %v2973_v50 = vpop.permute.xlu2 %2972  ;;  %v5333_v37 = vrot.slane %v5313_v19, 9 }
 0x2f1   : > { %v3598_v44 = vrot.slane %v3596_v10, 5  ;;  %v3602_v25 = vrot.slane %v3600_v45, 4  ;;  %v3898_v35 = vrot.slane %v3896_v55, 4  ;;  %v3897_v54 = vsel %vm5951_vm6, %v5396_v53, %v3896_v55  ;;  %v5377_v43 = vld [vmem:[#allocation2 + $0xc0] sm:$0xf] }
 0x2f2   : > { %2214 = vrot.lane.b32.xlu1 %v8016_v31, %s5811_s15  ;;  %v2914_v31 = vsel %vm5951_vm6, %v5332_v42, %v2913_v48  ;;  %v1940_v42 = vrot.slane %v5721_v18, 5 }
 0x2f3   : > { %2986 = vrot.lane.b32.xlu0 %v2917_v57, %s5813_s17  ;;  %v3599_v49 = vsel %vm6009_vm9, %v3594_v7, %v3598_v44  ;;  %v3603_v48 = vor.u32 %v3602_v25, %v3598_v44  ;;  %v4907_v57 = vmul.f32 %v7772_v30, %v4835_v34  ;;  %v2645_v44 = vrot.slane %v2644_v27, 4 }
 0x2f4   : > { %v3182_v61 = vpop.permute.xlu1 %3181  ;;  %v1941_v10 = vsel %vm5951_vm6, %v1939_v20, %v1940_v42 }
 0x2f5   : > { %3260 = vst.msk [vmem:[#allocation3 + $0x48] sm:$0xf] %vm3241_vm10, %v3182_v61  ;;  %v3954_v3 = vpop.permute.xlu0 %3953  ;;  %v3604_v51 = vrot.slane %v3603_v48, 4  ;;  %v2647_v61 = vshll.u32 %v8148_v6, 16  ;;  %v4940_v7 = vadd.f32 %v7794_v32, %v4907_v57  ;;  %v8212_v57 = vld [vmem:[#allocation2 + $0xc0] sm:$0xf] }
 0x2f6   : > { %3773 = vst.msk [vmem:[#allocation3 + $0x48] sm:$0xf] %vm3754_vm12, %v3695_v24  ;;  %2984 = vrot.lane.b32.xlu2 %v2914_v31, %s5813_s17  ;;  %v2628_v24 = vshrl.u32 %v5313_v19, 16 }
 0x2f7   : > { %4030 = vst.msk [vmem:[#allocation3 + $0x48] sm:$0xf] %vm4011_vm13, %v8043_v12  ;;  %v5376_v12 = vld [vmem:[#allocation2 + $0xbc] sm:$0x1]  ;;  %v2649_v45 = vrot.slane %v2647_v61, 5 }
 0x2f8   : > { %v8110_v28 = vpop.permute.xlu2 %3187  ;;  %v3899_v11 = vrot.slane %v5376_v12, 5  ;;  %v3606_v21 = vshll.u32 %v5376_v12, 16  ;;  %v2630_v17 = vrot.slane %v2628_v24, 4  ;;  %v8174_v12 = vld [vmem:[#allocation2 + $0xc4] sm:$0xf] }
 0x2f9   : > { %v2650_v48 = vsel %vm6009_vm9, %v2645_v44, %v2649_v45  ;;  %v3903_v42 = vrot.slane %v8174_v12, 5 }
 0x2fa   : > { %2729 = vrot.lane.b32.xlu1 %v2626_v9, %s5812_s16  ;;  %v3900_v52 = vsel %vm5951_vm6, %v3898_v35, %v3899_v11  ;;  %v3608_v59 = vrot.slane %v3606_v21, 5 }
 0x2fb   : > { %3710 = vrot.lane.b32.xlu0 %v3599_v49, %s5815_s19  ;;  %v4837_v49 = vpop.f32.mrf.mxu3 }
 0x2fc   : > { %v3697_v4 = vpop.permute.xlu1 %3696  ;;  %v3609_v60 = vsel %vm6009_vm9, %v3604_v51, %v3608_v59  ;;  %v4908_v21 = vmul.f32 %v7772_v30, %v4837_v49 }
 0x2fd   : > { %3774 = vst.msk [vmem:[#allocation3 + $0x4c] sm:$0xf] %vm3754_vm12, %v3697_v4  ;;  %v2716_v0 = vpop.permute.xlu0 %2715  ;;  %v2921_v4 = vsel %vm5951_vm6, %v5333_v37, %v2920_v5 }
 0x2fe   : > { %4031 = vst.msk [vmem:[#allocation3 + $0x4c] sm:$0xf] %vm4011_vm13, %v3954_v3  ;;  %3199 = vrot.lane.b32.xlu2 %v5375_v33, %s5814_s18  ;;  %v4941_v59 = vadd.f32 %v7794_v32, %v4908_v21  ;;  %v2922_v32 = vrot.slane %v2920_v5, 4 }
 0x300   : > { %v8121_v14 = vpop.permute.xlu2 %3955 }
 0x302   : > { %3197 = vrot.lane.b32.xlu1 %v8066_v39, %s5814_s18 }
 0x303   : > { %3969 = vrot.lane.b32.xlu0 %v3900_v52, %s5816_s20  ;;  %v3620_v52 = vshll.u32 %v8174_v12, 16 }
 0x304   : > { %v2203_v63 = vpop.permute.xlu1 %2202 }
 0x305   : > { %2279 = vst.msk [vmem:[#allocation3 + $0x50] sm:$0xf] %vm2258_vm5, %v2203_v63  ;;  %v5614_v13 = vld [vmem:[#allocation3 + $0x48] sm:$0xff]  ;;  %v2975_v39 = vpop.permute.xlu0 %2974  ;;  %v3624_v63 = vshrl.u32 %v8174_v12, 16 }
 0x306   : > { %2792 = vst.msk [vmem:[#allocation3 + $0x50] sm:$0xf] %vm2771_vm7, %v2716_v0  ;;  %3967 = vrot.lane.b32.xlu2 %v3897_v54, %s5816_s20  ;;  %5480 = vmatmul.msk.bf16.gmra.mxu1 %vm4176_vm1, %v5614_v13  ;;  %v3614_v54 = vshll.u32 %v5377_v43, 16 }
 0x307   : > { %3049 = vst.msk [vmem:[#allocation3 + $0x50] sm:$0xf] %vm3028_vm8, %v2973_v50  ;;  %v2633_v50 = vrot.slane %v2631_v56, 5  ;;  %v3626_v56 = vrot.slane %v3624_v63, 4 }
 0x308   : > { %v2209_v62 = vpop.permute.xlu2 %2208 }
 0x309   : > { %2282 = vst.msk [vmem:[#allocation3 + $0x5c] sm:$0xf] %vm2258_vm5, %v2209_v62  ;;  %v2634_v3 = vor.u32 %v2633_v50, %v2630_v17  ;;  %v8201_v62 = vld [vmem:[#allocation2 + $0xc8] sm:$0x1]  ;;  %v2923_v17 = vrot.slane %v8148_v6, 5 }
 0x30a   : > { %3712 = vrot.lane.b32.xlu1 %v3609_v60, %s5815_s19  ;;  %v3630_v20 = vshll.u32 %v8201_v62, 16  ;;  %v3906_v21 = vrot.slane %v8201_v62, 5  ;;  %v5318_v62 = vld [vmem:[#allocation2 + $0xc8] sm:$0x1] }
 0x30b   : > { %2220 = vrot.lane.b32.xlu0 %v8123_v2, %s5811_s15  ;;  %v4268_v33 = vpop.f32.mrf.mxu1  ;;  %v2635_v0 = vrot.slane %v2634_v3, 4  ;;  %v2924_v6 = vsel %vm5951_vm6, %v2922_v32, %v2923_v17 }
 0x30c   : > { %v2718_v58 = vpop.permute.xlu1 %2717  ;;  %v3632_v5 = vrot.slane %v3630_v20, 5 }
 0x30d   : > { %2793 = vst.msk [vmem:[#allocation3 + $0x54] sm:$0xf] %vm2771_vm7, %v2718_v58  ;;  %v3699_v29 = vpop.permute.xlu0 %3698  ;;  %v2640_v51 = vsel %vm6009_vm9, %v2635_v0, %v8144_v47  ;;  %v3616_v58 = vrot.slane %v3614_v54, 5  ;;  %v8281_v54 = vld [vmem:[%s8650_s5 + $0x1] ss:$0 sm:$0xff] }
 0x30e   : > { %3050 = vst.msk [vmem:[#allocation3 + $0x54] sm:$0xf] %vm3028_vm8, %v2975_v39  ;;  %2218 = vrot.lane.b32.xlu2 %v5313_v19, %s5811_s15  ;;  %v3611_v39 = vshrl.u32 %v5377_v43, 16 }
 0x30f   : > { %3263 = vst.msk [vmem:[#allocation3 + $0x54] sm:$0xf] %vm3241_vm10, %v8110_v28  ;;  %v4509_v36 = vpop.f32.mrf.mxu2  ;;  %v4331_v28 = vmul.f32 %v7860_v46, %v4268_v33  ;;  %v5397_v33 = vrot.slane %v5377_v43, 9 }
 0x310   : > { %v4581_v31 = vmul.f32 %v7786_v40, %v4509_v36  ;;  %v8167_v9 = vpop.permute.xlu2 %2976  ;;  %v3613_v16 = vrot.slane %v3611_v39, 4  ;;  %v2652_v36 = vshrl.u32 %v8212_v57, 16 }
 0x311   : > { %v4364_v2 = vadd.f32 %v7877_v1, %v4331_v28  ;;  %v3904_v37 = vsel %vm5951_vm6, %v5397_v33, %v3903_v42  ;;  %v4840_v28 = vpop.f32.mrf.mxu3 }
 0x312   : > { %2007 = vrot.lane.b32.xlu1 %v1941_v10, %s5809_s22  ;;  %v4614_v55 = vadd.f32 %v7804_v38, %v4581_v31  ;;  %v3617_v61 = vor.u32 %v3616_v58, %v3613_v16  ;;  %v2655_v10 = vshll.u32 %v8212_v57, 16  ;;  %v2654_v49 = vrot.slane %v2652_v36, 4  ;;  %v8291_v58 = vld [vmem:[#allocation2 + $0xd0] sm:$0xf] }
 0x313   : > { %2988 = vrot.lane.b32.xlu0 %v2921_v4, %s5813_s17  ;;  %v4270_v11 = vpop.f32.mrf.mxu1 }
 0x314   : > { %v3186_v25 = vpop.permute.xlu1 %3185  ;;  %v4972_v35 = vadd.f32 %v4940_v7, %v4614_v55  ;;  %v4332_v26 = vmul.f32 %v7860_v46, %v4270_v11  ;;  %v3618_v7 = vrot.slane %v3617_v61, 4  ;;  %v2657_v55 = vrot.slane %v2655_v10, 5 }
 0x315   : > { %3262 = vst.msk [vmem:[#allocation3 + $0x50] sm:$0xf] %vm3241_vm10, %v3186_v25  ;;  %v3958_v53 = vpop.permute.xlu0 %3957  ;;  %v8238_v25 = vld [vmem:[#allocation2 + $0xc4] sm:$0xf] }
 0x316   : > { %3775 = vst.msk [vmem:[#allocation3 + $0x50] sm:$0xf] %vm3754_vm12, %v3699_v29  ;;  %v5004_v19 = vmax.f32 %v4972_v35, 0.0  ;;  %2733 = vrot.lane.b32.xlu2 %v2650_v48, %s5812_s16  ;;  %v4365_v30 = vadd.f32 %v7877_v1, %v4332_v26  ;;  %v3622_v1 = vrot.slane %v3620_v52, 5  ;;  %v2658_v0 = vor.u32 %v2657_v55, %v2654_v49  ;;  %v8259_v52 = vld [vmem:[%s8650_s5 + $0x3] ss:$0 sm:$0xff] }
 0x317   : > { %4032 = vst.msk [vmem:[#allocation3 + $0x50] sm:$0xf] %vm4011_vm13, %v8121_v14  ;;  %v4511_v13 = vpop.f32.mrf.mxu2  ;;  %v4396_v14 = vmax.f32 %v4364_v2, 0.0  ;;  %v3905_v48 = vrot.slane %v3903_v42, 4  ;;  %v2661_v2 = vshll.u32 %v8238_v25, 16  ;;  %v2671_v42 = vshll.u32 %v5318_v62, 16 }
 0x318   : > { %5037 = vst.msk [vmem:[%s7832_s23 + $0x30] sm:$0xff] %vm5030_vm2, %v5004_v19  ;;  %v4582_v46 = vmul.f32 %v7786_v40, %v4511_v13  ;;  %v8197_v23 = vpop.permute.xlu2 %3191  ;;  %v4397_v24 = vmax.f32 %v4365_v30, 0.0 }
 0x319   : > { %v2663_v13 = vrot.slane %v2661_v2, 5 }
 0x31a   : > { %2731 = vrot.lane.b32.xlu1 %v2640_v51, %s5812_s16  ;;  %v4615_v34 = vadd.f32 %v7804_v38, %v4582_v46  ;;  %v4422_v40 = vpack.c.bf16 %v4397_v24, %v4396_v14  ;;  %v3627_v38 = vor.u32 %v3626_v56, %v3622_v1  ;;  %v4842_v51 = vpop.f32.mrf.mxu3  ;;  %v2665_v46 = vshrl.u32 %v8238_v25, 16 }
 0x31b   : > { %3203 = vrot.lane.b32.xlu0 %v8174_v12, %s5814_s18  ;;  %v3623_v12 = vsel %vm6009_vm9, %v3618_v7, %v3622_v1  ;;  %v2927_v1 = vrot.slane %v8238_v25, 5 }
 0x31c   : > { %v3701_v60 = vpop.permute.xlu1 %3700  ;;  %v4973_v47 = vadd.f32 %v4941_v59, %v4615_v34  ;;  %5493 = vmatmul.msk.bf16.gmra.mxu2 %vm4433_vm4, %v4422_v40  ;;  %v3628_v29 = vrot.slane %v3627_v38, 4  ;;  %v8273_v59 = vld [vmem:[#allocation2 + $0xcc] sm:$0xf]  ;;  %v2667_v40 = vrot.slane %v2665_v46, 4  ;;  %v2930_v38 = vrot.slane %v5318_v62, 5 }
 0x31d   : > { %3776 = vst.msk [vmem:[#allocation3 + $0x54] sm:$0xf] %vm3754_vm12, %v3701_v60  ;;  %v2720_v50 = vpop.permute.xlu0 %2719  ;;  %v3638_v39 = vshll.u32 %v8273_v59, 16 }
 0x31e   : > { %4033 = vst.msk [vmem:[#allocation3 + $0x54] sm:$0xf] %vm4011_vm13, %v3958_v53  ;;  %v5005_v18 = vmax.f32 %v4973_v47, 0.0  ;;  %3201 = vrot.lane.b32.xlu2 %v5377_v43, %s5814_s18  ;;  %v3633_v45 = vsel %vm6009_vm9, %v3628_v29, %v3632_v5  ;;  %v8265_v43 = vld [vmem:[%s8650_s5] ss:$0 sm:$0xff]  ;;  %v2668_v61 = vor.u32 %v2667_v40, %v2663_v13  ;;  %v3644_v5 = vshll.u32 %v8291_v58, 16 }
 0x31f   : > { %v3640_v47 = vrot.slane %v3638_v39, 5  ;;  %v8342_v39 = vld [vmem:[%s8649_s4 + $0x2] ss:$0 sm:$0xff] }
 0x320   : > { %5038 = vst.msk [vmem:[%s7832_s23 + $0x38] sm:$0xff] %vm5030_vm2, %v5005_v18  ;;  %v8216_v27 = vpop.permute.xlu2 %3959 }
 0x322   : > { %2990 = vrot.lane.b32.xlu1 %v2924_v6, %s5813_s17 }
 0x323   : > { %3971 = vrot.lane.b32.xlu0 %v3904_v37, %s5816_s20  ;;  %v5334_v37 = vrot.slane %v8212_v57, 9 }
 0x324   : > { %v2207_v3 = vpop.permute.xlu1 %2206 }
 0x325   : > { %2281 = vst.msk [vmem:[#allocation3 + $0x58] sm:$0xf] %vm2258_vm5, %v2207_v3  ;;  %v5615_v31 = vld [vmem:[#allocation3 + $0x50] sm:$0xff]  ;;  %v2979_v44 = vpop.permute.xlu0 %2978  ;;  %v2928_v49 = vsel %vm5951_vm6, %v5334_v37, %v2927_v1 }
 0x326   : > { %2794 = vst.msk [vmem:[#allocation3 + $0x58] sm:$0xf] %vm2771_vm7, %v2720_v50  ;;  %3716 = vrot.lane.b32.xlu2 %v3633_v45, %s5815_s19  ;;  %5481 = vmatmul.msk.bf16.gmra.mxu1 %vm4176_vm1, %v5615_v31  ;;  %v2929_v50 = vrot.slane %v2927_v1, 4  ;;  %v2673_v31 = vrot.slane %v2671_v42, 5 }
 0x327   : > { %3051 = vst.msk [vmem:[#allocation3 + $0x58] sm:$0xf] %vm3028_vm8, %v8167_v9  ;;  %v8245_v9 = vld [vmem:[%s8650_s5 + $0x2] ss:$0 sm:$0xff] }
 0x328   : > { %v2213_v4 = vpop.permute.xlu2 %2212  ;;  %v4909_v11 = vmul.f32 %v8245_v9, %v4840_v28  ;;  %v4910_v34 = vmul.f32 %v8245_v9, %v4842_v51  ;;  %v2931_v10 = vsel %vm5951_vm6, %v2929_v50, %v2930_v38  ;;  %v3646_v28 = vrot.slane %v3644_v5, 5 }
 0x329   : > { %2284 = vst.msk [vmem:[#allocation3 + $0x64] sm:$0xf] %vm2258_vm5, %v2213_v4  ;;  %v3648_v4 = vshrl.u32 %v8291_v58, 16 }
 0x32a   : > { %3714 = vrot.lane.b32.xlu1 %v3623_v12, %s5815_s19  ;;  %v4942_v63 = vadd.f32 %v8259_v52, %v4909_v11  ;;  %v4943_v18 = vadd.f32 %v8259_v52, %v4910_v34  ;;  %v4845_v12 = vpop.f32.mrf.mxu3  ;;  %v3910_v11 = vrot.slane %v8291_v58, 5 }
 0x32b   : > { %2011 = vrot.lane.b32.xlu0 %v7644_v15, %s5809_s22  ;;  %v2659_v15 = vrot.slane %v2658_v0, 4 }
 0x32c   : > { %v2722_v35 = vpop.permute.xlu1 %2721 }
 0x32d   : > { %2795 = vst.msk [vmem:[#allocation3 + $0x5c] sm:$0xf] %vm2771_vm7, %v2722_v35  ;;  %v3703_v26 = vpop.permute.xlu0 %3702  ;;  %v2664_v24 = vsel %vm6009_vm9, %v2659_v15, %v2663_v13 }
 0x32e   : > { %3052 = vst.msk [vmem:[#allocation3 + $0x5c] sm:$0xf] %vm3028_vm8, %v2979_v44  ;;  %2009 = vrot.lane.b32.xlu2 %v7636_v41, %s5809_s22  ;;  %v3907_v41 = vsel %vm5951_vm6, %v3905_v48, %v3906_v21  ;;  %v2669_v44 = vrot.slane %v2668_v61, 4  ;;  %v3650_v48 = vrot.slane %v3648_v4, 4 }
 0x32f   : > { %3265 = vst.msk [vmem:[#allocation3 + $0x5c] sm:$0xf] %vm3241_vm10, %v8197_v23  ;;  %v4514_v53 = vpop.f32.mrf.mxu2  ;;  %v3635_v23 = vshrl.u32 %v8273_v59, 16 }
 0x330   : > { %v4583_v19 = vmul.f32 %v8265_v43, %v4514_v53  ;;  %v8268_v30 = vpop.permute.xlu2 %2980  ;;  %v2674_v0 = vsel %vm6009_vm9, %v2669_v44, %v2673_v31  ;;  %v4911_v53 = vmul.f32 %v8245_v9, %v4845_v12  ;;  %v3651_v13 = vor.u32 %v3650_v48, %v3646_v28 }
 0x331   : > { %v3637_v32 = vrot.slane %v3635_v23, 4  ;;  %v5398_v23 = vrot.slane %v8273_v59, 9 }
 0x332   : > { %3973 = vrot.lane.b32.xlu1 %v3907_v41, %s5816_s20  ;;  %v4616_v14 = vadd.f32 %v8281_v54, %v4583_v19  ;;  %v4847_v34 = vpop.f32.mrf.mxu3 }
 0x333   : > { %2735 = vrot.lane.b32.xlu0 %v2664_v24, %s5812_s16  ;;  %v3641_v29 = vor.u32 %v3640_v47, %v3637_v32  ;;  %v4912_v38 = vmul.f32 %v8245_v9, %v4847_v34 }
 0x334   : > { %v3190_v56 = vpop.permute.xlu1 %3189  ;;  %v4974_v60 = vadd.f32 %v4942_v63, %v4616_v14  ;;  %v3912_v63 = vrot.slane %v3910_v11, 4 }
 0x335   : > { %3264 = vst.msk [vmem:[#allocation3 + $0x58] sm:$0xf] %vm3241_vm10, %v3190_v56  ;;  %v3962_v16 = vpop.permute.xlu0 %3961  ;;  %v3642_v45 = vrot.slane %v3641_v29, 4 }
 0x336   : > { %3777 = vst.msk [vmem:[#allocation3 + $0x58] sm:$0xf] %vm3754_vm12, %v3703_v26  ;;  %v5006_v17 = vmax.f32 %v4974_v60, 0.0  ;;  %2224 = vrot.lane.b32.xlu2 %v8238_v25, %s5811_s15  ;;  %v5382_v26 = vld [vmem:[#allocation2 + $0xd4] sm:$0x1]  ;;  %v3652_v60 = vrot.slane %v3651_v13, 4 }
 0x337   : > { %4034 = vst.msk [vmem:[#allocation3 + $0x58] sm:$0xf] %vm4011_vm13, %v8216_v27  ;;  %v4516_v20 = vpop.f32.mrf.mxu2  ;;  %v5630_v27 = vld [vmem:[%s5922_s21 + $0x38] sm:$0xff]  ;;  %v3647_v35 = vsel %vm6009_vm9, %v3642_v45, %v3646_v28  ;;  %v3913_v19 = vrot.slane %v5382_v26, 5  ;;  %v3654_v51 = vshll.u32 %v5382_v26, 16 }
 0x338   : > { %5039 = vst.msk [vmem:[%s7832_s23 + $0x40] sm:$0xff] %vm5030_vm2, %v5006_v17  ;;  %v4584_v33 = vmul.f32 %v8265_v43, %v4516_v20  ;;  %v8301_v6 = vpop.permute.xlu2 %3195  ;;  %5574 = vmatmul.msk.bf16.gmra.mxu3 %vm8690_vm15, %v5630_v27  ;;  %v4945_v27 = vadd.f32 %v8259_v52, %v4912_v38 }
 0x339   : > { %v3914_v56 = vsel %vm5951_vm6, %v3912_v63, %v3913_v19  ;;  %v3656_v40 = vrot.slane %v3654_v51, 5  ;;  %v5632_v51 = vld [vmem:[%s5922_s21 + $0x48] sm:$0xff] }
 0x33a   : > { %2222 = vrot.lane.b32.xlu1 %v8212_v57, %s5811_s15  ;;  %v4617_v36 = vadd.f32 %v8281_v54, %v4584_v33 }
 0x33b   : > { %2994 = vrot.lane.b32.xlu0 %v2931_v10, %s5813_s17  ;;  %v3657_v42 = vsel %vm6009_vm9, %v3652_v60, %v3656_v40  ;;  %vm8692_vm9 = vmmov %vm8687_vm0 }
 0x33c   : > { %v3705_v3 = vpop.permute.xlu1 %3704  ;;  %v4975_v7 = vadd.f32 %v4943_v18, %v4617_v36 }
 0x33d   : > { %3778 = vst.msk [vmem:[#allocation3 + $0x5c] sm:$0xf] %vm3754_vm12, %v3705_v3  ;;  %v2724_v57 = vpop.permute.xlu0 %2723 }
 0x33e   : > { %4035 = vst.msk [vmem:[#allocation3 + $0x5c] sm:$0xf] %vm4011_vm13, %v3962_v16  ;;  %v5007_v55 = vmax.f32 %v4975_v7, 0.0  ;;  %2992 = vrot.lane.b32.xlu2 %v2928_v49, %s5813_s17  ;;  %v3911_v16 = vsel %vm5951_vm6, %v5398_v23, %v3910_v11  ;;  %v5631_v7 = vld [vmem:[%s5922_s21 + $0x40] sm:$0xff]  ;;  %vm8691_vm6 = vmmov %vm8687_vm0 }
 0x33f   : > { %vm8694_vm0 = vmmov %vm8693_vm3 }
 0x340   : > { %5040 = vst.msk [vmem:[%s7832_s23 + $0x48] sm:$0xff] %vm5030_vm2, %v5007_v55  ;;  %v8321_v25 = vpop.permute.xlu2 %3963  ;;  %vm8695_vm11 = vmmov %vm8691_vm6 }
 0x341   : > { %vm8696_vm14 = vmmov %vm8694_vm0 }
 0x342   : > { %2737 = vrot.lane.b32.xlu1 %v2674_v0, %s5812_s16 }
 0x343   : > { %v4273_v2 = vpop.f32.mrf.mxu1  ;;  %3718 = vrot.lane.b32.xlu0 %v3647_v35, %s5815_s19 }
 0x344   : > { %v2211_v21 = vpop.permute.xlu1 %2210  ;;  %v4333_v14 = vmul.f32 %v8342_v39, %v4273_v2 }
 0x345   : > { %2283 = vst.msk [vmem:[#allocation3 + $0x60] sm:$0xf] %vm2258_vm5, %v2211_v21  ;;  %v5616_v15 = vld [vmem:[#allocation3 + $0x58] sm:$0xff]  ;;  %v2983_v41 = vpop.permute.xlu0 %2982 }
 0x346   : > { %2796 = vst.msk [vmem:[#allocation3 + $0x60] sm:$0xf] %vm2771_vm7, %v2724_v57  ;;  %5482 = vmatmul.msk.bf16.gmra.mxu1 %vm4176_vm1, %v5616_v15  ;;  %3207 = vrot.lane.b32.xlu2 %v8291_v58, %s5814_s18  ;;  %v8359_v58 = vld [vmem:[%s8649_s4 + $0x3] ss:$0 sm:$0xff] }
 0x347   : > { %3053 = vst.msk [vmem:[#allocation3 + $0x60] sm:$0xf] %vm3028_vm8, %v8268_v30  ;;  %v4519_v46 = vpop.f32.mrf.mxu2  ;;  %v4944_v30 = vadd.f32 %v8259_v52, %v4911_v53 }
 0x348   : > { %v4585_v24 = vmul.f32 %v8265_v43, %v4519_v46  ;;  %v2217_v1 = vpop.permute.xlu2 %2216  ;;  %5575 = vmatmul.msk.bf16.gmra.mxu3 %vm8691_vm6, %v5631_v7 }
 0x349   : > { %2286 = vst.msk [vmem:[#allocation3 + $0x6c] sm:$0xf] %vm2258_vm5, %v2217_v1 }
 0x34a   : > { %3205 = vrot.lane.b32.xlu1 %v8273_v59, %s5814_s18  ;;  %v4618_v62 = vadd.f32 %v8281_v54, %v4585_v24  ;;  %v4366_v59 = vadd.f32 %v8359_v58, %v4333_v14 }
 0x34b   : > { %v4275_v47 = vpop.f32.mrf.mxu1  ;;  %3977 = vrot.lane.b32.xlu0 %v3914_v56, %s5816_s20 }
 0x34c   : > { %v2726_v32 = vpop.permute.xlu1 %2725  ;;  %v4976_v17 = vadd.f32 %v4944_v30, %v4618_v62  ;;  %v4334_v50 = vmul.f32 %v8342_v39, %v4275_v47  ;;  %v4398_v61 = vmax.f32 %v4366_v59, 0.0 }
 0x34d   : > { %2797 = vst.msk [vmem:[#allocation3 + $0x64] sm:$0xf] %vm2771_vm7, %v2726_v32  ;;  %v3707_v20 = vpop.permute.xlu0 %3706 }
 0x34e   : > { %3054 = vst.msk [vmem:[#allocation3 + $0x64] sm:$0xf] %vm3028_vm8, %v2983_v41  ;;  %v5008_v8 = vmax.f32 %v4976_v17, 0.0  ;;  %v4367_v18 = vadd.f32 %v8359_v58, %v4334_v50  ;;  %3975 = vrot.lane.b32.xlu2 %v3911_v16, %s5816_s20 }
 0x34f   : > { %3267 = vst.msk [vmem:[#allocation3 + $0x64] sm:$0xf] %vm3241_vm10, %v8301_v6  ;;  %v4521_v33 = vpop.f32.mrf.mxu2 }
 0x350   : > { %5041 = vst.msk [vmem:[%s7832_s23 + $0x50] sm:$0xff] %vm5030_vm2, %v5008_v8  ;;  %v4399_v29 = vmax.f32 %v4367_v18, 0.0  ;;  %v4586_v5 = vmul.f32 %v8265_v43, %v4521_v33  ;;  %v2985_v37 = vpop.permute.xlu2 %2984 }
 0x352   : > { %3720 = vrot.lane.b32.xlu1 %v3657_v42, %s5815_s19  ;;  %v4619_v6 = vadd.f32 %v8281_v54, %v4586_v5  ;;  %v4423_v22 = vpack.c.bf16 %v4399_v29, %v4398_v61  ;;  %v5633_v42 = vld [vmem:[%s5922_s21 + $0x50] sm:$0xff] }
 0x354   : > { %v3194_v36 = vpop.permute.xlu1 %3193  ;;  %v4977_v10 = vadd.f32 %v4945_v27, %v4619_v6  ;;  %5494 = vmatmul.msk.bf16.gmra.mxu2 %vm4433_vm4, %v4423_v22 }
 0x355   : > { %3266 = vst.msk [vmem:[#allocation3 + $0x60] sm:$0xf] %vm3241_vm10, %v3194_v36  ;;  %v3966_v3 = vpop.permute.xlu0 %3965 }
 0x356   : > { %3779 = vst.msk [vmem:[#allocation3 + $0x60] sm:$0xf] %vm3754_vm12, %v3707_v20  ;;  %v5009_v31 = vmax.f32 %v4977_v10, 0.0 }
 0x357   : > { %4036 = vst.msk [vmem:[#allocation3 + $0x60] sm:$0xf] %vm4011_vm13, %v8321_v25 }
 0x358   : > { %5042 = vst.msk [vmem:[%s7832_s23 + $0x58] sm:$0xff] %vm5030_vm2, %v5009_v31  ;;  %v3200_v44 = vpop.permute.xlu2 %3199  ;;  %5576 = vmatmul.msk.bf16.gmra.mxu3 %vm8692_vm9, %v5632_v51 }
 0x35c   : > { %v3709_v45 = vpop.permute.xlu1 %3708 }
 0x35d   : > { %3780 = vst.msk [vmem:[#allocation3 + $0x64] sm:$0xf] %vm3754_vm12, %v3709_v45  ;;  %v2728_v28 = vpop.permute.xlu0 %2727 }
 0x35e   : > { %4037 = vst.msk [vmem:[#allocation3 + $0x64] sm:$0xf] %vm4011_vm13, %v3966_v3 }
 0x360   : > { %v3968_v57 = vpop.permute.xlu2 %3967 }
 0x363   : > { %v4278_v55 = vpop.f32.mrf.mxu1 }
 0x364   : > { %v2215_v49 = vpop.permute.xlu1 %2214  ;;  %v4335_v25 = vmul.f32 %v8342_v39, %v4278_v55 }
 0x365   : > { %2285 = vst.msk [vmem:[#allocation3 + $0x68] sm:$0xf] %vm2258_vm5, %v2215_v49  ;;  %v5617_v4 = vld [vmem:[#allocation3 + $0x60] sm:$0xff]  ;;  %v2987_v12 = vpop.permute.xlu0 %2986 }
 0x366   : > { %2798 = vst.msk [vmem:[#allocation3 + $0x68] sm:$0xf] %vm2771_vm7, %v2728_v28  ;;  %5483 = vmatmul.msk.bf16.gmra.mxu1 %vm4176_vm1, %v5617_v4  ;;  %v4368_v48 = vadd.f32 %v8359_v58, %v4335_v25 }
 0x367   : > { %3055 = vst.msk [vmem:[#allocation3 + $0x68] sm:$0xf] %vm3028_vm8, %v2985_v37 }
 0x368   : > { %v2219_v0 = vpop.permute.xlu2 %2218  ;;  %v4400_v15 = vmax.f32 %v4368_v48, 0.0  ;;  %5577 = vmatmul.msk.bf16.gmra.mxu3 %vm8695_vm11, %v5633_v42 }
 0x369   : > { %2287 = vst.msk [vmem:[#allocation3 + $0x70] sm:$0xf] %vm2258_vm5, %v2219_v0 }
 0x36b   : > { %v4280_v11 = vpop.f32.mrf.mxu1 }
 0x36c   : > { %v2730_v35 = vpop.permute.xlu1 %2729  ;;  %v4336_v21 = vmul.f32 %v8342_v39, %v4280_v11 }
 0x36d   : > { %2799 = vst.msk [vmem:[#allocation3 + $0x6c] sm:$0xf] %vm2771_vm7, %v2730_v35  ;;  %v3711_v2 = vpop.permute.xlu0 %3710 }
 0x36e   : > { %3056 = vst.msk [vmem:[#allocation3 + $0x6c] sm:$0xf] %vm3028_vm8, %v2987_v12  ;;  %v4369_v26 = vadd.f32 %v8359_v58, %v4336_v21 }
 0x36f   : > { %3269 = vst.msk [vmem:[#allocation3 + $0x6c] sm:$0xf] %vm3241_vm10, %v3200_v44 }
 0x370   : > { %v4401_v53 = vmax.f32 %v4369_v26, 0.0  ;;  %v2734_v63 = vpop.permute.xlu2 %2733  ;;  %v4850_v33 = vpop.f32.mrf.mxu3 }
 0x371   : > { %v4913_v5 = vmul.f32 %v8245_v9, %v4850_v33 }
 0x372   : > { %v4424_v19 = vpack.c.bf16 %v4401_v53, %v4400_v15 }
 0x373   : > { %v4946_v22 = vadd.f32 %v8259_v52, %v4913_v5 }
 0x374   : > { %v3198_v41 = vpop.permute.xlu1 %3197  ;;  %5495 = vmatmul.msk.bf16.gmra.mxu2 %vm4433_vm4, %v4424_v19 }
 0x375   : > { %3268 = vst.msk [vmem:[#allocation3 + $0x68] sm:$0xf] %vm3241_vm10, %v3198_v41  ;;  %v3970_v13 = vpop.permute.xlu0 %3969 }
 0x376   : > { %3781 = vst.msk [vmem:[#allocation3 + $0x68] sm:$0xf] %vm3754_vm12, %v3711_v2 }
 0x377   : > { %4038 = vst.msk [vmem:[#allocation3 + $0x68] sm:$0xf] %vm4011_vm13, %v3968_v57 }
 0x378   : > { %v3202_v46 = vpop.permute.xlu2 %3201  ;;  %v4852_v36 = vpop.f32.mrf.mxu3 }
 0x379   : > { %v4914_v44 = vmul.f32 %v8245_v9, %v4852_v36 }
 0x37b   : > { %v4947_v12 = vadd.f32 %v8259_v52, %v4914_v44 }
 0x37c   : > { %v3713_v23 = vpop.permute.xlu1 %3712 }
 0x37d   : > { %3782 = vst.msk [vmem:[#allocation3 + $0x6c] sm:$0xf] %vm3754_vm12, %v3713_v23  ;;  %v2221_v14 = vpop.permute.xlu0 %2220 }
 0x37e   : > { %4039 = vst.msk [vmem:[#allocation3 + $0x6c] sm:$0xf] %vm4011_vm13, %v3970_v13 }
 0x380   : > { %v3717_v24 = vpop.permute.xlu2 %3716 }
 0x383   : > { %v4283_v1 = vpop.f32.mrf.mxu1 }
 0x384   : > { %v2008_v30 = vpop.permute.xlu1 %2007  ;;  %v4337_v62 = vmul.f32 %v8342_v39, %v4283_v1 }
 0x385   : > { %2075 = vst.msk [vmem:[#allocation3 + $0x74] sm:$0xf] %vm8693_vm3, %v2008_v30  ;;  %v5618_v56 = vld [vmem:[#allocation3 + $0x68] sm:$0xff]  ;;  %v2989_v34 = vpop.permute.xlu0 %2988 }
 0x386   : > { %2288 = vst.msk [vmem:[#allocation3 + $0x74] sm:$0xf] %vm2258_vm5, %v2221_v14  ;;  %5484 = vmatmul.msk.bf16.gmra.mxu1 %vm4176_vm1, %v5618_v56  ;;  %v4370_v47 = vadd.f32 %v8359_v58, %v4337_v62 }
 0x387   : > { %2801 = vst.msk [vmem:[#allocation3 + $0x74] sm:$0xf] %vm2771_vm7, %v2734_v63 }
 0x388   : > { %v2010_v60 = vpop.permute.xlu2 %2009  ;;  %v4402_v50 = vmax.f32 %v4370_v47, 0.0 }
 0x389   : > { %2076 = vst.msk [vmem:[#allocation3 + $0x78] sm:$0xf] %vm8694_vm0, %v2010_v60 }
 0x38b   : > { %v4285_v32 = vpop.f32.mrf.mxu1 }
 0x38c   : > { %v2732_v40 = vpop.permute.xlu1 %2731  ;;  %v4338_v16 = vmul.f32 %v8342_v39, %v4285_v32 }
 0x38d   : > { %2800 = vst.msk [vmem:[#allocation3 + $0x70] sm:$0xf] %vm2771_vm7, %v2732_v40  ;;  %v3204_v59 = vpop.permute.xlu0 %3203 }
 0x38e   : > { %3057 = vst.msk [vmem:[#allocation3 + $0x70] sm:$0xf] %vm3028_vm8, %v2989_v34  ;;  %v4371_v17 = vadd.f32 %v8359_v58, %v4338_v16 }
 0x38f   : > { %3270 = vst.msk [vmem:[#allocation3 + $0x70] sm:$0xf] %vm3241_vm10, %v3202_v46  ;;  %v5634_v46 = vld [vmem:[%s5922_s21 + $0x58] sm:$0xff] }
 0x390   : > { %v4403_v38 = vmax.f32 %v4371_v17, 0.0  ;;  %v2225_v27 = vpop.permute.xlu2 %2224 }
 0x392   : > { %v4425_v20 = vpack.c.bf16 %v4403_v38, %v4402_v50 }
 0x394   : > { %v2991_v8 = vpop.permute.xlu1 %2990  ;;  %5496 = vmatmul.msk.bf16.gmra.mxu2 %vm4433_vm4, %v4425_v20  ;;  %v5635_v20 = vld [vmem:[%s5922_s21 + $0x60] sm:$0xff] }
 0x395   : > { %3058 = vst.msk [vmem:[#allocation3 + $0x74] sm:$0xf] %vm3028_vm8, %v2991_v8  ;;  %v3972_v18 = vpop.permute.xlu0 %3971 }
 0x396   : > { %3271 = vst.msk [vmem:[#allocation3 + $0x74] sm:$0xf] %vm3241_vm10, %v3204_v59 }
 0x397   : > { %3784 = vst.msk [vmem:[#allocation3 + $0x74] sm:$0xf] %vm3754_vm12, %v3717_v24 }
 0x398   : > { %v2993_v55 = vpop.permute.xlu2 %2992 }
 0x39c   : > { %v3715_v61 = vpop.permute.xlu1 %3714 }
 0x39d   : > { %3783 = vst.msk [vmem:[#allocation3 + $0x70] sm:$0xf] %vm3754_vm12, %v3715_v61  ;;  %v2012_v29 = vpop.permute.xlu0 %2011 }
 0x39e   : > { %4040 = vst.msk [vmem:[#allocation3 + $0x70] sm:$0xf] %vm4011_vm13, %v3972_v18 }
 0x39f   : > { %2077 = vst.msk [vmem:[#allocation3 + $0x7c] sm:$0xf] %vm8696_vm14, %v2012_v29  ;;  %v4524_v37 = vpop.f32.mrf.mxu2 }
 0x3a0   : > { %2290 = vst.msk [vmem:[#allocation3 + $0x7c] sm:$0xf] %vm2258_vm5, %v2225_v27  ;;  %v4587_v6 = vmul.f32 %v8265_v43, %v4524_v37  ;;  %v3208_v41 = vpop.permute.xlu2 %3207 }
 0x3a2   : > { %v4620_v10 = vadd.f32 %v8281_v54, %v4587_v6 }
 0x3a3   : > { %v4288_v31 = vpop.f32.mrf.mxu1 }
 0x3a4   : > { %v3974_v3 = vpop.permute.xlu1 %3973  ;;  %v4978_v7 = vadd.f32 %v4946_v22, %v4620_v10  ;;  %v4339_v57 = vmul.f32 %v8342_v39, %v4288_v31 }
 0x3a5   : > { %4041 = vst.msk [vmem:[#allocation3 + $0x74] sm:$0xf] %vm4011_vm13, %v3974_v3  ;;  %v2736_v45 = vpop.permute.xlu0 %2735 }
 0x3a6   : > { %v5010_v28 = vmax.f32 %v4978_v7, 0.0  ;;  %v4372_v48 = vadd.f32 %v8359_v58, %v4339_v57 }
 0x3a7   : > { %v4526_v49 = vpop.f32.mrf.mxu2 }
 0x3a8   : > { %5043 = vst.msk [vmem:[%s7832_s23 + $0x60] sm:$0xff] %vm5030_vm2, %v5010_v28  ;;  %v4588_v4 = vmul.f32 %v8265_v43, %v4526_v49  ;;  %v4404_v53 = vmax.f32 %v4372_v48, 0.0  ;;  %v3976_v24 = vpop.permute.xlu2 %3975 }
 0x3aa   : > { %v4621_v25 = vadd.f32 %v8281_v54, %v4588_v4 }
 0x3ab   : > { %v4290_v35 = vpop.f32.mrf.mxu1 }
 0x3ac   : > { %v2223_v0 = vpop.permute.xlu1 %2222  ;;  %v5619_v11 = vld [vmem:[#allocation3 + $0x70] sm:$0xff]  ;;  %v4340_v21 = vmul.f32 %v8342_v39, %v4290_v35  ;;  %v4979_v2 = vadd.f32 %v4947_v12, %v4621_v25 }
 0x3ad   : > { %2289 = vst.msk [vmem:[#allocation3 + $0x78] sm:$0xf] %vm2258_vm5, %v2223_v0  ;;  %5485 = vmatmul.msk.bf16.gmra.mxu1 %vm4176_vm1, %v5619_v11  ;;  %v2995_v19 = vpop.permute.xlu0 %2994  ;;  %vm8697_vm5 = vmmov %vm8691_vm6  ;;  %v5636_v0 = vld [vmem:[%s5922_s21 + $0x68] sm:$0xff] }
 0x3ae   : > { %2802 = vst.msk [vmem:[#allocation3 + $0x78] sm:$0xf] %vm2771_vm7, %v2736_v45  ;;  %v4373_v26 = vadd.f32 %v8359_v58, %v4340_v21  ;;  %v5011_v15 = vmax.f32 %v4979_v2, 0.0  ;;  %5578 = vmatmul.msk.bf16.gmra.mxu3 %vm8697_vm5, %v5634_v46 }
 0x3af   : > { %3059 = vst.msk [vmem:[#allocation3 + $0x78] sm:$0xf] %vm3028_vm8, %v2993_v55 }
 0x3b0   : > { %v4405_v63 = vmax.f32 %v4373_v26, 0.0  ;;  %5044 = vst.msk [vmem:[%s7832_s23 + $0x68] sm:$0xff] %vm5030_vm2, %v5011_v15 }
 0x3b2   : > { %v4426_v13 = vpack.c.bf16 %v4405_v63, %v4404_v53 }
 0x3b4   : > { %v2738_v51 = vpop.permute.xlu1 %2737  ;;  %5497 = vmatmul.msk.bf16.gmra.mxu2 %vm4433_vm4, %v4426_v13 }
 0x3b5   : > { %2803 = vst.msk [vmem:[#allocation3 + $0x7c] sm:$0xf] %vm2771_vm7, %v2738_v51  ;;  %v3719_v23 = vpop.permute.xlu0 %3718  ;;  %vm8698_vm7 = vmmov %vm8697_vm5 }
 0x3b6   : > { %3060 = vst.msk [vmem:[#allocation3 + $0x7c] sm:$0xf] %vm3028_vm8, %v2995_v19 }
 0x3b7   : > { %3273 = vst.msk [vmem:[#allocation3 + $0x7c] sm:$0xf] %vm3241_vm10, %v3208_v41 }
 0x3bb   : > { %v4855_v16 = vpop.f32.mrf.mxu3 }
 0x3bc   : > { %v3206_v14 = vpop.permute.xlu1 %3205  ;;  %v4915_v38 = vmul.f32 %v8245_v9, %v4855_v16 }
 0x3bd   : > { %3272 = vst.msk [vmem:[#allocation3 + $0x78] sm:$0xf] %vm3241_vm10, %v3206_v14  ;;  %v3978_v30 = vpop.permute.xlu0 %3977 }
 0x3be   : > { %3785 = vst.msk [vmem:[#allocation3 + $0x78] sm:$0xf] %vm3754_vm12, %v3719_v23  ;;  %5579 = vmatmul.msk.bf16.gmra.mxu3 %vm8698_vm7, %v5635_v20  ;;  %v4948_v42 = vadd.f32 %v8259_v52, %v4915_v38 }
 0x3bf   : > { %4042 = vst.msk [vmem:[#allocation3 + $0x78] sm:$0xf] %vm4011_vm13, %v3976_v24 }
 0x3c3   : > { %v4293_v56 = vpop.f32.mrf.mxu1  ;;  %v4857_v33 = vpop.f32.mrf.mxu3 }
 0x3c4   : > { %v3721_v1 = vpop.permute.xlu1 %3720  ;;  %v4341_v34 = vmul.f32 %v8342_v39, %v4293_v56  ;;  %v4916_v5 = vmul.f32 %v8245_v9, %v4857_v33 }
 0x3c5   : > { %3786 = vst.msk [vmem:[#allocation3 + $0x7c] sm:$0xf] %vm3754_vm12, %v3721_v1 }
 0x3c6   : > { %4043 = vst.msk [vmem:[#allocation3 + $0x7c] sm:$0xf] %vm4011_vm13, %v3978_v30  ;;  %v4374_v60 = vadd.f32 %v8359_v58, %v4341_v34  ;;  %v4949_v22 = vadd.f32 %v8259_v52, %v4916_v5 }
 0x3c8   : > { %v4406_v59 = vmax.f32 %v4374_v60, 0.0 }
 0x3cb   : > { %v4295_v62 = vpop.f32.mrf.mxu1  ;;  %v4860_v49 = vpop.f32.mrf.mxu3 }
 0x3cc   : > { %v4342_v40 = vmul.f32 %v8342_v39, %v4295_v62  ;;  %v4917_v25 = vmul.f32 %v8245_v9, %v4860_v49 }
 0x3cd   : > { %v5620_v32 = vld [vmem:[#allocation3 + $0x78] sm:$0xff] }
 0x3ce   : > { %v4375_v47 = vadd.f32 %v8359_v58, %v4342_v40  ;;  %5486 = vmatmul.msk.bf16.gmra.mxu1 %vm4176_vm1, %v5620_v32  ;;  %vm8699_vm1 = vmmov %vm8697_vm5  ;;  %v4950_v48 = vadd.f32 %v8259_v52, %v4917_v25  ;;  %v5638_v25 = vld [vmem:[%s5922_s21 + $0x78] sm:$0xff] }
 0x3cf   : > { %5580 = vmatmul.msk.bf16.gmra.mxu3 %vm8699_vm1, %v5636_v0  ;;  %vm8700_vm8 = vmmov %vm8699_vm1 }
 0x3d0   : > { %v4407_v17 = vmax.f32 %v4375_v47, 0.0  ;;  %vm8701_vm10 = vmmov %vm8699_vm1 }
 0x3d2   : > { %v4427_v50 = vpack.c.bf16 %v4407_v17, %v4406_v59 }
 0x3d3   : > { %v4862_v21 = vpop.f32.mrf.mxu3 }
 0x3d4   : > { %5498 = vmatmul.msk.bf16.gmra.mxu2 %vm4433_vm4, %v4427_v50  ;;  %v4918_v15 = vmul.f32 %v8245_v9, %v4862_v21 }
 0x3d6   : > { %v4951_v41 = vadd.f32 %v8259_v52, %v4918_v15 }
 0x3d7   : > { %v4529_v8 = vpop.f32.mrf.mxu2 }
 0x3d8   : > { %v4589_v18 = vmul.f32 %v8265_v43, %v4529_v8 }
 0x3da   : > { %v4622_v61 = vadd.f32 %v8281_v54, %v4589_v18 }
 0x3db   : > { %v4865_v34 = vpop.f32.mrf.mxu3 }
 0x3dc   : > { %v4980_v29 = vadd.f32 %v4948_v42, %v4622_v61  ;;  %v4919_v32 = vmul.f32 %v8245_v9, %v4865_v34  ;;  %v5637_v61 = vld [vmem:[%s5922_s21 + $0x70] sm:$0xff]  ;;  %s5639_s21 = sshll.u32 %s5798_s27, 8 }
 0x3dd   : > { %s5078_s20 = scalar_lea.hbm %s8652_s7, %s5639_s21  ;;  %s5748_s21 = scalar_lea.hbm %s8652_s7, 512 }
 0x3de   : > { %v5012_v27 = vmax.f32 %v4980_v29, 0.0  ;;  %v4952_v59 = vadd.f32 %v8259_v52, %v4919_v32  ;;  %s5081_s27 = sshll.u32 %s5078_s20, 4  ;;  %s5082_s27 = int_to_ptr.hbm [resolvable:$true] %s5081_s27 }
 0x3df   : > { %v4531_v37 = vpop.f32.mrf.mxu2  ;;  %5581 = vmatmul.msk.bf16.gmra.mxu3 %vm8700_vm8, %v5637_v61  ;;  %s5742_s15 = sshra.s32 %s5082_s27, 4  ;;  %s5743_s15 = int_to_ptr.hbm [resolvable:$true] %s5742_s15 }
 0x3e0   : > { %5045 = vst.msk [vmem:[%s7832_s23 + $0x70] sm:$0xff] %vm5030_vm2, %v5012_v27  ;;  %v4590_v6 = vmul.f32 %v8265_v43, %v4531_v37  ;;  %s5744_s16 = scalar_lea.hbm %s5743_s15, 256  ;;  %p5749_p1 = scmp.lt.s32.totalorder %s5743_s15, %s8652_s7 }
 0x3e1   : > { %p5745_p12 = scmp.ne.s32.totalorder %s5743_s15, %s5744_s16  ;;  %p5750_p2 = scmp.lt.s32.totalorder %s5748_s21, %s5744_s16 }
 0x3e2   : > { %v4623_v36 = vadd.f32 %v8281_v54, %v4590_v6 }
 0x3e3   : > { %v4298_v10 = vpop.f32.mrf.mxu1  ;;  %v4867_v17 = vpop.f32.mrf.mxu3  ;;  %p5746_p13 = pnand %p5745_p12, %p5898_p4  ;;  %p5751_p3 = por %p5750_p2, %p5749_p1 }
 0x3e4   : > { %v4981_v3 = vadd.f32 %v4949_v22, %v4623_v36  ;;  %v4343_v7 = vmul.f32 %v8342_v39, %v4298_v10  ;;  %v4920_v20 = vmul.f32 %v8245_v9, %v4867_v17 }
 0x3e5   : > { %p5747_p0 = pneg %p5746_p13 }
 0x3e6   : > { %v5013_v31 = vmax.f32 %v4981_v3, 0.0  ;;  %v4376_v45 = vadd.f32 %v8359_v58, %v4343_v7  ;;  %v4953_v33 = vadd.f32 %v8259_v52, %v4920_v20 }
 0x3e7   : > { %p5752_p5 = pnand %p5751_p3, %p5747_p0 }
 0x3e8   : > { %5046 = vst.msk [vmem:[%s7832_s23 + $0x78] sm:$0xff] %vm5030_vm2, %v5013_v31  ;;  %v4408_v55 = vmax.f32 %v4376_v45, 0.0 }
 0x3eb   : > { %v4300_v44 = vpop.f32.mrf.mxu1  ;;  %v4870_v22 = vpop.f32.mrf.mxu3 }
 0x3ec   : > { %v4344_v28 = vmul.f32 %v8342_v39, %v4300_v44  ;;  %v4921_v31 = vmul.f32 %v8245_v9, %v4870_v22 }
 0x3ee   : > { %v4377_v57 = vadd.f32 %v8359_v58, %v4344_v28  ;;  %v4954_v49 = vadd.f32 %v8259_v52, %v4921_v31 }
 0x3ef   : > { %5582 = vmatmul.msk.bf16.gmra.mxu3 %vm8701_vm10, %v5638_v25 }
 0x3f0   : > { %v4409_v4 = vmax.f32 %v4377_v57, 0.0 }
 0x3f2   : > { %v4428_v12 = vpack.c.bf16 %v4409_v4, %v4408_v55 }
 0x3f3   : > { %v4872_v4 = vpop.f32.mrf.mxu3 }
 0x3f4   : > { %5499 = vmatmul.msk.bf16.gmra.mxu2 %vm4433_vm4, %v4428_v12 }
 0x3f7   : > { %v4534_v35 = vpop.f32.mrf.mxu2 }
 0x3f8   : > { %v4591_v11 = vmul.f32 %v8265_v43, %v4534_v35  ;;  %v4922_v35 = vmul.f32 %v8245_v9, %v4872_v4 }
 0x3fa   : > { %v4624_v2 = vadd.f32 %v8281_v54, %v4591_v11 }
 0x3fc   : > { %v4982_v26 = vadd.f32 %v4950_v48, %v4624_v2  ;;  %v4955_v2 = vadd.f32 %v8259_v52, %v4922_v35 }
 0x3fe   : > { %v5014_v53 = vmax.f32 %v4982_v26, 0.0 }
 0x3ff   : > { %v4536_v63 = vpop.f32.mrf.mxu2 }
 0x400   : > { %5047 = vst.msk [vmem:[%s7832_s23 + $0x80] sm:$0xff] %vm5030_vm2, %v5014_v53  ;;  %v4592_v19 = vmul.f32 %v8265_v43, %v4536_v63 }
 0x402   : > { %v4625_v13 = vadd.f32 %v8281_v54, %v4592_v19 }
 0x403   : > { %v4303_v51 = vpop.f32.mrf.mxu1 }
 0x404   : > { %v4983_v46 = vadd.f32 %v4951_v41, %v4625_v13  ;;  %v4345_v14 = vmul.f32 %v8342_v39, %v4303_v51 }
 0x406   : > { %v5015_v23 = vmax.f32 %v4983_v46, 0.0  ;;  %v4378_v30 = vadd.f32 %v8359_v58, %v4345_v14 }
 0x408   : > { %5048 = vst.msk [vmem:[%s7832_s23 + $0x88] sm:$0xff] %vm5030_vm2, %v5015_v23  ;;  %v4410_v62 = vmax.f32 %v4378_v30, 0.0 }
 0x40b   : > { %v4305_v24 = vpop.f32.mrf.mxu1 }
 0x40c   : > { %v4346_v1 = vmul.f32 %v8342_v39, %v4305_v24 }
 0x40e   : > { %v4379_v56 = vadd.f32 %v8359_v58, %v4346_v1 }
 0x410   : > { %v4411_v60 = vmax.f32 %v4379_v56, 0.0 }
 0x412   : > { %v4429_v40 = vpack.c.bf16 %v4411_v60, %v4410_v62 }
 0x414   : > { %5500 = vmatmul.msk.bf16.gmra.mxu2 %vm4433_vm4, %v4429_v40 }
 0x417   : > { %v4539_v47 = vpop.f32.mrf.mxu2 }
 0x418   : > { %v4593_v16 = vmul.f32 %v8265_v43, %v4539_v47 }
 0x41a   : > { %v4626_v50 = vadd.f32 %v8281_v54, %v4593_v16 }
 0x41c   : > { %v4984_v38 = vadd.f32 %v4952_v59, %v4626_v50 }
 0x41e   : > { %v5016_v8 = vmax.f32 %v4984_v38, 0.0 }
 0x41f   : > { %v4541_v18 = vpop.f32.mrf.mxu2 }
 0x420   : > { %5049 = vst.msk [vmem:[%s7832_s23 + $0x90] sm:$0xff] %vm5030_vm2, %v5016_v8  ;;  %v4594_v42 = vmul.f32 %v8265_v43, %v4541_v18 }
 0x422   : > { %v4627_v29 = vadd.f32 %v8281_v54, %v4594_v42 }
 0x424   : > { %v4985_v5 = vadd.f32 %v4953_v33, %v4627_v29 }
 0x426   : > { %v5017_v27 = vmax.f32 %v4985_v5, 0.0 }
 0x428   : > { %5050 = vst.msk [vmem:[%s7832_s23 + $0x98] sm:$0xff] %vm5030_vm2, %v5017_v27 }
 0x42a   : > { %v4308_v37 = vpop.f32.mrf.mxu1 }
 0x42b   : > { %v4347_v6 = vmul.f32 %v8342_v39, %v4308_v37 }
 0x42d   : > { %v4380_v10 = vadd.f32 %v8359_v58, %v4347_v6 }
 0x42f   : > { %v4412_v44 = vmax.f32 %v4380_v10, 0.0 }
 0x431   : > { %v4875_v19 = vpop.f32.mrf.mxu3 }
 0x432   : > { %v4310_v36 = vpop.f32.mrf.mxu1  ;;  %v4923_v23 = vmul.f32 %v8245_v9, %v4875_v19 }
 0x433   : > { %v4348_v3 = vmul.f32 %v8342_v39, %v4310_v36 }
 0x434   : > { %v4956_v34 = vadd.f32 %v8259_v52, %v4923_v23 }
 0x435   : > { %v4381_v7 = vadd.f32 %v8359_v58, %v4348_v3 }
 0x437   : > { %v4413_v45 = vmax.f32 %v4381_v7, 0.0  ;;  %v4544_v28 = vpop.f32.mrf.mxu2 }
 0x438   : > { %v4595_v57 = vmul.f32 %v8265_v43, %v4544_v28 }
 0x439   : > { %v4430_v55 = vpack.c.bf16 %v4413_v45, %v4412_v44  ;;  %v4877_v62 = vpop.f32.mrf.mxu3 }
 0x43a   : > { %v4628_v12 = vadd.f32 %v8281_v54, %v4595_v57 }
 0x43b   : > { %5501 = vmatmul.msk.bf16.gmra.mxu2 %vm4433_vm4, %v4430_v55 }
 0x43c   : > { %v4986_v0 = vadd.f32 %v4954_v49, %v4628_v12 }
 0x43e   : > { %v5018_v11 = vmax.f32 %v4986_v0, 0.0 }
 0x43f   : > { %v4546_v48 = vpop.f32.mrf.mxu2 }
 0x440   : > { %5051 = vst.msk [vmem:[%s7832_s23 + $0xa0] sm:$0xff] %vm5030_vm2, %v5018_v11  ;;  %v4596_v21 = vmul.f32 %v8265_v43, %v4546_v48 }
 0x441   : > { %v4880_v20 = vpop.f32.mrf.mxu3 }
 0x442   : > { %v4629_v26 = vadd.f32 %v8281_v54, %v4596_v21  ;;  %v4925_v8 = vmul.f32 %v8245_v9, %v4880_v20 }
 0x444   : > { %v4987_v15 = vadd.f32 %v4955_v2, %v4629_v26  ;;  %v4958_v33 = vadd.f32 %v8259_v52, %v4925_v8 }
 0x446   : > { %v5019_v53 = vmax.f32 %v4987_v15, 0.0 }
 0x448   : > { %5052 = vst.msk [vmem:[%s7832_s23 + $0xa8] sm:$0xff] %vm5030_vm2, %v5019_v53 }
 0x449   : > { %v4882_v61 = vpop.f32.mrf.mxu3 }
 0x44a   : > { %v4926_v27 = vmul.f32 %v8245_v9, %v4882_v61 }
 0x44b   : > { %v4313_v63 = vpop.f32.mrf.mxu1 }
 0x44c   : > { %v4349_v41 = vmul.f32 %v8342_v39, %v4313_v63  ;;  %v4959_v36 = vadd.f32 %v8259_v52, %v4926_v27 }
 0x44e   : > { %v4382_v51 = vadd.f32 %v8359_v58, %v4349_v41 }
 0x450   : > { %v4414_v30 = vmax.f32 %v4382_v51, 0.0 }
 0x452   : > { %v4885_v7 = vpop.f32.mrf.mxu3 }
 0x453   : > { %v4315_v13 = vpop.f32.mrf.mxu1  ;;  %v4927_v44 = vmul.f32 %v8245_v9, %v4885_v7 }
 0x454   : > { %v4350_v46 = vmul.f32 %v8342_v39, %v4315_v13  ;;  %v4924_v39 = vmul.f32 %v8245_v9, %v4877_v62 }
 0x455   : > { %v4960_v57 = vadd.f32 %v8259_v52, %v4927_v44 }
 0x456   : > { %v4383_v14 = vadd.f32 %v8359_v58, %v4350_v46  ;;  %v4957_v59 = vadd.f32 %v8259_v52, %v4924_v39 }
 0x457   : > { %v4549_v24 = vpop.f32.mrf.mxu2 }
 0x458   : > { %v4415_v1 = vmax.f32 %v4383_v14, 0.0  ;;  %v4597_v56 = vmul.f32 %v8265_v43, %v4549_v24 }
 0x45a   : > { %v4431_v60 = vpack.c.bf16 %v4415_v1, %v4414_v30  ;;  %v4630_v40 = vadd.f32 %v8281_v54, %v4597_v56  ;;  %v4887_v49 = vpop.f32.mrf.mxu3 }
 0x45b   : > { %v4928_v12 = vmul.f32 %v8245_v9, %v4887_v49 }
 0x45c   : > { %v4988_v32 = vadd.f32 %v4956_v34, %v4630_v40  ;;  %5502 = vmatmul.msk.bf16.gmra.mxu2 %vm4433_vm4, %v4431_v60 }
 0x45d   : > { %v4961_v11 = vadd.f32 %v8259_v52, %v4928_v12 }
 0x45e   : > { %v5020_v47 = vmax.f32 %v4988_v32, 0.0 }
 0x45f   : > { %v4551_v16 = vpop.f32.mrf.mxu2 }
 0x460   : > { %5053 = vst.msk [vmem:[%s7832_s23 + $0xb0] sm:$0xff] %vm5030_vm2, %v5020_v47  ;;  %v4598_v58 = vmul.f32 %v8265_v43, %v4551_v16 }
 0x462   : > { %v4631_v17 = vadd.f32 %v8281_v54, %v4598_v58  ;;  %v4890_v26 = vpop.f32.mrf.mxu3 }
 0x463   : > { %v4929_v15 = vmul.f32 %v8245_v9, %v4890_v26 }
 0x464   : > { %v4989_v50 = vadd.f32 %v4957_v59, %v4631_v17 }
 0x465   : > { %v4962_v19 = vadd.f32 %v8259_v52, %v4929_v15 }
 0x466   : > { %v5021_v38 = vmax.f32 %v4989_v50, 0.0 }
 0x468   : > { %5054 = vst.msk [vmem:[%s7832_s23 + $0xb8] sm:$0xff] %vm5030_vm2, %v5021_v38 }
 0x46a   : > { %v4892_v41 = vpop.f32.mrf.mxu3 }
 0x46b   : > { %v4930_v46 = vmul.f32 %v8245_v9, %v4892_v41 }
 0x46d   : > { %v4963_v30 = vadd.f32 %v8259_v52, %v4930_v46 }
 0x472   : > { %v4895_v62 = vpop.f32.mrf.mxu3 }
 0x473   : > { %v4931_v60 = vmul.f32 %v8245_v9, %v4895_v62 }
 0x475   : > { %v4964_v32 = vadd.f32 %v8259_v52, %v4931_v60 }
 0x477   : > { %v4554_v18 = vpop.f32.mrf.mxu2 }
 0x478   : > { %v4599_v42 = vmul.f32 %v8265_v43, %v4554_v18 }
 0x47a   : > { %v4632_v29 = vadd.f32 %v8281_v54, %v4599_v42  ;;  %v4897_v16 = vpop.f32.mrf.mxu3 }
 0x47b   : > { %v4932_v17 = vmul.f32 %v8245_v9, %v4897_v16 }
 0x47c   : > { %v4990_v5 = vadd.f32 %v4958_v33, %v4632_v29 }
 0x47d   : > { %v4965_v20 = vadd.f32 %v8259_v52, %v4932_v17 }
 0x47e   : > { %v5022_v37 = vmax.f32 %v4990_v5, 0.0 }
 0x47f   : > { %v4556_v6 = vpop.f32.mrf.mxu2 }
 0x480   : > { %5055 = vst.msk [vmem:[%s7832_s23 + $0xc0] sm:$0xff] %vm5030_vm2, %v5022_v37  ;;  %v4600_v22 = vmul.f32 %v8265_v43, %v4556_v6 }
 0x482   : > { %v4633_v10 = vadd.f32 %v8281_v54, %v4600_v22 }
 0x484   : > { %v4991_v3 = vadd.f32 %v4959_v36, %v4633_v10 }
 0x486   : > { %v5023_v31 = vmax.f32 %v4991_v3, 0.0 }
 0x488   : > { %5056 = vst.msk [vmem:[%s7832_s23 + $0xc8] sm:$0xff] %vm5030_vm2, %v5023_v31 }
 0x497   : > { %v4559_v45 = vpop.f32.mrf.mxu2 }
 0x498   : > { %v4601_v28 = vmul.f32 %v8265_v43, %v4559_v45 }
 0x49a   : > { %v4634_v55 = vadd.f32 %v8281_v54, %v4601_v28 }
 0x49c   : > { %v4992_v4 = vadd.f32 %v4960_v57, %v4634_v55 }
 0x49e   : > { %v5024_v25 = vmax.f32 %v4992_v4, 0.0 }
 0x49f   : > { %v4561_v0 = vpop.f32.mrf.mxu2 }
 0x4a0   : > { %5057 = vst.msk [vmem:[%s7832_s23 + $0xd0] sm:$0xff] %vm5030_vm2, %v5024_v25  ;;  %v4602_v35 = vmul.f32 %v8265_v43, %v4561_v0 }
 0x4a2   : > { %v4635_v48 = vadd.f32 %v8281_v54, %v4602_v35 }
 0x4a4   : > { %v4993_v21 = vadd.f32 %v4961_v11, %v4635_v48 }
 0x4a6   : > { %v5025_v2 = vmax.f32 %v4993_v21, 0.0 }
 0x4a8   : > { %5058 = vst.msk [vmem:[%s7832_s23 + $0xd8] sm:$0xff] %vm5030_vm2, %v5025_v2 }
 0x4be   : > { %v4564_v53 = vpop.f32.mrf.mxu2 }
 0x4bf   : > { %v4603_v63 = vmul.f32 %v8265_v43, %v4564_v53 }
 0x4c1   : > { %v4636_v13 = vadd.f32 %v8281_v54, %v4603_v63 }
 0x4c3   : > { %v4994_v51 = vadd.f32 %v4962_v19, %v4636_v13 }
 0x4c5   : > { %v5026_v23 = vmax.f32 %v4994_v51, 0.0 }
 0x4c6   : > { %v4566_v14 = vpop.f32.mrf.mxu2 }
 0x4c7   : > { %5059 = vst.msk [vmem:[%s7832_s23 + $0xe0] sm:$0xff] %vm5030_vm2, %v5026_v23  ;;  %v4604_v24 = vmul.f32 %v8265_v43, %v4566_v14 }
 0x4c9   : > { %v4637_v1 = vadd.f32 %v8281_v54, %v4604_v24 }
 0x4cb   : > { %v4995_v56 = vadd.f32 %v4963_v30, %v4637_v1 }
 0x4cd   : > { %v5027_v34 = vmax.f32 %v4995_v56, 0.0 }
 0x4cf   : > { %5060 = vst.msk [vmem:[%s7832_s23 + $0xe8] sm:$0xff] %vm5030_vm2, %v5027_v34 }
 0x4df   : > { %v4569_v40 = vpop.f32.mrf.mxu2 }
 0x4e0   : > { %v4605_v39 = vmul.f32 %v8265_v43, %v4569_v40 }
 0x4e2   : > { %v4638_v47 = vadd.f32 %v8281_v54, %v4605_v39 }
 0x4e4   : > { %v4996_v58 = vadd.f32 %v4964_v32, %v4638_v47 }
 0x4e6   : > { %v5028_v59 = vmax.f32 %v4996_v58, 0.0 }
 0x4e7   : > { %v4571_v50 = vpop.f32.mrf.mxu2 }
 0x4e8   : > { %5061 = vst.msk [vmem:[%s7832_s23 + $0xf0] sm:$0xff] %vm5030_vm2, %v5028_v59  ;;  %v4606_v38 = vmul.f32 %v8265_v43, %v4571_v50 }
 0x4ea   : > { %v4639_v8 = vadd.f32 %v8281_v54, %v4606_v38 }
 0x4ec   : > { %v4997_v18 = vadd.f32 %v4965_v20, %v4639_v8 }
 0x4ee   : > { %v5029_v42 = vmax.f32 %v4997_v18, 0.0 }
 0x4f0   : > { %5062 = vst.msk [vmem:[%s7832_s23 + $0xf8] sm:$0xff] %vm5030_vm2, %v5029_v42 }
 0x4f1   : > { %5755 = shalt.err (!%p5752_p5)
}
 0x4f2   : > { %s5817_s23 = smov 128  }
 0x4f3   : > { %5640 = dma.vmem_to_hbm [thread:$0]  (%p5898_p4), %s5080_s12, 4096, %s5082_s27, %s5064_s10, %s5817_s23, %s5817_s23, %s5809_s22  }
 0x4f4 PF: > { %p5646_p6 = scmp.ge.s32.totalorder %s5806_s29, 2  ;;  %s5096_s20 = sand.u32 1, %s5786_s24  }
 0x4f5   : > { %s5097_s8 = scalar_lea.sflag [#allocation5], %s5096_s20 }
 0x4f6   : > { %p5643_p7 = pnand %p5646_p6, %p5905_p8 }
 0x4f8   : > { %p5644_p9 = pneg %p5643_p7 }
 0x4fa   : > { %5781 = dma.done.wait (%p5644_p9), %s5097_s8, 4096  }
 0x4fb   : > { %5783 = vsyncadd (%p5644_p9), %s5097_s8, 4294963200  ;;  %s20_s29 = sadd.s32 1, %s5806_s29   ;;  %s8703_s24 = smov %s5790_s25 }
 0x4fc   : > { %p17_p10 = scmp.ge.s32.totalorder %s20_s29, 4   ;;  %s8704_s25 = smov %s5794_s26 }
 0x4fd   : > { %s8705_s26 = smov %s5911_s14  ;;  %s8706_s27 = smov %s5802_s28 }
 0x4fe   : > { %s8707_s28 = smov %s8709_s9  ;;  %19 = sbr.rel (!%p17_p10) target bundleno = 4 (0x4), region = 92 }
 0x503   :  { %5103 = vsyncpa [#allocation5], 1 }
 0x504   :  { %5105 = vsyncpa [#allocation5 + $0x1], 1 }

</bundles_post_ra>
